<compile_context>
chip_gen: v6e
topology: v6e:2x2x1
jax: 0.10.0
libtpu: 0.0.40
codegen_flags: <defaults>
</compile_context>

<pallas_src>
import functools
import numpy as np

import jax
import jax.numpy as jnp
from jax import lax
from jax.experimental import pallas as pl
from jax.experimental.pallas import tpu as pltpu

_NEG_INF = -1e9
_LN_EPS = 1e-6


def _default_vmem_limit():
    cap = 64 * 1024 * 1024
    try:
        info = pltpu.get_tpu_info()
        cap = int(getattr(info, "vmem_capacity_bytes", cap))
    except Exception:
        pass
    # 25% headroom, never above 100 MiB (v5e/v6e: 128 MiB phys, v7x: 64 MiB).
    return int(min(cap * 3 // 4, 100 * 1024 * 1024))


_VMEM_LIMIT = _default_vmem_limit()


# ----------------------------------------------------------------------------- #
# small helpers
# ----------------------------------------------------------------------------- #
def _round_up(x, m):
    return ((x + m - 1) // m) * m


def _pad_to(x, shape):
    pads = [(0, s - d) for d, s in zip(x.shape, shape)]
    if all(p == (0, 0) for p in pads):
        return x
    return jnp.pad(x, pads)


def _layer_norm_rows(y, gamma, beta, D):
    """LayerNorm over the last axis.  y may be zero-padded to Dp >= D columns;
    statistics are computed over the true D columns only."""
    Dp = y.shape[-1]
    if Dp == D:
        mean = jnp.mean(y, axis=-1, keepdims=True)
        cent = y - mean
        var = jnp.mean(cent * cent, axis=-1, keepdims=True)
    else:
        col = lax.broadcasted_iota(jnp.int32, y.shape, y.ndim - 1)
        msk = (col < D).astype(jnp.float32)
        y = y * msk
        mean = jnp.sum(y, axis=-1, keepdims=True) * (1.0 / D)
        cent = (y - mean) * msk
        var = jnp.sum(cent * cent, axis=-1, keepdims=True) * (1.0 / D)
    return cent * lax.rsqrt(var + _LN_EPS) * gamma + beta


# ----------------------------------------------------------------------------- #
# Pallas kernels
# ----------------------------------------------------------------------------- #
def _matmul_kernel(x_ref, w_ref, o_ref, acc_ref, *, relu):
    k = pl.program_id(2)

    @pl.when(k == 0)
    def _():
        acc_ref[...] = jnp.zeros_like(acc_ref)

    acc_ref[...] += jnp.dot(x_ref[...], w_ref[...],
                            preferred_element_type=jnp.float32)

    @pl.when(k == pl.num_programs(2) - 1)
    def _():
        y = acc_ref[...]
        if relu:
            y = jnp.maximum(y, 0.0)
        o_ref[...] = y.astype(o_ref.dtype)


def _matmul_bias_kernel(x_ref, w_ref, b_ref, o_ref, acc_ref, *, relu):
    k = pl.program_id(2)

    @pl.when(k == 0)
    def _():
        acc_ref[...] = jnp.zeros_like(acc_ref)

    acc_ref[...] += jnp.dot(x_ref[...], w_ref[...],
                            preferred_element_type=jnp.float32)

    @pl.when(k == pl.num_programs(2) - 1)
    def _():
        y = acc_ref[...] + b_ref[...]
        if relu:
            y = jnp.maximum(y, 0.0)
        o_ref[...] = y.astype(o_ref.dtype)


def _linear_res_ln_kernel(x_ref, w_ref, b_ref, r_ref, g_ref, bt_ref, rm_ref,
                          o_ref, acc_ref, *, D):
    """out = row_mask * LayerNorm(x @ w + b + residual); matmul tiled over K."""
    k = pl.program_id(1)

    @pl.when(k == 0)
    def _():
        acc_ref[...] = jnp.zeros_like(acc_ref)

    acc_ref[...] += jnp.dot(x_ref[...], w_ref[...],
                            preferred_element_type=jnp.float32)

    @pl.when(k == pl.num_programs(1) - 1)
    def _():
        y = acc_ref[...] + b_ref[...] + r_ref[...].astype(jnp.float32)
        y = _layer_norm_rows(y, g_ref[...], bt_ref[...], D) * rm_ref[...]
        o_ref[...] = y.astype(o_ref.dtype)


def _add_ln_kernel(a_ref, b_ref, g_ref, bt_ref, o_ref, *, D):
    y = a_ref[...].astype(jnp.float32) + b_ref[...].astype(jnp.float32)
    o_ref[...] = _layer_norm_rows(y, g_ref[...], bt_ref[...], D).astype(o_ref.dtype)


def _attn_bias(kpad_row, Lq, Lk, causal):
    """Additive (Lq, Lk) f32 bias built in-register from a (1, Lk) key-pad
    vector (1.0 = masked key) plus an optional causal term."""
    masked = jnp.broadcast_to(kpad_row > 0.0, (Lq, Lk))
    if causal:
        row = lax.broadcasted_iota(jnp.int32, (Lq, Lk), 0)
        col = lax.broadcasted_iota(jnp.int32, (Lq, Lk), 1)
        masked = jnp.logical_or(masked, col > row)
    return jnp.where(masked, _NEG_INF, 0.0)


def _attend_heads(q_all, k_all, v_all, bias, o_ref, H, dk, dv, scale):
    """All heads of one batch element.  Heads are contiguous lane slices; each
    head's context is written straight into its output slice (no concat)."""
    for h in range(H):
        q = q_all[:, h * dk:(h + 1) * dk]
        k = k_all[:, h * dk:(h + 1) * dk]
        v = v_all[:, h * dv:(h + 1) * dv]
        s = lax.dot_general(q, k, (((1,), (1,)), ((), ())),
                            preferred_element_type=jnp.float32)
        s = s * scale + bias
        m = jnp.max(s, axis=-1, keepdims=True)
        p = jnp.exp(s - m)
        p = p * pl.reciprocal(jnp.sum(p, axis=-1, keepdims=True), approx=True)
        ctx = jnp.dot(p.astype(v.dtype), v, preferred_element_type=jnp.float32)
        o_ref[0, :, h * dv:(h + 1) * dv] = ctx.astype(o_ref.dtype)


def _self_attention_kernel(qkv_ref, kpad_ref, o_ref, *, H, dk, dv, scale, causal):
    x = qkv_ref[0]                                   # (L, 2*H*dk + H*dv) bf16
    L = x.shape[0]
    bias = _attn_bias(kpad_ref[0], L, L, causal)
    _attend_heads(x[:, :H * dk], x[:, H * dk:2 * H * dk], x[:, 2 * H * dk:],
                  bias, o_ref, H, dk, dv, scale)


def _cross_attention_kernel(q_ref, kv_ref, kpad_ref, o_ref, *, H, dk, dv, scale):
    q = q_ref[0]                                     # (Lq, H*dk) bf16
    kv = kv_ref[0]                                   # (Lk, H*dk + H*dv) bf16
    Lq, Lk = q.shape[0], kv.shape[0]
    bias = _attn_bias(kpad_ref[0], Lq, Lk, False)
    _attend_heads(q, kv[:, :H * dk], kv[:, H * dk:], bias, o_ref, H, dk, dv, scale)


def _classifier_ce_kernel(x_ref, w_ref, b_ref, tgt_ref, out_ref,
                          acc_ref, m_ref, l_ref, p_ref, *, V):
    """Fused classifier matmul + per-row cross-entropy.
    grid = (M tiles ["parallel"], V tiles, K tiles); online logsumexp over V;
    emits per-row loss (tm, 1) for the current M tile."""
    j = pl.program_id(1)
    k = pl.program_id(2)
    nj = pl.num_programs(1)
    nk = pl.num_programs(2)

    @pl.when(jnp.logical_and(j == 0, k == 0))
    def _():
        m_ref[...] = jnp.full_like(m_ref, -1e30)
        l_ref[...] = jnp.zeros_like(l_ref)
        p_ref[...] = jnp.zeros_like(p_ref)

    @pl.when(k == 0)
    def _():
        acc_ref[...] = jnp.zeros_like(acc_ref)

    acc_ref[...] += jnp.dot(x_ref[...], w_ref[...],
                            preferred_element_type=jnp.float32)

    @pl.when(k == nk - 1)
    def _():
        logits = acc_ref[...] + b_ref[...]                         # (tm, tv) f32
        tv = logits.shape[1]
        col = lax.broadcasted_iota(jnp.int32, logits.shape, 1) + j * tv
        in_vocab = col < V
        tgt = tgt_ref[...]                                         # (tm, 1) int32
        logits_m = jnp.where(in_vocab, logits, -1e30)
        m_prev = m_ref[...]
        m_new = jnp.maximum(m_prev, jnp.max(logits_m, axis=-1, keepdims=True))
        l_ref[...] = (l_ref[...] * jnp.exp(m_prev - m_new)
                      + jnp.sum(jnp.exp(logits_m - m_new), axis=-1, keepdims=True))
        m_ref[...] = m_new
        p_ref[...] += jnp.sum(jnp.where(col == tgt, logits, 0.0),
                              axis=-1, keepdims=True)

    @pl.when(jnp.logical_and(j == nj - 1, k == nk - 1))
    def _():
        out_ref[...] = (m_ref[...] + jnp.log(l_ref[...])) - p_ref[...]


# ----------------------------------------------------------------------------- #
# Pallas wrappers
# ----------------------------------------------------------------------------- #
def linear(x, w, b=None, relu=False, out_dtype=jnp.bfloat16,
           tm=256, tn=512, tk=512):
    """Tiled y = x @ w (+ b) (+ relu); bf16 MXU inputs, f32 accumulation."""
    orig_shape = x.shape
    K = orig_shape[-1]
    N = w.shape[1]
    M = int(np.prod(orig_shape[:-1]))
    x2 = x.reshape(M, K)

    tm = min(tm, _round_up(M, 8))
    tn = min(tn, _round_up(N, 128))
    tk = min(tk, _round_up(K, 128))
    Mp, Kp, Np = _round_up(M, tm), _round_up(K, tk), _round_up(N, tn)

    xp = _pad_to(x2, (Mp, Kp)).astype(jnp.bfloat16)
    wp = _pad_to(w, (Kp, Np)).astype(jnp.bfloat16)

    grid = (Mp // tm, Np // tn, Kp // tk)
    x_spec = pl.BlockSpec((tm, tk), lambda i, j, k: (i, k))
    w_spec = pl.BlockSpec((tk, tn), lambda i, j, k: (k, j))
    o_spec = pl.BlockSpec((tm, tn), lambda i, j, k: (i, j))
    cp = pltpu.CompilerParams(
        dimension_semantics=("parallel", "parallel", "arbitrary"),
        vmem_limit_bytes=_VMEM_LIMIT)
    scratch = [pltpu.VMEM((tm, tn), jnp.float32)]
    out_shape = jax.ShapeDtypeStruct((Mp, Np), out_dtype)

    if b is None:
        yp = pl.pallas_call(
            functools.partial(_matmul_kernel, relu=relu),
            out_shape=out_shape, grid=grid,
            in_specs=[x_spec, w_spec], out_specs=o_spec,
            scratch_shapes=scratch, compiler_params=cp,
        )(xp, wp)
    else:
        bp = _pad_to(b.reshape(1, N).astype(jnp.float32), (1, Np))
        b_spec = pl.BlockSpec((1, tn), lambda i, j, k: (0, j))
        yp = pl.pallas_call(
            functools.partial(_matmul_bias_kernel, relu=relu),
            out_shape=out_shape, grid=grid,
            in_specs=[x_spec, w_spec, b_spec], out_specs=o_spec,
            scratch_shapes=scratch, compiler_params=cp,
        )(xp, wp, bp)

    return yp[:M, :N].reshape(orig_shape[:-1] + (N,))


def linear_residual_ln(x, w, b, residual, gamma, beta, row_mask,
                       tm=256, tk=512):
    """Fused: row_mask * LayerNorm(x @ w + b + residual) -> bf16."""
    orig_shape = residual.shape
    D = orig_shape[-1]
    K = x.shape[-1]
    M = int(np.prod(orig_shape[:-1]))

    tm = min(tm, _round_up(M, 8))
    tk = min(tk, _round_up(K, 128))
    Dp = _round_up(D, 128)
    Mp, Kp = _round_up(M, tm), _round_up(K, tk)

    xp = _pad_to(x.reshape(M, K), (Mp, Kp)).astype(jnp.bfloat16)
    wp = _pad_to(w, (Kp, Dp)).astype(jnp.bfloat16)
    bp = _pad_to(b.reshape(1, D).astype(jnp.float32), (1, Dp))
    rp = _pad_to(residual.reshape(M, D), (Mp, Dp)).astype(jnp.bfloat16)
    gp = _pad_to(gamma.reshape(1, D).astype(jnp.float32), (1, Dp))
    btp = _pad_to(beta.reshape(1, D).astype(jnp.float32), (1, Dp))
    rmp = _pad_to(row_mask.reshape(M, 1).astype(jnp.float32), (Mp, 1))

    grid = (Mp // tm, Kp // tk)
    yp = pl.pallas_call(
        functools.partial(_linear_res_ln_kernel, D=D),
        out_shape=jax.ShapeDtypeStruct((Mp, Dp), jnp.bfloat16),
        grid=grid,
        in_specs=[
            pl.BlockSpec((tm, tk), lambda i, k: (i, k)),
            pl.BlockSpec((tk, Dp), lambda i, k: (k, 0)),
            pl.BlockSpec((1, Dp), lambda i, k: (0, 0)),
            pl.BlockSpec((tm, Dp), lambda i, k: (i, 0)),
            pl.BlockSpec((1, Dp), lambda i, k: (0, 0)),
            pl.BlockSpec((1, Dp), lambda i, k: (0, 0)),
            pl.BlockSpec((tm, 1), lambda i, k: (i, 0)),
        ],
        out_specs=pl.BlockSpec((tm, Dp), lambda i, k: (i, 0)),
        scratch_shapes=[pltpu.VMEM((tm, Dp), jnp.float32)],
        compiler_params=pltpu.CompilerParams(
            dimension_semantics=("parallel", "arbitrary"),
            vmem_limit_bytes=_VMEM_LIMIT),
    )(xp, wp, bp, rp, gp, btp, rmp)
    return yp[:M, :D].reshape(orig_shape)


def add_layer_norm(a, b, gamma, beta):
    """LayerNorm(a + b) over the last axis -> bf16.  b may have a leading batch
    dim of 1 (e.g. the positional table); it is broadcast through the index_map
    and never materialized to (B, L, D) in HBM."""
    B, L, D = a.shape
    Bb = b.shape[0]
    Dp = _round_up(D, 128)

    ap = _pad_to(a, (B, L, Dp))
    bp = _pad_to(b, (Bb, L, Dp))
    gp = _pad_to(gamma.reshape(1, 1, D).astype(jnp.float32), (1, 1, Dp))
    btp = _pad_to(beta.reshape(1, 1, D).astype(jnp.float32), (1, 1, Dp))

    b_map = (lambda i: (i, 0, 0)) if Bb == B else (lambda i: (0, 0, 0))
    yp = pl.pallas_call(
        functools.partial(_add_ln_kernel, D=D),
        out_shape=jax.ShapeDtypeStruct((B, L, Dp), jnp.bfloat16),
        grid=(B,),
        in_specs=[pl.BlockSpec((1, L, Dp), lambda i: (i, 0, 0)),
                  pl.BlockSpec((1, L, Dp), b_map),
                  pl.BlockSpec((1, 1, Dp), lambda i: (0, 0, 0)),
                  pl.BlockSpec((1, 1, Dp), lambda i: (0, 0, 0))],
        out_specs=pl.BlockSpec((1, L, Dp), lambda i: (i, 0, 0)),
        compiler_params=pltpu.CompilerParams(
            dimension_semantics=("parallel",), vmem_limit_bytes=_VMEM_LIMIT),
    )(ap, bp, gp, btp)
    return yp[:, :, :D]


def self_attention(qkv, kpad, H, dk, dv, causal):
    """qkv: (B, L, H*(2*dk+dv)) bf16 fused projection; kpad: (B, L) f32
    (1.0 = masked key column).  The additive bias is built in-kernel."""
    B, L, W = qkv.shape
    scale = 1.0 / float(np.sqrt(dk))
    kpad3 = kpad.reshape(B, 1, L).astype(jnp.float32)
    return pl.pallas_call(
        functools.partial(_self_attention_kernel, H=H, dk=dk, dv=dv,
                          scale=scale, causal=causal),
        out_shape=jax.ShapeDtypeStruct((B, L, H * dv), jnp.bfloat16),
        grid=(B,),
        in_specs=[pl.BlockSpec((1, L, W), lambda i: (i, 0, 0)),
                  pl.BlockSpec((1, 1, L), lambda i: (i, 0, 0))],
        out_specs=pl.BlockSpec((1, L, H * dv), lambda i: (i, 0, 0)),
        compiler_params=pltpu.CompilerParams(
            dimension_semantics=("parallel",), vmem_limit_bytes=_VMEM_LIMIT),
    )(qkv, kpad3)


def cross_attention(q, kv, kpad, H, dk, dv):
    """q: (B, Lq, H*dk); kv: (B, Lk, H*(dk+dv)); kpad: (B, Lk) f32."""
    B, Lq, Wq = q.shape
    Lk, Wkv = kv.shape[1], kv.shape[2]
    scale = 1.0 / float(np.sqrt(dk))
    kpad3 = kpad.reshape(B, 1, Lk).astype(jnp.float32)
    return pl.pallas_call(
        functools.partial(_cross_attention_kernel, H=H, dk=dk, dv=dv, scale=scale),
        out_shape=jax.ShapeDtypeStruct((B, Lq, H * dv), jnp.bfloat16),
        grid=(B,),
        in_specs=[pl.BlockSpec((1, Lq, Wq), lambda i: (i, 0, 0)),
                  pl.BlockSpec((1, Lk, Wkv), lambda i: (i, 0, 0)),
                  pl.BlockSpec((1, 1, Lk), lambda i: (i, 0, 0))],
        out_specs=pl.BlockSpec((1, Lq, H * dv), lambda i: (i, 0, 0)),
        compiler_params=pltpu.CompilerParams(
            dimension_semantics=("parallel",), vmem_limit_bytes=_VMEM_LIMIT),
    )(q, kv, kpad3)


def classifier_ce(x2d, w, b, targets, pad_idx, tm=512, tv=512, tk=512):
    """Fused classifier matmul + per-row cross-entropy (online logsumexp over
    the vocab axis).  Returns per-row losses (M,); masking/mean happen in JAX.
    At these sizes a single M tile means W (DxV) is streamed from HBM once."""
    M, K = x2d.shape
    V = w.shape[1]
    tm = min(tm, _round_up(M, 8))
    tk = min(tk, _round_up(K, 128))
    tv = min(tv, _round_up(V, 128))
    Mp, Kp, Vp = _round_up(M, tm), _round_up(K, tk), _round_up(V, tv)

    xp = _pad_to(x2d, (Mp, Kp)).astype(jnp.bfloat16)
    wp = _pad_to(w, (Kp, Vp)).astype(jnp.bfloat16)
    bp = _pad_to(b.reshape(1, V).astype(jnp.float32), (1, Vp))
    tp = jnp.pad(targets.reshape(M, 1).astype(jnp.int32),
                 ((0, Mp - M), (0, 0)), constant_values=pad_idx)

    grid = (Mp // tm, Vp // tv, Kp // tk)
    loss = pl.pallas_call(
        functools.partial(_classifier_ce_kernel, V=V),
        out_shape=jax.ShapeDtypeStruct((Mp, 1), jnp.float32),
        grid=grid,
        in_specs=[
            pl.BlockSpec((tm, tk), lambda i, j, k: (i, k)),
            pl.BlockSpec((tk, tv), lambda i, j, k: (k, j)),
            pl.BlockSpec((1, tv), lambda i, j, k: (0, j)),
            pl.BlockSpec((tm, 1), lambda i, j, k: (i, 0)),
        ],
        out_specs=pl.BlockSpec((tm, 1), lambda i, j, k: (i, 0)),
        scratch_shapes=[pltpu.VMEM((tm, tv), jnp.float32),
                        pltpu.VMEM((tm, 1), jnp.float32),
                        pltpu.VMEM((tm, 1), jnp.float32),
                        pltpu.VMEM((tm, 1), jnp.float32)],
        compiler_params=pltpu.CompilerParams(
            dimension_semantics=("parallel", "arbitrary", "arbitrary"),
            vmem_limit_bytes=_VMEM_LIMIT),
    )(xp, wp, bp, tp)
    return loss[:M, 0]


# ----------------------------------------------------------------------------- #
# Model pieces (glue around the kernels)
# ----------------------------------------------------------------------------- #
def self_mha(p, x, kpad, row_mask, H, dk, dv, causal):
    qkv = linear(x, p["w_qkv"])                                # fused Q|K|V
    ctx = self_attention(qkv, kpad, H, dk, dv, causal)
    # dropout -> identity (eval mode)
    return linear_residual_ln(ctx, p["fc_w"], p["fc_b"], x,
                              p["ln_g"], p["ln_b"], row_mask)


def cross_mha(p, x, enc, kpad, row_mask, H, dk, dv):
    q = linear(x, p["w_q"])
    kv = linear(enc, p["w_kv"])                                # fused K|V
    ctx = cross_attention(q, kv, kpad, H, dk, dv)
    return linear_residual_ln(ctx, p["fc_w"], p["fc_b"], x,
                              p["ln_g"], p["ln_b"], row_mask)


def position_wise_ffn(p, x, row_mask):
    h = linear(x, p["w1"], p["b1"], relu=True)
    return linear_residual_ln(h, p["w2"], p["b2"], x,
                              p["ln_g"], p["ln_b"], row_mask)


def transformer_forward(params, object_features, position_features,
                        target_caption, cfg):
    pad_idx = cfg["pad_idx"]
    H, dk, dv = cfg["num_heads"], cfg["q_k_dim"], cfg["v_dim"]
    D = cfg["input_size"]

    input_caption = target_caption[:, :-1].astype(jnp.int32)
    target = target_caption[:, 1:].astype(jnp.int32)
    B, Lq = input_caption.shape
    Le = position_features.shape[1]
    Lqp, Lep = _round_up(Lq, 8), _round_up(Le, 8)

    # structural padding of sequence lengths: padded keys are masked in every
    # attention and padded rows are ignored by the loss, so results match the
    # unpadded computation exactly.
    input_caption = jnp.pad(input_caption, ((0, 0), (0, Lqp - Lq)),
                            constant_values=pad_idx)
    target = jnp.pad(target, ((0, 0), (0, Lqp - Lq)),
                     constant_values=pad_idx).reshape(-1)
    object_features = jnp.pad(object_features, ((0, 0), (0, Lep - Le), (0, 0)))
    position_features = jnp.pad(position_features, ((0, 0), (0, Lep - Le), (0, 0)))

    # key-pad vectors (B, Lk); the (Lq, Lk) biases are built inside the kernels.
    enc_kpad = jnp.broadcast_to(
        (jnp.arange(Lep) >= Le).astype(jnp.float32)[None, :], (B, Lep))
    ctx_kpad = (jnp.count_nonzero(position_features, axis=2) == 0).astype(jnp.float32)
    self_kpad = (input_caption == pad_idx).astype(jnp.float32)
    non_pad = (input_caption != pad_idx).astype(jnp.float32)[:, :, None]

    # ---- Encoder (split_position=False, split_image_objects=False, encode_mask=False) ----
    enc_p = params["enc"]
    emb_feat = linear(object_features, enc_p["feature_w"])             # no bias
    emb_pos = linear(position_features, enc_p["position_w"])           # no bias
    output = add_layer_norm(emb_feat, emb_pos, enc_p["norm_g"], enc_p["norm_b"])
    enc_ones = jnp.ones((B, Lep, 1), jnp.float32)
    for blk in enc_p["blocks"]:
        output = self_mha(blk["attn"], output, enc_kpad, enc_ones, H, dk, dv,
                          causal=False)
        output = position_wise_ffn(blk["ffn"], output, enc_ones)
    encode_output = output

    # ---- Decoder ----
    dec_p = params["dec"]
    we = jnp.take(dec_p["embed"], input_caption, axis=0)               # gather (glue)
    we = linear(we, dec_p["embed_w"])                                  # no bias
    pos = _pad_to(dec_p["pos_table"][:, :Lq], (1, Lqp, D))             # (1, Lqp, D)
    dec = add_layer_norm(we, pos, dec_p["norm_g"], dec_p["norm_b"])
    for blk in dec_p["blocks"]:
        dec = self_mha(blk["self_attn"], dec, self_kpad, non_pad, H, dk, dv,
                       causal=True)
        dec = cross_mha(blk["cross_attn"], dec, encode_output, ctx_kpad,
                        non_pad, H, dk, dv)
        dec = position_wise_ffn(blk["ffn"], dec, non_pad)

    # ---- Fused classifier + CrossEntropy(ignore_index=pad_idx, reduction='mean') ----
    loss_rows = classifier_ce(dec.reshape(B * Lqp, D),
                              params["cls_w"], params["cls_b"], target, pad_idx)
    valid = (target != pad_idx).astype(jnp.float32)
    loss = jnp.sum(loss_rows * valid) / jnp.maximum(jnp.sum(valid), 1.0)
    return {"loss": loss}


# ----------------------------------------------------------------------------- #
# Deterministic parameter construction
# ----------------------------------------------------------------------------- #
def _sinusoid_table(num_positions, dim):
    def angle_vec(pos):
        return [pos / np.power(10000, 2 * (j // 2) / dim) for j in range(dim)]
    table = np.array([angle_vec(p) for p in range(num_positions)], dtype=np.float64)
    table[:, 0::2] = np.sin(table[:, 0::2])
    table[:, 1::2] = np.cos(table[:, 1::2])
    return jnp.asarray(table[None, :, :], dtype=jnp.float32)


def make_params(key, cfg):
    keys = iter(jax.random.split(key, 512))

    def xavier(fan_in, fan_out):
        std = np.sqrt(2.0 / (fan_in + fan_out))
        return jax.random.normal(next(keys), (fan_in, fan_out), jnp.float32) * std

    D, Hd, dk, dv = cfg["input_size"], cfg["hidden_size"], cfg["q_k_dim"], cfg["v_dim"]
    H = cfg["num_heads"]

    def self_attn_params():
        w_qkv = jnp.concatenate(
            [xavier(D, H * dk), xavier(D, H * dk), xavier(D, H * dv)], axis=1)
        return dict(w_qkv=w_qkv, fc_w=xavier(H * dv, D),
                    fc_b=jnp.zeros((D,), jnp.float32),
                    ln_g=jnp.ones((D,), jnp.float32), ln_b=jnp.zeros((D,), jnp.float32))

    def cross_attn_params():
        return dict(w_q=xavier(D, H * dk),
                    w_kv=jnp.concatenate([xavier(D, H * dk), xavier(D, H * dv)], axis=1),
                    fc_w=xavier(H * dv, D), fc_b=jnp.zeros((D,), jnp.float32),
                    ln_g=jnp.ones((D,), jnp.float32), ln_b=jnp.zeros((D,), jnp.float32))

    def ffn_params():
        return dict(w1=xavier(D, Hd), b1=jnp.zeros((Hd,), jnp.float32),
                    w2=xavier(Hd, D), b2=jnp.zeros((D,), jnp.float32),
                    ln_g=jnp.ones((D,), jnp.float32), ln_b=jnp.zeros((D,), jnp.float32))

    enc = dict(
        feature_w=xavier(cfg["dim_features"], D),
        position_w=xavier(cfg["dim_positions"], D),
        norm_g=jnp.ones((D,), jnp.float32), norm_b=jnp.zeros((D,), jnp.float32),
        blocks=[dict(attn=self_attn_params(), ffn=ffn_params())
                for _ in range(cfg["num_blocks"])],
    )

    embed = jax.random.normal(next(keys), (cfg["num_vocab"], cfg["dim_word_embedding"]),
                              jnp.float32)
    embed = embed.at[cfg["pad_idx"]].set(0.0)       # padding_idx row is zero
    dec = dict(
        embed=embed,
        embed_w=xavier(cfg["dim_word_embedding"], D),
        pos_table=_sinusoid_table(cfg["max_length"] - 1, D),
        norm_g=jnp.ones((D,), jnp.float32), norm_b=jnp.zeros((D,), jnp.float32),
        blocks=[dict(self_attn=self_attn_params(), cross_attn=cross_attn_params(),
                     ffn=ffn_params())
                for _ in range(cfg["num_blocks"])],
    )

    return dict(
        enc=enc, dec=dec,
        cls_w=xavier(D, cfg["num_vocab"]),
        cls_b=jnp.zeros((cfg["num_vocab"],), jnp.float32),
    )


# ----------------------------------------------------------------------------- #
if __name__ == "__main__":
    cfg = dict(
        num_vocab=16, max_length=8, pad_idx=0,
        dim_positions=6, dim_features=16,
        input_size=32, hidden_size=64,
        num_heads=4, q_k_dim=8, v_dim=8,
        num_blocks=2, dim_word_embedding=32,
    )

    root = jax.random.PRNGKey(0)
    k_par, k_obj, k_pos, k_cap = jax.random.split(root, 4)
    params = make_params(k_par, cfg)

    B, Le = 2, 8
    object_features = jax.random.normal(k_obj, (B, Le, cfg["dim_features"]), jnp.float32)
    position_features = jax.random.normal(k_pos, (B, Le, cfg["dim_positions"]), jnp.float32)
    # make one key row fully zero so the context key-pad mask is exercised
    position_features = position_features.at[0, Le - 1].set(0.0)
    object_features = object_features.at[0, Le - 1].set(0.0)

    # target caption: BOS=1, then random tokens in [2, V), trailing pads (0)
    cap = jax.random.randint(k_cap, (B, cfg["max_length"]), 2, cfg["num_vocab"])
    cap = cap.at[:, 0].set(1)
    cap = cap.at[0, 6:].set(0)
    cap = cap.at[1, 7:].set(0)
    target_caption = cap.astype(jnp.int32)

    # TODO(synk): training-mode dropout (eval-mode identity here).
    fwd = jax.jit(functools.partial(transformer_forward, cfg=cfg))
    out = fwd(params, object_features, position_features, target_caption)
    loss = jax.block_until_ready(out["loss"])
    assert np.isfinite(float(loss))
    print("KERNEL_OK")
</pallas_src>

<mosaic_0001>
module attributes {stable_mosaic.version = 11 : i64} {
  func.func @_add_ln_kernel(%arg0: i32, %arg1: memref<1x8x128xbf16, #tpu.memory_space<vmem>>, %arg2: memref<1x8x128xbf16, #tpu.memory_space<vmem>>, %arg3: memref<1x1x128xf32, #tpu.memory_space<vmem>>, %arg4: memref<1x1x128xf32, #tpu.memory_space<vmem>>, %arg5: memref<1x8x128xbf16, #tpu.memory_space<vmem>>) attributes {dimension_semantics = [#tpu.dimension_semantics<parallel>], iteration_bounds = array<i64: 2>, scalar_prefetch = 0 : i64, scratch_operands = 0 : i64, tpu.core_type = #tpu.core_type<tc>, window_params = [{transform_indices = @transform_0, window_bounds = array<i64: 1, 8, 128>}, {transform_indices = @transform_1, window_bounds = array<i64: 1, 8, 128>}, {pipeline_mode = #tpu.pipeline_mode<synchronous>, transform_indices = @transform_2, window_bounds = array<i64: 1, 1, 128>}, {pipeline_mode = #tpu.pipeline_mode<synchronous>, transform_indices = @transform_3, window_bounds = array<i64: 1, 1, 128>}, {transform_indices = @transform_4, window_bounds = array<i64: 1, 8, 128>}]} {
    %c0 = arith.constant 0 : index
    %c0_0 = arith.constant 0 : index
    %c0_1 = arith.constant 0 : index
    %0 = vector.load %arg1[%c0, %c0_0, %c0_1] : memref<1x8x128xbf16, #tpu.memory_space<vmem>>, vector<1x8x128xbf16>
    %1 = arith.extf %0 : vector<1x8x128xbf16> to vector<1x8x128xf32>
    %c0_2 = arith.constant 0 : index
    %c0_3 = arith.constant 0 : index
    %c0_4 = arith.constant 0 : index
    %2 = vector.load %arg2[%c0_2, %c0_3, %c0_4] : memref<1x8x128xbf16, #tpu.memory_space<vmem>>, vector<1x8x128xbf16>
    %3 = arith.extf %2 : vector<1x8x128xbf16> to vector<1x8x128xf32>
    %4 = arith.addf %1, %3 : vector<1x8x128xf32>
    %c0_5 = arith.constant 0 : index
    %c0_6 = arith.constant 0 : index
    %c0_7 = arith.constant 0 : index
    %5 = vector.load %arg3[%c0_5, %c0_6, %c0_7] : memref<1x1x128xf32, #tpu.memory_space<vmem>>, vector<1x1x128xf32>
    %c0_8 = arith.constant 0 : index
    %c0_9 = arith.constant 0 : index
    %c0_10 = arith.constant 0 : index
    %6 = vector.load %arg4[%c0_8, %c0_9, %c0_10] : memref<1x1x128xf32, #tpu.memory_space<vmem>>, vector<1x1x128xf32>
    %7 = tpu.iota {dimensions = array<i32: 2>} : vector<1x8x128xi32>
    %c32_i32 = arith.constant 32 : i32
    %8 = vector.broadcast %c32_i32 : i32 to vector<1x8x128xi32>
    %9 = arith.cmpi slt, %7, %8 : vector<1x8x128xi32>
    %10 = arith.extui %9 : vector<1x8x128xi1> to vector<1x8x128xi32>
    %11 = arith.sitofp %10 : vector<1x8x128xi32> to vector<1x8x128xf32>
    %12 = arith.mulf %4, %11 : vector<1x8x128xf32>
    %cst = arith.constant dense<0.000000e+00> : vector<1x8xf32>
    %13 = vector.multi_reduction <add>, %12, %cst [2] : vector<1x8x128xf32> to vector<1x8xf32>
    %14 = vector.shape_cast %13 : vector<1x8xf32> to vector<1x8x1xf32>
    %cst_11 = arith.constant 3.125000e-02 : f32
    %15 = vector.broadcast %cst_11 : f32 to vector<1x8x1xf32>
    %16 = arith.mulf %14, %15 : vector<1x8x1xf32>
    %17 = vector.broadcast %16 : vector<1x8x1xf32> to vector<1x8x128xf32>
    %18 = arith.subf %12, %17 : vector<1x8x128xf32>
    %19 = arith.mulf %18, %11 : vector<1x8x128xf32>
    %20 = arith.mulf %19, %19 : vector<1x8x128xf32>
    %cst_12 = arith.constant dense<0.000000e+00> : vector<1x8xf32>
    %21 = vector.multi_reduction <add>, %20, %cst_12 [2] : vector<1x8x128xf32> to vector<1x8xf32>
    %22 = vector.shape_cast %21 : vector<1x8xf32> to vector<1x8x1xf32>
    %cst_13 = arith.constant 3.125000e-02 : f32
    %23 = vector.broadcast %cst_13 : f32 to vector<1x8x1xf32>
    %24 = arith.mulf %22, %23 : vector<1x8x1xf32>
    %cst_14 = arith.constant 9.99999997E-7 : f32
    %25 = vector.broadcast %cst_14 : f32 to vector<1x8x1xf32>
    %26 = arith.addf %24, %25 : vector<1x8x1xf32>
    %27 = math.rsqrt %26 : vector<1x8x1xf32>
    %28 = vector.broadcast %27 : vector<1x8x1xf32> to vector<1x8x128xf32>
    %29 = arith.mulf %19, %28 : vector<1x8x128xf32>
    %30 = vector.broadcast %5 : vector<1x1x128xf32> to vector<1x8x128xf32>
    %31 = arith.mulf %29, %30 : vector<1x8x128xf32>
    %32 = vector.broadcast %6 : vector<1x1x128xf32> to vector<1x8x128xf32>
    %33 = arith.addf %31, %32 : vector<1x8x128xf32>
    %34 = arith.truncf %33 : vector<1x8x128xf32> to vector<1x8x128xbf16>
    %c0_15 = arith.constant 0 : index
    %c0_16 = arith.constant 0 : index
    %c0_17 = arith.constant 0 : index
    %35 = vector.load %arg5[%c0_15, %c0_16, %c0_17] : memref<1x8x128xbf16, #tpu.memory_space<vmem>>, vector<1x8x128xbf16>
    tpu.vector_store %arg5[%c0_15, %c0_16, %c0_17], %34 {strides = array<i32>} : memref<1x8x128xbf16, #tpu.memory_space<vmem>>, vector<1x8x128xbf16>,
    return
  }
  func.func @transform_0(%arg0: i32) -> (i32, i32, i32) {
    %c0_i32 = arith.constant 0 : i32
    %c0_i32_0 = arith.constant 0 : i32
    %c0_i32_1 = arith.constant 0 : i32
    return %arg0, %c0_i32, %c0_i32_0 : i32, i32, i32
  }
  func.func @transform_1(%arg0: i32) -> (i32, i32, i32) {
    %c0_i32 = arith.constant 0 : i32
    %c0_i32_0 = arith.constant 0 : i32
    %c0_i32_1 = arith.constant 0 : i32
    return %arg0, %c0_i32, %c0_i32_0 : i32, i32, i32
  }
  func.func @transform_2(%arg0: i32) -> (i32, i32, i32) {
    %c0_i32 = arith.constant 0 : i32
    %c0_i32_0 = arith.constant 0 : i32
    %c0_i32_1 = arith.constant 0 : i32
    %c0_i32_2 = arith.constant 0 : i32
    return %c0_i32, %c0_i32_0, %c0_i32_1 : i32, i32, i32
  }
  func.func @transform_3(%arg0: i32) -> (i32, i32, i32) {
    %c0_i32 = arith.constant 0 : i32
    %c0_i32_0 = arith.constant 0 : i32
    %c0_i32_1 = arith.constant 0 : i32
    %c0_i32_2 = arith.constant 0 : i32
    return %c0_i32, %c0_i32_0, %c0_i32_1 : i32, i32, i32
  }
  func.func @transform_4(%arg0: i32) -> (i32, i32, i32) {
    %c0_i32 = arith.constant 0 : i32
    %c0_i32_0 = arith.constant 0 : i32
    %c0_i32_1 = arith.constant 0 : i32
    return %arg0, %c0_i32, %c0_i32_0 : i32, i32, i32
  }
}

module attributes {stable_mosaic.version = 11 : i64} {
  func.func @_matmul_kernel(%arg0: i32, %arg1: i32, %arg2: i32, %arg3: memref<16x128xbf16, #tpu.memory_space<vmem>>, %arg4: memref<128x128xbf16, #tpu.memory_space<vmem>>, %arg5: memref<16x128xbf16, #tpu.memory_space<vmem>>, %arg6: memref<16x128xf32, #tpu.memory_space<vmem>>) attributes {dimension_semantics = [#tpu.dimension_semantics<parallel>, #tpu.dimension_semantics<parallel>, #tpu.dimension_semantics<arbitrary>], iteration_bounds = array<i64: 1, 1, 1>, scalar_prefetch = 0 : i64, scratch_operands = 1 : i64, tpu.core_type = #tpu.core_type<tc>, window_params = [{transform_indices = @transform_0, window_bounds = array<i64: 16, 128>}, {transform_indices = @transform_1, window_bounds = array<i64: 128, 128>}, {transform_indices = @transform_2, window_bounds = array<i64: 16, 128>}]} {
    %c0_i32 = arith.constant 0 : i32
    %0 = arith.cmpi eq, %arg2, %c0_i32 : i32
    %1 = arith.extui %0 : i1 to i32
    %c0_i32_0 = arith.constant 0 : i32
    %2 = arith.cmpi ne, %1, %c0_i32_0 : i32
    scf.if %2 {
      %cst_10 = arith.constant 0.000000e+00 : f32
      %12 = vector.broadcast %cst_10 : f32 to vector<16x128xf32>
      %c0_11 = arith.constant 0 : index
      %c0_12 = arith.constant 0 : index
      %13 = vector.load %arg6[%c0_11, %c0_12] : memref<16x128xf32, #tpu.memory_space<vmem>>, vector<16x128xf32>
      tpu.vector_store %arg6[%c0_11, %c0_12], %12 {strides = array<i32>} : memref<16x128xf32, #tpu.memory_space<vmem>>, vector<16x128xf32>,
    } else {
    }
    %c0 = arith.constant 0 : index
    %c0_1 = arith.constant 0 : index
    %3 = vector.load %arg6[%c0, %c0_1] : memref<16x128xf32, #tpu.memory_space<vmem>>, vector<16x128xf32>
    %c0_2 = arith.constant 0 : index
    %c0_3 = arith.constant 0 : index
    %4 = vector.load %arg3[%c0_2, %c0_3] : memref<16x128xbf16, #tpu.memory_space<vmem>>, vector<16x128xbf16>
    %c0_4 = arith.constant 0 : index
    %c0_5 = arith.constant 0 : index
    %5 = vector.load %arg4[%c0_4, %c0_5] : memref<128x128xbf16, #tpu.memory_space<vmem>>, vector<128x128xbf16>
    %cst = arith.constant dense<0.000000e+00> : vector<16x128xf32>
    %6 = tpu.matmul %4, %5, %cst {dimension_numbers = #tpu.dot_dimension_numbers<[1], [0], [0], [1], [0, 0, 1, 1], [], []>} : vector<16x128xbf16>, vector<128x128xbf16>, vector<16x128xf32> -> vector<16x128xf32>
    %7 = arith.addf %3, %6 : vector<16x128xf32>
    %c0_6 = arith.constant 0 : index
    %c0_7 = arith.constant 0 : index
    %8 = vector.load %arg6[%c0_6, %c0_7] : memref<16x128xf32, #tpu.memory_space<vmem>>, vector<16x128xf32>
    tpu.vector_store %arg6[%c0_6, %c0_7], %7 {strides = array<i32>} : memref<16x128xf32, #tpu.memory_space<vmem>>, vector<16x128xf32>,
    %c0_i32_8 = arith.constant 0 : i32
    %9 = arith.cmpi eq, %arg2, %c0_i32_8 : i32
    %10 = arith.extui %9 : i1 to i32
    %c0_i32_9 = arith.constant 0 : i32
    %11 = arith.cmpi ne, %10, %c0_i32_9 : i32
    scf.if %11 {
      %c0_10 = arith.constant 0 : index
      %c0_11 = arith.constant 0 : index
      %12 = vector.load %arg6[%c0_10, %c0_11] : memref<16x128xf32, #tpu.memory_space<vmem>>, vector<16x128xf32>
      %13 = arith.truncf %12 : vector<16x128xf32> to vector<16x128xbf16>
      %c0_12 = arith.constant 0 : index
      %c0_13 = arith.constant 0 : index
      %14 = vector.load %arg5[%c0_12, %c0_13] : memref<16x128xbf16, #tpu.memory_space<vmem>>, vector<16x128xbf16>
      tpu.vector_store %arg5[%c0_12, %c0_13], %13 {strides = array<i32>} : memref<16x128xbf16, #tpu.memory_space<vmem>>, vector<16x128xbf16>,
    } else {
    }
    return
  }
  func.func @transform_0(%arg0: i32, %arg1: i32, %arg2: i32) -> (i32, i32) {
    %c0_i32 = arith.constant 0 : i32
    return %arg0, %arg2 : i32, i32
  }
  func.func @transform_1(%arg0: i32, %arg1: i32, %arg2: i32) -> (i32, i32) {
    %c0_i32 = arith.constant 0 : i32
    return %arg2, %arg1 : i32, i32
  }
  func.func @transform_2(%arg0: i32, %arg1: i32, %arg2: i32) -> (i32, i32) {
    %c0_i32 = arith.constant 0 : i32
    return %arg0, %arg1 : i32, i32
  }
}

module attributes {stable_mosaic.version = 11 : i64} {
  func.func @_self_attention_kernel(%arg0: i32, %arg1: memref<1x8x96xbf16, #tpu.memory_space<vmem>>, %arg2: memref<1x1x8xf32, #tpu.memory_space<vmem>>, %arg3: memref<1x8x32xbf16, #tpu.memory_space<vmem>>) attributes {dimension_semantics = [#tpu.dimension_semantics<parallel>], iteration_bounds = array<i64: 2>, scalar_prefetch = 0 : i64, scratch_operands = 0 : i64, tpu.core_type = #tpu.core_type<tc>, window_params = [{transform_indices = @transform_0, window_bounds = array<i64: 1, 8, 96>}, {transform_indices = @transform_1, window_bounds = array<i64: 1, 1, 8>}, {transform_indices = @transform_2, window_bounds = array<i64: 1, 8, 32>}]} {
    %c0 = arith.constant 0 : index
    %c0_0 = arith.constant 0 : index
    %c0_1 = arith.constant 0 : index
    %0 = vector.load %arg1[%c0, %c0_0, %c0_1] : memref<1x8x96xbf16, #tpu.memory_space<vmem>>, vector<1x8x96xbf16>
    %1 = vector.shape_cast %0 : vector<1x8x96xbf16> to vector<8x96xbf16>
    %c0_2 = arith.constant 0 : index
    %c0_3 = arith.constant 0 : index
    %c0_4 = arith.constant 0 : index
    %2 = vector.load %arg2[%c0_2, %c0_3, %c0_4] : memref<1x1x8xf32, #tpu.memory_space<vmem>>, vector<1x1x8xf32>
    %3 = vector.shape_cast %2 : vector<1x1x8xf32> to vector<1x8xf32>
    %cst = arith.constant 0.000000e+00 : f32
    %4 = vector.broadcast %cst : f32 to vector<1x8xf32>
    %5 = arith.cmpf ogt, %3, %4 : vector<1x8xf32>
    %6 = vector.shape_cast %5 : vector<1x8xi1> to vector<1x8xi1>
    %7 = vector.broadcast %6 : vector<1x8xi1> to vector<8x8xi1>
    %cst_5 = arith.constant -1.000000e+09 : f32
    %cst_6 = arith.constant 0.000000e+00 : f32
    %8 = vector.broadcast %cst_5 : f32 to vector<8x8xf32>
    %9 = vector.broadcast %cst_6 : f32 to vector<8x8xf32>
    %10 = arith.select %7, %8, %9 : vector<8x8xi1>, vector<8x8xf32>
    %11 = vector.extract_strided_slice %1 {offsets = [0, 0], sizes = [8, 32], strides = [1, 1]} : vector<8x96xbf16> to vector<8x32xbf16>
    %12 = vector.extract_strided_slice %1 {offsets = [0, 32], sizes = [8, 32], strides = [1, 1]} : vector<8x96xbf16> to vector<8x32xbf16>
    %13 = vector.extract_strided_slice %1 {offsets = [0, 64], sizes = [8, 32], strides = [1, 1]} : vector<8x96xbf16> to vector<8x32xbf16>
    %14 = vector.extract_strided_slice %11 {offsets = [0, 0], sizes = [8, 8], strides = [1, 1]} : vector<8x32xbf16> to vector<8x8xbf16>
    %15 = vector.extract_strided_slice %12 {offsets = [0, 0], sizes = [8, 8], strides = [1, 1]} : vector<8x32xbf16> to vector<8x8xbf16>
    %16 = vector.extract_strided_slice %13 {offsets = [0, 0], sizes = [8, 8], strides = [1, 1]} : vector<8x32xbf16> to vector<8x8xbf16>
    %cst_7 = arith.constant dense<0.000000e+00> : vector<8x8xf32>
    %17 = tpu.matmul %14, %15, %cst_7 {dimension_numbers = #tpu.dot_dimension_numbers<[1], [1], [0], [0], [0, 0, 1, 0], [], []>} : vector<8x8xbf16>, vector<8x8xbf16>, vector<8x8xf32> -> vector<8x8xf32>
    %cst_8 = arith.constant 0.353553385 : f32
    %18 = vector.broadcast %cst_8 : f32 to vector<8x8xf32>
    %19 = arith.mulf %17, %18 : vector<8x8xf32>
    %20 = arith.addf %19, %10 : vector<8x8xf32>
    %cst_9 = arith.constant dense<0xFF800000> : vector<8xf32>
    %21 = vector.multi_reduction <maximumf>, %20, %cst_9 [1] : vector<8x8xf32> to vector<8xf32>
    %22 = vector.shape_cast %21 : vector<8xf32> to vector<8x1xf32>
    %23 = vector.broadcast %22 : vector<8x1xf32> to vector<8x8xf32>
    %24 = arith.subf %20, %23 : vector<8x8xf32>
    %25 = math.exp %24 : vector<8x8xf32>
    %cst_10 = arith.constant dense<0.000000e+00> : vector<8xf32>
    %26 = vector.multi_reduction <add>, %25, %cst_10 [1] : vector<8x8xf32> to vector<8xf32>
    %27 = vector.shape_cast %26 : vector<8xf32> to vector<8x1xf32>
    %28 = tpu.reciprocal %27 {approx = true} : vector<8x1xf32> -> vector<8x1xf32>
    %29 = vector.broadcast %28 : vector<8x1xf32> to vector<8x8xf32>
    %30 = arith.mulf %25, %29 : vector<8x8xf32>
    %31 = arith.truncf %30 : vector<8x8xf32> to vector<8x8xbf16>
    %cst_11 = arith.constant dense<0.000000e+00> : vector<8x8xf32>
    %32 = tpu.matmul %31, %16, %cst_11 {dimension_numbers = #tpu.dot_dimension_numbers<[1], [0], [0], [1], [0, 0, 1, 1], [], []>} : vector<8x8xbf16>, vector<8x8xbf16>, vector<8x8xf32> -> vector<8x8xf32>
    %33 = arith.truncf %32 : vector<8x8xf32> to vector<8x8xbf16>
    %c0_12 = arith.constant 0 : index
    %c0_13 = arith.constant 0 : index
    %c0_14 = arith.constant 0 : index
    %34 = vector.load %arg3[%c0_12, %c0_13, %c0_14] : memref<1x8x32xbf16, #tpu.memory_space<vmem>>, vector<1x8x8xbf16>
    %35 = vector.shape_cast %34 : vector<1x8x8xbf16> to vector<8x8xbf16>
    %36 = vector.shape_cast %33 : vector<8x8xbf16> to vector<1x8x8xbf16>
    tpu.vector_store %arg3[%c0_12, %c0_13, %c0_14], %36 {strides = array<i32>} : memref<1x8x32xbf16, #tpu.memory_space<vmem>>, vector<1x8x8xbf16>,
    %37 = vector.extract_strided_slice %11 {offsets = [0, 8], sizes = [8, 8], strides = [1, 1]} : vector<8x32xbf16> to vector<8x8xbf16>
    %38 = vector.extract_strided_slice %12 {offsets = [0, 8], sizes = [8, 8], strides = [1, 1]} : vector<8x32xbf16> to vector<8x8xbf16>
    %39 = vector.extract_strided_slice %13 {offsets = [0, 8], sizes = [8, 8], strides = [1, 1]} : vector<8x32xbf16> to vector<8x8xbf16>
    %cst_15 = arith.constant dense<0.000000e+00> : vector<8x8xf32>
    %40 = tpu.matmul %37, %38, %cst_15 {dimension_numbers = #tpu.dot_dimension_numbers<[1], [1], [0], [0], [0, 0, 1, 0], [], []>} : vector<8x8xbf16>, vector<8x8xbf16>, vector<8x8xf32> -> vector<8x8xf32>
    %cst_16 = arith.constant 0.353553385 : f32
    %41 = vector.broadcast %cst_16 : f32 to vector<8x8xf32>
    %42 = arith.mulf %40, %41 : vector<8x8xf32>
    %43 = arith.addf %42, %10 : vector<8x8xf32>
    %cst_17 = arith.constant dense<0xFF800000> : vector<8xf32>
    %44 = vector.multi_reduction <maximumf>, %43, %cst_17 [1] : vector<8x8xf32> to vector<8xf32>
    %45 = vector.shape_cast %44 : vector<8xf32> to vector<8x1xf32>
    %46 = vector.broadcast %45 : vector<8x1xf32> to vector<8x8xf32>
    %47 = arith.subf %43, %46 : vector<8x8xf32>
    %48 = math.exp %47 : vector<8x8xf32>
    %cst_18 = arith.constant dense<0.000000e+00> : vector<8xf32>
    %49 = vector.multi_reduction <add>, %48, %cst_18 [1] : vector<8x8xf32> to vector<8xf32>
    %50 = vector.shape_cast %49 : vector<8xf32> to vector<8x1xf32>
    %51 = tpu.reciprocal %50 {approx = true} : vector<8x1xf32> -> vector<8x1xf32>
    %52 = vector.broadcast %51 : vector<8x1xf32> to vector<8x8xf32>
    %53 = arith.mulf %48, %52 : vector<8x8xf32>
    %54 = arith.truncf %53 : vector<8x8xf32> to vector<8x8xbf16>
    %cst_19 = arith.constant dense<0.000000e+00> : vector<8x8xf32>
    %55 = tpu.matmul %54, %39, %cst_19 {dimension_numbers = #tpu.dot_dimension_numbers<[1], [0], [0], [1], [0, 0, 1, 1], [], []>} : vector<8x8xbf16>, vector<8x8xbf16>, vector<8x8xf32> -> vector<8x8xf32>
    %56 = arith.truncf %55 : vector<8x8xf32> to vector<8x8xbf16>
    %c0_20 = arith.constant 0 : index
    %c0_21 = arith.constant 0 : index
    %c8 = arith.constant 8 : index
    %57 = vector.load %arg3[%c0_20, %c0_21, %c8] : memref<1x8x32xbf16, #tpu.memory_space<vmem>>, vector<1x8x8xbf16>
    %58 = vector.shape_cast %57 : vector<1x8x8xbf16> to vector<8x8xbf16>
    %59 = vector.shape_cast %56 : vector<8x8xbf16> to vector<1x8x8xbf16>
    tpu.vector_store %arg3[%c0_20, %c0_21, %c8], %59 {strides = array<i32>} : memref<1x8x32xbf16, #tpu.memory_space<vmem>>, vector<1x8x8xbf16>,
    %60 = vector.extract_strided_slice %11 {offsets = [0, 16], sizes = [8, 8], strides = [1, 1]} : vector<8x32xbf16> to vector<8x8xbf16>
    %61 = vector.extract_strided_slice %12 {offsets = [0, 16], sizes = [8, 8], strides = [1, 1]} : vector<8x32xbf16> to vector<8x8xbf16>
    %62 = vector.extract_strided_slice %13 {offsets = [0, 16], sizes = [8, 8], strides = [1, 1]} : vector<8x32xbf16> to vector<8x8xbf16>
    %cst_22 = arith.constant dense<0.000000e+00> : vector<8x8xf32>
    %63 = tpu.matmul %60, %61, %cst_22 {dimension_numbers = #tpu.dot_dimension_numbers<[1], [1], [0], [0], [0, 0, 1, 0], [], []>} : vector<8x8xbf16>, vector<8x8xbf16>, vector<8x8xf32> -> vector<8x8xf32>
    %cst_23 = arith.constant 0.353553385 : f32
    %64 = vector.broadcast %cst_23 : f32 to vector<8x8xf32>
    %65 = arith.mulf %63, %64 : vector<8x8xf32>
    %66 = arith.addf %65, %10 : vector<8x8xf32>
    %cst_24 = arith.constant dense<0xFF800000> : vector<8xf32>
    %67 = vector.multi_reduction <maximumf>, %66, %cst_24 [1] : vector<8x8xf32> to vector<8xf32>
    %68 = vector.shape_cast %67 : vector<8xf32> to vector<8x1xf32>
    %69 = vector.broadcast %68 : vector<8x1xf32> to vector<8x8xf32>
    %70 = arith.subf %66, %69 : vector<8x8xf32>
    %71 = math.exp %70 : vector<8x8xf32>
    %cst_25 = arith.constant dense<0.000000e+00> : vector<8xf32>
    %72 = vector.multi_reduction <add>, %71, %cst_25 [1] : vector<8x8xf32> to vector<8xf32>
    %73 = vector.shape_cast %72 : vector<8xf32> to vector<8x1xf32>
    %74 = tpu.reciprocal %73 {approx = true} : vector<8x1xf32> -> vector<8x1xf32>
    %75 = vector.broadcast %74 : vector<8x1xf32> to vector<8x8xf32>
    %76 = arith.mulf %71, %75 : vector<8x8xf32>
    %77 = arith.truncf %76 : vector<8x8xf32> to vector<8x8xbf16>
    %cst_26 = arith.constant dense<0.000000e+00> : vector<8x8xf32>
    %78 = tpu.matmul %77, %62, %cst_26 {dimension_numbers = #tpu.dot_dimension_numbers<[1], [0], [0], [1], [0, 0, 1, 1], [], []>} : vector<8x8xbf16>, vector<8x8xbf16>, vector<8x8xf32> -> vector<8x8xf32>
    %79 = arith.truncf %78 : vector<8x8xf32> to vector<8x8xbf16>
    %c0_27 = arith.constant 0 : index
    %c0_28 = arith.constant 0 : index
    %c16 = arith.constant 16 : index
    %80 = vector.load %arg3[%c0_27, %c0_28, %c16] : memref<1x8x32xbf16, #tpu.memory_space<vmem>>, vector<1x8x8xbf16>
    %81 = vector.shape_cast %80 : vector<1x8x8xbf16> to vector<8x8xbf16>
    %82 = vector.shape_cast %79 : vector<8x8xbf16> to vector<1x8x8xbf16>
    tpu.vector_store %arg3[%c0_27, %c0_28, %c16], %82 {strides = array<i32>} : memref<1x8x32xbf16, #tpu.memory_space<vmem>>, vector<1x8x8xbf16>,
    %83 = vector.extract_strided_slice %11 {offsets = [0, 24], sizes = [8, 8], strides = [1, 1]} : vector<8x32xbf16> to vector<8x8xbf16>
    %84 = vector.extract_strided_slice %12 {offsets = [0, 24], sizes = [8, 8], strides = [1, 1]} : vector<8x32xbf16> to vector<8x8xbf16>
    %85 = vector.extract_strided_slice %13 {offsets = [0, 24], sizes = [8, 8], strides = [1, 1]} : vector<8x32xbf16> to vector<8x8xbf16>
    %cst_29 = arith.constant dense<0.000000e+00> : vector<8x8xf32>
    %86 = tpu.matmul %83, %84, %cst_29 {dimension_numbers = #tpu.dot_dimension_numbers<[1], [1], [0], [0], [0, 0, 1, 0], [], []>} : vector<8x8xbf16>, vector<8x8xbf16>, vector<8x8xf32> -> vector<8x8xf32>
    %cst_30 = arith.constant 0.353553385 : f32
    %87 = vector.broadcast %cst_30 : f32 to vector<8x8xf32>
    %88 = arith.mulf %86, %87 : vector<8x8xf32>
    %89 = arith.addf %88, %10 : vector<8x8xf32>
    %cst_31 = arith.constant dense<0xFF800000> : vector<8xf32>
    %90 = vector.multi_reduction <maximumf>, %89, %cst_31 [1] : vector<8x8xf32> to vector<8xf32>
    %91 = vector.shape_cast %90 : vector<8xf32> to vector<8x1xf32>
    %92 = vector.broadcast %91 : vector<8x1xf32> to vector<8x8xf32>
    %93 = arith.subf %89, %92 : vector<8x8xf32>
    %94 = math.exp %93 : vector<8x8xf32>
    %cst_32 = arith.constant dense<0.000000e+00> : vector<8xf32>
    %95 = vector.multi_reduction <add>, %94, %cst_32 [1] : vector<8x8xf32> to vector<8xf32>
    %96 = vector.shape_cast %95 : vector<8xf32> to vector<8x1xf32>
    %97 = tpu.reciprocal %96 {approx = true} : vector<8x1xf32> -> vector<8x1xf32>
    %98 = vector.broadcast %97 : vector<8x1xf32> to vector<8x8xf32>
    %99 = arith.mulf %94, %98 : vector<8x8xf32>
    %100 = arith.truncf %99 : vector<8x8xf32> to vector<8x8xbf16>
    %cst_33 = arith.constant dense<0.000000e+00> : vector<8x8xf32>
    %101 = tpu.matmul %100, %85, %cst_33 {dimension_numbers = #tpu.dot_dimension_numbers<[1], [0], [0], [1], [0, 0, 1, 1], [], []>} : vector<8x8xbf16>, vector<8x8xbf16>, vector<8x8xf32> -> vector<8x8xf32>
    %102 = arith.truncf %101 : vector<8x8xf32> to vector<8x8xbf16>
    %c0_34 = arith.constant 0 : index
    %c0_35 = arith.constant 0 : index
    %c24 = arith.constant 24 : index
    %103 = vector.load %arg3[%c0_34, %c0_35, %c24] : memref<1x8x32xbf16, #tpu.memory_space<vmem>>, vector<1x8x8xbf16>
    %104 = vector.shape_cast %103 : vector<1x8x8xbf16> to vector<8x8xbf16>
    %105 = vector.shape_cast %102 : vector<8x8xbf16> to vector<1x8x8xbf16>
    tpu.vector_store %arg3[%c0_34, %c0_35, %c24], %105 {strides = array<i32>} : memref<1x8x32xbf16, #tpu.memory_space<vmem>>, vector<1x8x8xbf16>,
    return
  }
  func.func @transform_0(%arg0: i32) -> (i32, i32, i32) {
    %c0_i32 = arith.constant 0 : i32
    %c0_i32_0 = arith.constant 0 : i32
    %c0_i32_1 = arith.constant 0 : i32
    return %arg0, %c0_i32, %c0_i32_0 : i32, i32, i32
  }
  func.func @transform_1(%arg0: i32) -> (i32, i32, i32) {
    %c0_i32 = arith.constant 0 : i32
    %c0_i32_0 = arith.constant 0 : i32
    %c0_i32_1 = arith.constant 0 : i32
    return %arg0, %c0_i32, %c0_i32_0 : i32, i32, i32
  }
  func.func @transform_2(%arg0: i32) -> (i32, i32, i32) {
    %c0_i32 = arith.constant 0 : i32
    %c0_i32_0 = arith.constant 0 : i32
    %c0_i32_1 = arith.constant 0 : i32
    return %arg0, %c0_i32, %c0_i32_0 : i32, i32, i32
  }
}

module attributes {stable_mosaic.version = 11 : i64} {
  func.func @_linear_res_ln_kernel(%arg0: i32, %arg1: i32, %arg2: memref<16x128xbf16, #tpu.memory_space<vmem>>, %arg3: memref<128x128xbf16, #tpu.memory_space<vmem>>, %arg4: memref<1x128xf32, #tpu.memory_space<vmem>>, %arg5: memref<16x128xbf16, #tpu.memory_space<vmem>>, %arg6: memref<1x128xf32, #tpu.memory_space<vmem>>, %arg7: memref<1x128xf32, #tpu.memory_space<vmem>>, %arg8: memref<16x1xf32, #tpu.memory_space<vmem>>, %arg9: memref<16x128xbf16, #tpu.memory_space<vmem>>, %arg10: memref<16x128xf32, #tpu.memory_space<vmem>>) attributes {dimension_semantics = [#tpu.dimension_semantics<parallel>, #tpu.dimension_semantics<arbitrary>], iteration_bounds = array<i64: 1, 1>, scalar_prefetch = 0 : i64, scratch_operands = 1 : i64, tpu.core_type = #tpu.core_type<tc>, window_params = [{transform_indices = @transform_0, window_bounds = array<i64: 16, 128>}, {transform_indices = @transform_1, window_bounds = array<i64: 128, 128>}, {pipeline_mode = #tpu.pipeline_mode<synchronous>, transform_indices = @transform_2, window_bounds = array<i64: 1, 128>}, {transform_indices = @transform_3, window_bounds = array<i64: 16, 128>}, {pipeline_mode = #tpu.pipeline_mode<synchronous>, transform_indices = @transform_4, window_bounds = array<i64: 1, 128>}, {pipeline_mode = #tpu.pipeline_mode<synchronous>, transform_indices = @transform_5, window_bounds = array<i64: 1, 128>}, {transform_indices = @transform_6, window_bounds = array<i64: 16, 1>}, {transform_indices = @transform_7, window_bounds = array<i64: 16, 128>}]} {
    %c0_i32 = arith.constant 0 : i32
    %0 = arith.cmpi eq, %arg1, %c0_i32 : i32
    %1 = arith.extui %0 : i1 to i32
    %c0_i32_0 = arith.constant 0 : i32
    %2 = arith.cmpi ne, %1, %c0_i32_0 : i32
    scf.if %2 {
      %cst_10 = arith.constant 0.000000e+00 : f32
      %12 = vector.broadcast %cst_10 : f32 to vector<16x128xf32>
      %c0_11 = arith.constant 0 : index
      %c0_12 = arith.constant 0 : index
      %13 = vector.load %arg10[%c0_11, %c0_12] : memref<16x128xf32, #tpu.memory_space<vmem>>, vector<16x128xf32>
      tpu.vector_store %arg10[%c0_11, %c0_12], %12 {strides = array<i32>} : memref<16x128xf32, #tpu.memory_space<vmem>>, vector<16x128xf32>,
    } else {
    }
    %c0 = arith.constant 0 : index
    %c0_1 = arith.constant 0 : index
    %3 = vector.load %arg10[%c0, %c0_1] : memref<16x128xf32, #tpu.memory_space<vmem>>, vector<16x128xf32>
    %c0_2 = arith.constant 0 : index
    %c0_3 = arith.constant 0 : index
    %4 = vector.load %arg2[%c0_2, %c0_3] : memref<16x128xbf16, #tpu.memory_space<vmem>>, vector<16x128xbf16>
    %c0_4 = arith.constant 0 : index
    %c0_5 = arith.constant 0 : index
    %5 = vector.load %arg3[%c0_4, %c0_5] : memref<128x128xbf16, #tpu.memory_space<vmem>>, vector<128x128xbf16>
    %cst = arith.constant dense<0.000000e+00> : vector<16x128xf32>
    %6 = tpu.matmul %4, %5, %cst {dimension_numbers = #tpu.dot_dimension_numbers<[1], [0], [0], [1], [0, 0, 1, 1], [], []>} : vector<16x128xbf16>, vector<128x128xbf16>, vector<16x128xf32> -> vector<16x128xf32>
    %7 = arith.addf %3, %6 : vector<16x128xf32>
    %c0_6 = arith.constant 0 : index
    %c0_7 = arith.constant 0 : index
    %8 = vector.load %arg10[%c0_6, %c0_7] : memref<16x128xf32, #tpu.memory_space<vmem>>, vector<16x128xf32>
    tpu.vector_store %arg10[%c0_6, %c0_7], %7 {strides = array<i32>} : memref<16x128xf32, #tpu.memory_space<vmem>>, vector<16x128xf32>,
    %c0_i32_8 = arith.constant 0 : i32
    %9 = arith.cmpi eq, %arg1, %c0_i32_8 : i32
    %10 = arith.extui %9 : i1 to i32
    %c0_i32_9 = arith.constant 0 : i32
    %11 = arith.cmpi ne, %10, %c0_i32_9 : i32
    scf.if %11 {
      %c0_10 = arith.constant 0 : index
      %c0_11 = arith.constant 0 : index
      %12 = vector.load %arg10[%c0_10, %c0_11] : memref<16x128xf32, #tpu.memory_space<vmem>>, vector<16x128xf32>
      %c0_12 = arith.constant 0 : index
      %c0_13 = arith.constant 0 : index
      %13 = vector.load %arg4[%c0_12, %c0_13] : memref<1x128xf32, #tpu.memory_space<vmem>>, vector<1x128xf32>
      %14 = vector.broadcast %13 : vector<1x128xf32> to vector<16x128xf32>
      %15 = arith.addf %12, %14 : vector<16x128xf32>
      %c0_14 = arith.constant 0 : index
      %c0_15 = arith.constant 0 : index
      %16 = vector.load %arg5[%c0_14, %c0_15] : memref<16x128xbf16, #tpu.memory_space<vmem>>, vector<16x128xbf16>
      %17 = arith.extf %16 : vector<16x128xbf16> to vector<16x128xf32>
      %18 = arith.addf %15, %17 : vector<16x128xf32>
      %c0_16 = arith.constant 0 : index
      %c0_17 = arith.constant 0 : index
      %19 = vector.load %arg6[%c0_16, %c0_17] : memref<1x128xf32, #tpu.memory_space<vmem>>, vector<1x128xf32>
      %c0_18 = arith.constant 0 : index
      %c0_19 = arith.constant 0 : index
      %20 = vector.load %arg7[%c0_18, %c0_19] : memref<1x128xf32, #tpu.memory_space<vmem>>, vector<1x128xf32>
      %21 = tpu.iota {dimensions = array<i32: 1>} : vector<16x128xi32>
      %c32_i32 = arith.constant 32 : i32
      %22 = vector.broadcast %c32_i32 : i32 to vector<16x128xi32>
      %23 = arith.cmpi slt, %21, %22 : vector<16x128xi32>
      %24 = arith.extui %23 : vector<16x128xi1> to vector<16x128xi32>
      %25 = arith.sitofp %24 : vector<16x128xi32> to vector<16x128xf32>
      %26 = arith.mulf %18, %25 : vector<16x128xf32>
      %cst_20 = arith.constant dense<0.000000e+00> : vector<16xf32>
      %27 = vector.multi_reduction <add>, %26, %cst_20 [1] : vector<16x128xf32> to vector<16xf32>
      %28 = vector.shape_cast %27 : vector<16xf32> to vector<16x1xf32>
      %cst_21 = arith.constant 3.125000e-02 : f32
      %29 = vector.broadcast %cst_21 : f32 to vector<16x1xf32>
      %30 = arith.mulf %28, %29 : vector<16x1xf32>
      %31 = vector.broadcast %30 : vector<16x1xf32> to vector<16x128xf32>
      %32 = arith.subf %26, %31 : vector<16x128xf32>
      %33 = arith.mulf %32, %25 : vector<16x128xf32>
      %34 = arith.mulf %33, %33 : vector<16x128xf32>
      %cst_22 = arith.constant dense<0.000000e+00> : vector<16xf32>
      %35 = vector.multi_reduction <add>, %34, %cst_22 [1] : vector<16x128xf32> to vector<16xf32>
      %36 = vector.shape_cast %35 : vector<16xf32> to vector<16x1xf32>
      %cst_23 = arith.constant 3.125000e-02 : f32
      %37 = vector.broadcast %cst_23 : f32 to vector<16x1xf32>
      %38 = arith.mulf %36, %37 : vector<16x1xf32>
      %cst_24 = arith.constant 9.99999997E-7 : f32
      %39 = vector.broadcast %cst_24 : f32 to vector<16x1xf32>
      %40 = arith.addf %38, %39 : vector<16x1xf32>
      %41 = math.rsqrt %40 : vector<16x1xf32>
      %42 = vector.broadcast %41 : vector<16x1xf32> to vector<16x128xf32>
      %43 = arith.mulf %33, %42 : vector<16x128xf32>
      %44 = vector.broadcast %19 : vector<1x128xf32> to vector<16x128xf32>
      %45 = arith.mulf %43, %44 : vector<16x128xf32>
      %46 = vector.broadcast %20 : vector<1x128xf32> to vector<16x128xf32>
      %47 = arith.addf %45, %46 : vector<16x128xf32>
      %c0_25 = arith.constant 0 : index
      %c0_26 = arith.constant 0 : index
      %48 = vector.load %arg8[%c0_25, %c0_26] : memref<16x1xf32, #tpu.memory_space<vmem>>, vector<16x1xf32>
      %49 = vector.broadcast %48 : vector<16x1xf32> to vector<16x128xf32>
      %50 = arith.mulf %47, %49 : vector<16x128xf32>
      %51 = arith.truncf %50 : vector<16x128xf32> to vector<16x128xbf16>
      %c0_27 = arith.constant 0 : index
      %c0_28 = arith.constant 0 : index
      %52 = vector.load %arg9[%c0_27, %c0_28] : memref<16x128xbf16, #tpu.memory_space<vmem>>, vector<16x128xbf16>
      tpu.vector_store %arg9[%c0_27, %c0_28], %51 {strides = array<i32>} : memref<16x128xbf16, #tpu.memory_space<vmem>>, vector<16x128xbf16>,
    } else {
    }
    return
  }
  func.func @transform_0(%arg0: i32, %arg1: i32) -> (i32, i32) {
    %c0_i32 = arith.constant 0 : i32
    return %arg0, %arg1 : i32, i32
  }
  func.func @transform_1(%arg0: i32, %arg1: i32) -> (i32, i32) {
    %c0_i32 = arith.constant 0 : i32
    %c0_i32_0 = arith.constant 0 : i32
    return %arg1, %c0_i32 : i32, i32
  }
  func.func @transform_2(%arg0: i32, %arg1: i32) -> (i32, i32) {
    %c0_i32 = arith.constant 0 : i32
    %c0_i32_0 = arith.constant 0 : i32
    %c0_i32_1 = arith.constant 0 : i32
    return %c0_i32, %c0_i32_0 : i32, i32
  }
  func.func @transform_3(%arg0: i32, %arg1: i32) -> (i32, i32) {
    %c0_i32 = arith.constant 0 : i32
    %c0_i32_0 = arith.constant 0 : i32
    return %arg0, %c0_i32 : i32, i32
  }
  func.func @transform_4(%arg0: i32, %arg1: i32) -> (i32, i32) {
    %c0_i32 = arith.constant 0 : i32
    %c0_i32_0 = arith.constant 0 : i32
    %c0_i32_1 = arith.constant 0 : i32
    return %c0_i32, %c0_i32_0 : i32, i32
  }
  func.func @transform_5(%arg0: i32, %arg1: i32) -> (i32, i32) {
    %c0_i32 = arith.constant 0 : i32
    %c0_i32_0 = arith.constant 0 : i32
    %c0_i32_1 = arith.constant 0 : i32
    return %c0_i32, %c0_i32_0 : i32, i32
  }
  func.func @transform_6(%arg0: i32, %arg1: i32) -> (i32, i32) {
    %c0_i32 = arith.constant 0 : i32
    %c0_i32_0 = arith.constant 0 : i32
    return %arg0, %c0_i32 : i32, i32
  }
  func.func @transform_7(%arg0: i32, %arg1: i32) -> (i32, i32) {
    %c0_i32 = arith.constant 0 : i32
    %c0_i32_0 = arith.constant 0 : i32
    return %arg0, %c0_i32 : i32, i32
  }
}

module attributes {stable_mosaic.version = 11 : i64} {
  func.func @_matmul_bias_kernel(%arg0: i32, %arg1: i32, %arg2: i32, %arg3: memref<16x128xbf16, #tpu.memory_space<vmem>>, %arg4: memref<128x128xbf16, #tpu.memory_space<vmem>>, %arg5: memref<1x128xf32, #tpu.memory_space<vmem>>, %arg6: memref<16x128xbf16, #tpu.memory_space<vmem>>, %arg7: memref<16x128xf32, #tpu.memory_space<vmem>>) attributes {dimension_semantics = [#tpu.dimension_semantics<parallel>, #tpu.dimension_semantics<parallel>, #tpu.dimension_semantics<arbitrary>], iteration_bounds = array<i64: 1, 1, 1>, scalar_prefetch = 0 : i64, scratch_operands = 1 : i64, tpu.core_type = #tpu.core_type<tc>, window_params = [{transform_indices = @transform_0, window_bounds = array<i64: 16, 128>}, {transform_indices = @transform_1, window_bounds = array<i64: 128, 128>}, {transform_indices = @transform_2, window_bounds = array<i64: 1, 128>}, {transform_indices = @transform_3, window_bounds = array<i64: 16, 128>}]} {
    %c0_i32 = arith.constant 0 : i32
    %0 = arith.cmpi eq, %arg2, %c0_i32 : i32
    %1 = arith.extui %0 : i1 to i32
    %c0_i32_0 = arith.constant 0 : i32
    %2 = arith.cmpi ne, %1, %c0_i32_0 : i32
    scf.if %2 {
      %cst_10 = arith.constant 0.000000e+00 : f32
      %12 = vector.broadcast %cst_10 : f32 to vector<16x128xf32>
      %c0_11 = arith.constant 0 : index
      %c0_12 = arith.constant 0 : index
      %13 = vector.load %arg7[%c0_11, %c0_12] : memref<16x128xf32, #tpu.memory_space<vmem>>, vector<16x128xf32>
      tpu.vector_store %arg7[%c0_11, %c0_12], %12 {strides = array<i32>} : memref<16x128xf32, #tpu.memory_space<vmem>>, vector<16x128xf32>,
    } else {
    }
    %c0 = arith.constant 0 : index
    %c0_1 = arith.constant 0 : index
    %3 = vector.load %arg7[%c0, %c0_1] : memref<16x128xf32, #tpu.memory_space<vmem>>, vector<16x128xf32>
    %c0_2 = arith.constant 0 : index
    %c0_3 = arith.constant 0 : index
    %4 = vector.load %arg3[%c0_2, %c0_3] : memref<16x128xbf16, #tpu.memory_space<vmem>>, vector<16x128xbf16>
    %c0_4 = arith.constant 0 : index
    %c0_5 = arith.constant 0 : index
    %5 = vector.load %arg4[%c0_4, %c0_5] : memref<128x128xbf16, #tpu.memory_space<vmem>>, vector<128x128xbf16>
    %cst = arith.constant dense<0.000000e+00> : vector<16x128xf32>
    %6 = tpu.matmul %4, %5, %cst {dimension_numbers = #tpu.dot_dimension_numbers<[1], [0], [0], [1], [0, 0, 1, 1], [], []>} : vector<16x128xbf16>, vector<128x128xbf16>, vector<16x128xf32> -> vector<16x128xf32>
    %7 = arith.addf %3, %6 : vector<16x128xf32>
    %c0_6 = arith.constant 0 : index
    %c0_7 = arith.constant 0 : index
    %8 = vector.load %arg7[%c0_6, %c0_7] : memref<16x128xf32, #tpu.memory_space<vmem>>, vector<16x128xf32>
    tpu.vector_store %arg7[%c0_6, %c0_7], %7 {strides = array<i32>} : memref<16x128xf32, #tpu.memory_space<vmem>>, vector<16x128xf32>,
    %c0_i32_8 = arith.constant 0 : i32
    %9 = arith.cmpi eq, %arg2, %c0_i32_8 : i32
    %10 = arith.extui %9 : i1 to i32
    %c0_i32_9 = arith.constant 0 : i32
    %11 = arith.cmpi ne, %10, %c0_i32_9 : i32
    scf.if %11 {
      %c0_10 = arith.constant 0 : index
      %c0_11 = arith.constant 0 : index
      %12 = vector.load %arg7[%c0_10, %c0_11] : memref<16x128xf32, #tpu.memory_space<vmem>>, vector<16x128xf32>
      %c0_12 = arith.constant 0 : index
      %c0_13 = arith.constant 0 : index
      %13 = vector.load %arg5[%c0_12, %c0_13] : memref<1x128xf32, #tpu.memory_space<vmem>>, vector<1x128xf32>
      %14 = vector.broadcast %13 : vector<1x128xf32> to vector<16x128xf32>
      %15 = arith.addf %12, %14 : vector<16x128xf32>
      %cst_14 = arith.constant 0.000000e+00 : f32
      %16 = vector.broadcast %cst_14 : f32 to vector<16x128xf32>
      %17 = arith.maximumf %15, %16 : vector<16x128xf32>
      %18 = arith.truncf %17 : vector<16x128xf32> to vector<16x128xbf16>
      %c0_15 = arith.constant 0 : index
      %c0_16 = arith.constant 0 : index
      %19 = vector.load %arg6[%c0_15, %c0_16] : memref<16x128xbf16, #tpu.memory_space<vmem>>, vector<16x128xbf16>
      tpu.vector_store %arg6[%c0_15, %c0_16], %18 {strides = array<i32>} : memref<16x128xbf16, #tpu.memory_space<vmem>>, vector<16x128xbf16>,
    } else {
    }
    return
  }
  func.func @transform_0(%arg0: i32, %arg1: i32, %arg2: i32) -> (i32, i32) {
    %c0_i32 = arith.constant 0 : i32
    return %arg0, %arg2 : i32, i32
  }
  func.func @transform_1(%arg0: i32, %arg1: i32, %arg2: i32) -> (i32, i32) {
    %c0_i32 = arith.constant 0 : i32
    return %arg2, %arg1 : i32, i32
  }
  func.func @transform_2(%arg0: i32, %arg1: i32, %arg2: i32) -> (i32, i32) {
    %c0_i32 = arith.constant 0 : i32
    %c0_i32_0 = arith.constant 0 : i32
    return %c0_i32, %arg1 : i32, i32
  }
  func.func @transform_3(%arg0: i32, %arg1: i32, %arg2: i32) -> (i32, i32) {
    %c0_i32 = arith.constant 0 : i32
    return %arg0, %arg1 : i32, i32
  }
}

module attributes {stable_mosaic.version = 11 : i64} {
  func.func @_self_attention_kernel(%arg0: i32, %arg1: memref<1x8x96xbf16, #tpu.memory_space<vmem>>, %arg2: memref<1x1x8xf32, #tpu.memory_space<vmem>>, %arg3: memref<1x8x32xbf16, #tpu.memory_space<vmem>>) attributes {dimension_semantics = [#tpu.dimension_semantics<parallel>], iteration_bounds = array<i64: 2>, scalar_prefetch = 0 : i64, scratch_operands = 0 : i64, tpu.core_type = #tpu.core_type<tc>, window_params = [{transform_indices = @transform_0, window_bounds = array<i64: 1, 8, 96>}, {transform_indices = @transform_1, window_bounds = array<i64: 1, 1, 8>}, {transform_indices = @transform_2, window_bounds = array<i64: 1, 8, 32>}]} {
    %c0 = arith.constant 0 : index
    %c0_0 = arith.constant 0 : index
    %c0_1 = arith.constant 0 : index
    %0 = vector.load %arg1[%c0, %c0_0, %c0_1] : memref<1x8x96xbf16, #tpu.memory_space<vmem>>, vector<1x8x96xbf16>
    %1 = vector.shape_cast %0 : vector<1x8x96xbf16> to vector<8x96xbf16>
    %c0_2 = arith.constant 0 : index
    %c0_3 = arith.constant 0 : index
    %c0_4 = arith.constant 0 : index
    %2 = vector.load %arg2[%c0_2, %c0_3, %c0_4] : memref<1x1x8xf32, #tpu.memory_space<vmem>>, vector<1x1x8xf32>
    %3 = vector.shape_cast %2 : vector<1x1x8xf32> to vector<1x8xf32>
    %cst = arith.constant 0.000000e+00 : f32
    %4 = vector.broadcast %cst : f32 to vector<1x8xf32>
    %5 = arith.cmpf ogt, %3, %4 : vector<1x8xf32>
    %6 = vector.shape_cast %5 : vector<1x8xi1> to vector<1x8xi1>
    %7 = vector.broadcast %6 : vector<1x8xi1> to vector<8x8xi1>
    %8 = tpu.iota {dimensions = array<i32: 0>} : vector<8x8xi32>
    %9 = tpu.iota {dimensions = array<i32: 1>} : vector<8x8xi32>
    %10 = arith.cmpi sgt, %9, %8 : vector<8x8xi32>
    %11 = arith.ori %7, %10 : vector<8x8xi1>
    %cst_5 = arith.constant -1.000000e+09 : f32
    %cst_6 = arith.constant 0.000000e+00 : f32
    %12 = vector.broadcast %cst_5 : f32 to vector<8x8xf32>
    %13 = vector.broadcast %cst_6 : f32 to vector<8x8xf32>
    %14 = arith.select %11, %12, %13 : vector<8x8xi1>, vector<8x8xf32>
    %15 = vector.extract_strided_slice %1 {offsets = [0, 0], sizes = [8, 32], strides = [1, 1]} : vector<8x96xbf16> to vector<8x32xbf16>
    %16 = vector.extract_strided_slice %1 {offsets = [0, 32], sizes = [8, 32], strides = [1, 1]} : vector<8x96xbf16> to vector<8x32xbf16>
    %17 = vector.extract_strided_slice %1 {offsets = [0, 64], sizes = [8, 32], strides = [1, 1]} : vector<8x96xbf16> to vector<8x32xbf16>
    %18 = vector.extract_strided_slice %15 {offsets = [0, 0], sizes = [8, 8], strides = [1, 1]} : vector<8x32xbf16> to vector<8x8xbf16>
    %19 = vector.extract_strided_slice %16 {offsets = [0, 0], sizes = [8, 8], strides = [1, 1]} : vector<8x32xbf16> to vector<8x8xbf16>
    %20 = vector.extract_strided_slice %17 {offsets = [0, 0], sizes = [8, 8], strides = [1, 1]} : vector<8x32xbf16> to vector<8x8xbf16>
    %cst_7 = arith.constant dense<0.000000e+00> : vector<8x8xf32>
    %21 = tpu.matmul %18, %19, %cst_7 {dimension_numbers = #tpu.dot_dimension_numbers<[1], [1], [0], [0], [0, 0, 1, 0], [], []>} : vector<8x8xbf16>, vector<8x8xbf16>, vector<8x8xf32> -> vector<8x8xf32>
    %cst_8 = arith.constant 0.353553385 : f32
    %22 = vector.broadcast %cst_8 : f32 to vector<8x8xf32>
    %23 = arith.mulf %21, %22 : vector<8x8xf32>
    %24 = arith.addf %23, %14 : vector<8x8xf32>
    %cst_9 = arith.constant dense<0xFF800000> : vector<8xf32>
    %25 = vector.multi_reduction <maximumf>, %24, %cst_9 [1] : vector<8x8xf32> to vector<8xf32>
    %26 = vector.shape_cast %25 : vector<8xf32> to vector<8x1xf32>
    %27 = vector.broadcast %26 : vector<8x1xf32> to vector<8x8xf32>
    %28 = arith.subf %24, %27 : vector<8x8xf32>
    %29 = math.exp %28 : vector<8x8xf32>
    %cst_10 = arith.constant dense<0.000000e+00> : vector<8xf32>
    %30 = vector.multi_reduction <add>, %29, %cst_10 [1] : vector<8x8xf32> to vector<8xf32>
    %31 = vector.shape_cast %30 : vector<8xf32> to vector<8x1xf32>
    %32 = tpu.reciprocal %31 {approx = true} : vector<8x1xf32> -> vector<8x1xf32>
    %33 = vector.broadcast %32 : vector<8x1xf32> to vector<8x8xf32>
    %34 = arith.mulf %29, %33 : vector<8x8xf32>
    %35 = arith.truncf %34 : vector<8x8xf32> to vector<8x8xbf16>
    %cst_11 = arith.constant dense<0.000000e+00> : vector<8x8xf32>
    %36 = tpu.matmul %35, %20, %cst_11 {dimension_numbers = #tpu.dot_dimension_numbers<[1], [0], [0], [1], [0, 0, 1, 1], [], []>} : vector<8x8xbf16>, vector<8x8xbf16>, vector<8x8xf32> -> vector<8x8xf32>
    %37 = arith.truncf %36 : vector<8x8xf32> to vector<8x8xbf16>
    %c0_12 = arith.constant 0 : index
    %c0_13 = arith.constant 0 : index
    %c0_14 = arith.constant 0 : index
    %38 = vector.load %arg3[%c0_12, %c0_13, %c0_14] : memref<1x8x32xbf16, #tpu.memory_space<vmem>>, vector<1x8x8xbf16>
    %39 = vector.shape_cast %38 : vector<1x8x8xbf16> to vector<8x8xbf16>
    %40 = vector.shape_cast %37 : vector<8x8xbf16> to vector<1x8x8xbf16>
    tpu.vector_store %arg3[%c0_12, %c0_13, %c0_14], %40 {strides = array<i32>} : memref<1x8x32xbf16, #tpu.memory_space<vmem>>, vector<1x8x8xbf16>,
    %41 = vector.extract_strided_slice %15 {offsets = [0, 8], sizes = [8, 8], strides = [1, 1]} : vector<8x32xbf16> to vector<8x8xbf16>
    %42 = vector.extract_strided_slice %16 {offsets = [0, 8], sizes = [8, 8], strides = [1, 1]} : vector<8x32xbf16> to vector<8x8xbf16>
    %43 = vector.extract_strided_slice %17 {offsets = [0, 8], sizes = [8, 8], strides = [1, 1]} : vector<8x32xbf16> to vector<8x8xbf16>
    %cst_15 = arith.constant dense<0.000000e+00> : vector<8x8xf32>
    %44 = tpu.matmul %41, %42, %cst_15 {dimension_numbers = #tpu.dot_dimension_numbers<[1], [1], [0], [0], [0, 0, 1, 0], [], []>} : vector<8x8xbf16>, vector<8x8xbf16>, vector<8x8xf32> -> vector<8x8xf32>
    %cst_16 = arith.constant 0.353553385 : f32
    %45 = vector.broadcast %cst_16 : f32 to vector<8x8xf32>
    %46 = arith.mulf %44, %45 : vector<8x8xf32>
    %47 = arith.addf %46, %14 : vector<8x8xf32>
    %cst_17 = arith.constant dense<0xFF800000> : vector<8xf32>
    %48 = vector.multi_reduction <maximumf>, %47, %cst_17 [1] : vector<8x8xf32> to vector<8xf32>
    %49 = vector.shape_cast %48 : vector<8xf32> to vector<8x1xf32>
    %50 = vector.broadcast %49 : vector<8x1xf32> to vector<8x8xf32>
    %51 = arith.subf %47, %50 : vector<8x8xf32>
    %52 = math.exp %51 : vector<8x8xf32>
    %cst_18 = arith.constant dense<0.000000e+00> : vector<8xf32>
    %53 = vector.multi_reduction <add>, %52, %cst_18 [1] : vector<8x8xf32> to vector<8xf32>
    %54 = vector.shape_cast %53 : vector<8xf32> to vector<8x1xf32>
    %55 = tpu.reciprocal %54 {approx = true} : vector<8x1xf32> -> vector<8x1xf32>
    %56 = vector.broadcast %55 : vector<8x1xf32> to vector<8x8xf32>
    %57 = arith.mulf %52, %56 : vector<8x8xf32>
    %58 = arith.truncf %57 : vector<8x8xf32> to vector<8x8xbf16>
    %cst_19 = arith.constant dense<0.000000e+00> : vector<8x8xf32>
    %59 = tpu.matmul %58, %43, %cst_19 {dimension_numbers = #tpu.dot_dimension_numbers<[1], [0], [0], [1], [0, 0, 1, 1], [], []>} : vector<8x8xbf16>, vector<8x8xbf16>, vector<8x8xf32> -> vector<8x8xf32>
    %60 = arith.truncf %59 : vector<8x8xf32> to vector<8x8xbf16>
    %c0_20 = arith.constant 0 : index
    %c0_21 = arith.constant 0 : index
    %c8 = arith.constant 8 : index
    %61 = vector.load %arg3[%c0_20, %c0_21, %c8] : memref<1x8x32xbf16, #tpu.memory_space<vmem>>, vector<1x8x8xbf16>
    %62 = vector.shape_cast %61 : vector<1x8x8xbf16> to vector<8x8xbf16>
    %63 = vector.shape_cast %60 : vector<8x8xbf16> to vector<1x8x8xbf16>
    tpu.vector_store %arg3[%c0_20, %c0_21, %c8], %63 {strides = array<i32>} : memref<1x8x32xbf16, #tpu.memory_space<vmem>>, vector<1x8x8xbf16>,
    %64 = vector.extract_strided_slice %15 {offsets = [0, 16], sizes = [8, 8], strides = [1, 1]} : vector<8x32xbf16> to vector<8x8xbf16>
    %65 = vector.extract_strided_slice %16 {offsets = [0, 16], sizes = [8, 8], strides = [1, 1]} : vector<8x32xbf16> to vector<8x8xbf16>
    %66 = vector.extract_strided_slice %17 {offsets = [0, 16], sizes = [8, 8], strides = [1, 1]} : vector<8x32xbf16> to vector<8x8xbf16>
    %cst_22 = arith.constant dense<0.000000e+00> : vector<8x8xf32>
    %67 = tpu.matmul %64, %65, %cst_22 {dimension_numbers = #tpu.dot_dimension_numbers<[1], [1], [0], [0], [0, 0, 1, 0], [], []>} : vector<8x8xbf16>, vector<8x8xbf16>, vector<8x8xf32> -> vector<8x8xf32>
    %cst_23 = arith.constant 0.353553385 : f32
    %68 = vector.broadcast %cst_23 : f32 to vector<8x8xf32>
    %69 = arith.mulf %67, %68 : vector<8x8xf32>
    %70 = arith.addf %69, %14 : vector<8x8xf32>
    %cst_24 = arith.constant dense<0xFF800000> : vector<8xf32>
    %71 = vector.multi_reduction <maximumf>, %70, %cst_24 [1] : vector<8x8xf32> to vector<8xf32>
    %72 = vector.shape_cast %71 : vector<8xf32> to vector<8x1xf32>
    %73 = vector.broadcast %72 : vector<8x1xf32> to vector<8x8xf32>
    %74 = arith.subf %70, %73 : vector<8x8xf32>
    %75 = math.exp %74 : vector<8x8xf32>
    %cst_25 = arith.constant dense<0.000000e+00> : vector<8xf32>
    %76 = vector.multi_reduction <add>, %75, %cst_25 [1] : vector<8x8xf32> to vector<8xf32>
    %77 = vector.shape_cast %76 : vector<8xf32> to vector<8x1xf32>
    %78 = tpu.reciprocal %77 {approx = true} : vector<8x1xf32> -> vector<8x1xf32>
    %79 = vector.broadcast %78 : vector<8x1xf32> to vector<8x8xf32>
    %80 = arith.mulf %75, %79 : vector<8x8xf32>
    %81 = arith.truncf %80 : vector<8x8xf32> to vector<8x8xbf16>
    %cst_26 = arith.constant dense<0.000000e+00> : vector<8x8xf32>
    %82 = tpu.matmul %81, %66, %cst_26 {dimension_numbers = #tpu.dot_dimension_numbers<[1], [0], [0], [1], [0, 0, 1, 1], [], []>} : vector<8x8xbf16>, vector<8x8xbf16>, vector<8x8xf32> -> vector<8x8xf32>
    %83 = arith.truncf %82 : vector<8x8xf32> to vector<8x8xbf16>
    %c0_27 = arith.constant 0 : index
    %c0_28 = arith.constant 0 : index
    %c16 = arith.constant 16 : index
    %84 = vector.load %arg3[%c0_27, %c0_28, %c16] : memref<1x8x32xbf16, #tpu.memory_space<vmem>>, vector<1x8x8xbf16>
    %85 = vector.shape_cast %84 : vector<1x8x8xbf16> to vector<8x8xbf16>
    %86 = vector.shape_cast %83 : vector<8x8xbf16> to vector<1x8x8xbf16>
    tpu.vector_store %arg3[%c0_27, %c0_28, %c16], %86 {strides = array<i32>} : memref<1x8x32xbf16, #tpu.memory_space<vmem>>, vector<1x8x8xbf16>,
    %87 = vector.extract_strided_slice %15 {offsets = [0, 24], sizes = [8, 8], strides = [1, 1]} : vector<8x32xbf16> to vector<8x8xbf16>
    %88 = vector.extract_strided_slice %16 {offsets = [0, 24], sizes = [8, 8], strides = [1, 1]} : vector<8x32xbf16> to vector<8x8xbf16>
    %89 = vector.extract_strided_slice %17 {offsets = [0, 24], sizes = [8, 8], strides = [1, 1]} : vector<8x32xbf16> to vector<8x8xbf16>
    %cst_29 = arith.constant dense<0.000000e+00> : vector<8x8xf32>
    %90 = tpu.matmul %87, %88, %cst_29 {dimension_numbers = #tpu.dot_dimension_numbers<[1], [1], [0], [0], [0, 0, 1, 0], [], []>} : vector<8x8xbf16>, vector<8x8xbf16>, vector<8x8xf32> -> vector<8x8xf32>
    %cst_30 = arith.constant 0.353553385 : f32
    %91 = vector.broadcast %cst_30 : f32 to vector<8x8xf32>
    %92 = arith.mulf %90, %91 : vector<8x8xf32>
    %93 = arith.addf %92, %14 : vector<8x8xf32>
    %cst_31 = arith.constant dense<0xFF800000> : vector<8xf32>
    %94 = vector.multi_reduction <maximumf>, %93, %cst_31 [1] : vector<8x8xf32> to vector<8xf32>
    %95 = vector.shape_cast %94 : vector<8xf32> to vector<8x1xf32>
    %96 = vector.broadcast %95 : vector<8x1xf32> to vector<8x8xf32>
    %97 = arith.subf %93, %96 : vector<8x8xf32>
    %98 = math.exp %97 : vector<8x8xf32>
    %cst_32 = arith.constant dense<0.000000e+00> : vector<8xf32>
    %99 = vector.multi_reduction <add>, %98, %cst_32 [1] : vector<8x8xf32> to vector<8xf32>
    %100 = vector.shape_cast %99 : vector<8xf32> to vector<8x1xf32>
    %101 = tpu.reciprocal %100 {approx = true} : vector<8x1xf32> -> vector<8x1xf32>
    %102 = vector.broadcast %101 : vector<8x1xf32> to vector<8x8xf32>
    %103 = arith.mulf %98, %102 : vector<8x8xf32>
    %104 = arith.truncf %103 : vector<8x8xf32> to vector<8x8xbf16>
    %cst_33 = arith.constant dense<0.000000e+00> : vector<8x8xf32>
    %105 = tpu.matmul %104, %89, %cst_33 {dimension_numbers = #tpu.dot_dimension_numbers<[1], [0], [0], [1], [0, 0, 1, 1], [], []>} : vector<8x8xbf16>, vector<8x8xbf16>, vector<8x8xf32> -> vector<8x8xf32>
    %106 = arith.truncf %105 : vector<8x8xf32> to vector<8x8xbf16>
    %c0_34 = arith.constant 0 : index
    %c0_35 = arith.constant 0 : index
    %c24 = arith.constant 24 : index
    %107 = vector.load %arg3[%c0_34, %c0_35, %c24] : memref<1x8x32xbf16, #tpu.memory_space<vmem>>, vector<1x8x8xbf16>
    %108 = vector.shape_cast %107 : vector<1x8x8xbf16> to vector<8x8xbf16>
    %109 = vector.shape_cast %106 : vector<8x8xbf16> to vector<1x8x8xbf16>
    tpu.vector_store %arg3[%c0_34, %c0_35, %c24], %109 {strides = array<i32>} : memref<1x8x32xbf16, #tpu.memory_space<vmem>>, vector<1x8x8xbf16>,
    return
  }
  func.func @transform_0(%arg0: i32) -> (i32, i32, i32) {
    %c0_i32 = arith.constant 0 : i32
    %c0_i32_0 = arith.constant 0 : i32
    %c0_i32_1 = arith.constant 0 : i32
    return %arg0, %c0_i32, %c0_i32_0 : i32, i32, i32
  }
  func.func @transform_1(%arg0: i32) -> (i32, i32, i32) {
    %c0_i32 = arith.constant 0 : i32
    %c0_i32_0 = arith.constant 0 : i32
    %c0_i32_1 = arith.constant 0 : i32
    return %arg0, %c0_i32, %c0_i32_0 : i32, i32, i32
  }
  func.func @transform_2(%arg0: i32) -> (i32, i32, i32) {
    %c0_i32 = arith.constant 0 : i32
    %c0_i32_0 = arith.constant 0 : i32
    %c0_i32_1 = arith.constant 0 : i32
    return %arg0, %c0_i32, %c0_i32_0 : i32, i32, i32
  }
}

module attributes {stable_mosaic.version = 11 : i64} {
  func.func @_add_ln_kernel(%arg0: i32, %arg1: memref<1x8x128xbf16, #tpu.memory_space<vmem>>, %arg2: memref<1x8x128xf32, #tpu.memory_space<vmem>>, %arg3: memref<1x1x128xf32, #tpu.memory_space<vmem>>, %arg4: memref<1x1x128xf32, #tpu.memory_space<vmem>>, %arg5: memref<1x8x128xbf16, #tpu.memory_space<vmem>>) attributes {dimension_semantics = [#tpu.dimension_semantics<parallel>], iteration_bounds = array<i64: 2>, scalar_prefetch = 0 : i64, scratch_operands = 0 : i64, tpu.core_type = #tpu.core_type<tc>, window_params = [{transform_indices = @transform_0, window_bounds = array<i64: 1, 8, 128>}, {pipeline_mode = #tpu.pipeline_mode<synchronous>, transform_indices = @transform_1, window_bounds = array<i64: 1, 8, 128>}, {pipeline_mode = #tpu.pipeline_mode<synchronous>, transform_indices = @transform_2, window_bounds = array<i64: 1, 1, 128>}, {pipeline_mode = #tpu.pipeline_mode<synchronous>, transform_indices = @transform_3, window_bounds = array<i64: 1, 1, 128>}, {transform_indices = @transform_4, window_bounds = array<i64: 1, 8, 128>}]} {
    %c0 = arith.constant 0 : index
    %c0_0 = arith.constant 0 : index
    %c0_1 = arith.constant 0 : index
    %0 = vector.load %arg1[%c0, %c0_0, %c0_1] : memref<1x8x128xbf16, #tpu.memory_space<vmem>>, vector<1x8x128xbf16>
    %1 = arith.extf %0 : vector<1x8x128xbf16> to vector<1x8x128xf32>
    %c0_2 = arith.constant 0 : index
    %c0_3 = arith.constant 0 : index
    %c0_4 = arith.constant 0 : index
    %2 = vector.load %arg2[%c0_2, %c0_3, %c0_4] : memref<1x8x128xf32, #tpu.memory_space<vmem>>, vector<1x8x128xf32>
    %3 = arith.addf %1, %2 : vector<1x8x128xf32>
    %c0_5 = arith.constant 0 : index
    %c0_6 = arith.constant 0 : index
    %c0_7 = arith.constant 0 : index
    %4 = vector.load %arg3[%c0_5, %c0_6, %c0_7] : memref<1x1x128xf32, #tpu.memory_space<vmem>>, vector<1x1x128xf32>
    %c0_8 = arith.constant 0 : index
    %c0_9 = arith.constant 0 : index
    %c0_10 = arith.constant 0 : index
    %5 = vector.load %arg4[%c0_8, %c0_9, %c0_10] : memref<1x1x128xf32, #tpu.memory_space<vmem>>, vector<1x1x128xf32>
    %6 = tpu.iota {dimensions = array<i32: 2>} : vector<1x8x128xi32>
    %c32_i32 = arith.constant 32 : i32
    %7 = vector.broadcast %c32_i32 : i32 to vector<1x8x128xi32>
    %8 = arith.cmpi slt, %6, %7 : vector<1x8x128xi32>
    %9 = arith.extui %8 : vector<1x8x128xi1> to vector<1x8x128xi32>
    %10 = arith.sitofp %9 : vector<1x8x128xi32> to vector<1x8x128xf32>
    %11 = arith.mulf %3, %10 : vector<1x8x128xf32>
    %cst = arith.constant dense<0.000000e+00> : vector<1x8xf32>
    %12 = vector.multi_reduction <add>, %11, %cst [2] : vector<1x8x128xf32> to vector<1x8xf32>
    %13 = vector.shape_cast %12 : vector<1x8xf32> to vector<1x8x1xf32>
    %cst_11 = arith.constant 3.125000e-02 : f32
    %14 = vector.broadcast %cst_11 : f32 to vector<1x8x1xf32>
    %15 = arith.mulf %13, %14 : vector<1x8x1xf32>
    %16 = vector.broadcast %15 : vector<1x8x1xf32> to vector<1x8x128xf32>
    %17 = arith.subf %11, %16 : vector<1x8x128xf32>
    %18 = arith.mulf %17, %10 : vector<1x8x128xf32>
    %19 = arith.mulf %18, %18 : vector<1x8x128xf32>
    %cst_12 = arith.constant dense<0.000000e+00> : vector<1x8xf32>
    %20 = vector.multi_reduction <add>, %19, %cst_12 [2] : vector<1x8x128xf32> to vector<1x8xf32>
    %21 = vector.shape_cast %20 : vector<1x8xf32> to vector<1x8x1xf32>
    %cst_13 = arith.constant 3.125000e-02 : f32
    %22 = vector.broadcast %cst_13 : f32 to vector<1x8x1xf32>
    %23 = arith.mulf %21, %22 : vector<1x8x1xf32>
    %cst_14 = arith.constant 9.99999997E-7 : f32
    %24 = vector.broadcast %cst_14 : f32 to vector<1x8x1xf32>
    %25 = arith.addf %23, %24 : vector<1x8x1xf32>
    %26 = math.rsqrt %25 : vector<1x8x1xf32>
    %27 = vector.broadcast %26 : vector<1x8x1xf32> to vector<1x8x128xf32>
    %28 = arith.mulf %18, %27 : vector<1x8x128xf32>
    %29 = vector.broadcast %4 : vector<1x1x128xf32> to vector<1x8x128xf32>
    %30 = arith.mulf %28, %29 : vector<1x8x128xf32>
    %31 = vector.broadcast %5 : vector<1x1x128xf32> to vector<1x8x128xf32>
    %32 = arith.addf %30, %31 : vector<1x8x128xf32>
    %33 = arith.truncf %32 : vector<1x8x128xf32> to vector<1x8x128xbf16>
    %c0_15 = arith.constant 0 : index
    %c0_16 = arith.constant 0 : index
    %c0_17 = arith.constant 0 : index
    %34 = vector.load %arg5[%c0_15, %c0_16, %c0_17] : memref<1x8x128xbf16, #tpu.memory_space<vmem>>, vector<1x8x128xbf16>
    tpu.vector_store %arg5[%c0_15, %c0_16, %c0_17], %33 {strides = array<i32>} : memref<1x8x128xbf16, #tpu.memory_space<vmem>>, vector<1x8x128xbf16>,
    return
  }
  func.func @transform_0(%arg0: i32) -> (i32, i32, i32) {
    %c0_i32 = arith.constant 0 : i32
    %c0_i32_0 = arith.constant 0 : i32
    %c0_i32_1 = arith.constant 0 : i32
    return %arg0, %c0_i32, %c0_i32_0 : i32, i32, i32
  }
  func.func @transform_1(%arg0: i32) -> (i32, i32, i32) {
    %c0_i32 = arith.constant 0 : i32
    %c0_i32_0 = arith.constant 0 : i32
    %c0_i32_1 = arith.constant 0 : i32
    %c0_i32_2 = arith.constant 0 : i32
    return %c0_i32, %c0_i32_0, %c0_i32_1 : i32, i32, i32
  }
  func.func @transform_2(%arg0: i32) -> (i32, i32, i32) {
    %c0_i32 = arith.constant 0 : i32
    %c0_i32_0 = arith.constant 0 : i32
    %c0_i32_1 = arith.constant 0 : i32
    %c0_i32_2 = arith.constant 0 : i32
    return %c0_i32, %c0_i32_0, %c0_i32_1 : i32, i32, i32
  }
  func.func @transform_3(%arg0: i32) -> (i32, i32, i32) {
    %c0_i32 = arith.constant 0 : i32
    %c0_i32_0 = arith.constant 0 : i32
    %c0_i32_1 = arith.constant 0 : i32
    %c0_i32_2 = arith.constant 0 : i32
    return %c0_i32, %c0_i32_0, %c0_i32_1 : i32, i32, i32
  }
  func.func @transform_4(%arg0: i32) -> (i32, i32, i32) {
    %c0_i32 = arith.constant 0 : i32
    %c0_i32_0 = arith.constant 0 : i32
    %c0_i32_1 = arith.constant 0 : i32
    return %arg0, %c0_i32, %c0_i32_0 : i32, i32, i32
  }
}

module attributes {stable_mosaic.version = 11 : i64} {
  func.func @_cross_attention_kernel(%arg0: i32, %arg1: memref<1x8x32xbf16, #tpu.memory_space<vmem>>, %arg2: memref<1x8x64xbf16, #tpu.memory_space<vmem>>, %arg3: memref<1x1x8xf32, #tpu.memory_space<vmem>>, %arg4: memref<1x8x32xbf16, #tpu.memory_space<vmem>>) attributes {dimension_semantics = [#tpu.dimension_semantics<parallel>], iteration_bounds = array<i64: 2>, scalar_prefetch = 0 : i64, scratch_operands = 0 : i64, tpu.core_type = #tpu.core_type<tc>, window_params = [{transform_indices = @transform_0, window_bounds = array<i64: 1, 8, 32>}, {transform_indices = @transform_1, window_bounds = array<i64: 1, 8, 64>}, {transform_indices = @transform_2, window_bounds = array<i64: 1, 1, 8>}, {transform_indices = @transform_3, window_bounds = array<i64: 1, 8, 32>}]} {
    %c0 = arith.constant 0 : index
    %c0_0 = arith.constant 0 : index
    %c0_1 = arith.constant 0 : index
    %0 = vector.load %arg1[%c0, %c0_0, %c0_1] : memref<1x8x32xbf16, #tpu.memory_space<vmem>>, vector<1x8x32xbf16>
    %1 = vector.shape_cast %0 : vector<1x8x32xbf16> to vector<8x32xbf16>
    %c0_2 = arith.constant 0 : index
    %c0_3 = arith.constant 0 : index
    %c0_4 = arith.constant 0 : index
    %2 = vector.load %arg2[%c0_2, %c0_3, %c0_4] : memref<1x8x64xbf16, #tpu.memory_space<vmem>>, vector<1x8x64xbf16>
    %3 = vector.shape_cast %2 : vector<1x8x64xbf16> to vector<8x64xbf16>
    %c0_5 = arith.constant 0 : index
    %c0_6 = arith.constant 0 : index
    %c0_7 = arith.constant 0 : index
    %4 = vector.load %arg3[%c0_5, %c0_6, %c0_7] : memref<1x1x8xf32, #tpu.memory_space<vmem>>, vector<1x1x8xf32>
    %5 = vector.shape_cast %4 : vector<1x1x8xf32> to vector<1x8xf32>
    %cst = arith.constant 0.000000e+00 : f32
    %6 = vector.broadcast %cst : f32 to vector<1x8xf32>
    %7 = arith.cmpf ogt, %5, %6 : vector<1x8xf32>
    %8 = vector.shape_cast %7 : vector<1x8xi1> to vector<1x8xi1>
    %9 = vector.broadcast %8 : vector<1x8xi1> to vector<8x8xi1>
    %cst_8 = arith.constant -1.000000e+09 : f32
    %cst_9 = arith.constant 0.000000e+00 : f32
    %10 = vector.broadcast %cst_8 : f32 to vector<8x8xf32>
    %11 = vector.broadcast %cst_9 : f32 to vector<8x8xf32>
    %12 = arith.select %9, %10, %11 : vector<8x8xi1>, vector<8x8xf32>
    %13 = vector.extract_strided_slice %3 {offsets = [0, 0], sizes = [8, 32], strides = [1, 1]} : vector<8x64xbf16> to vector<8x32xbf16>
    %14 = vector.extract_strided_slice %3 {offsets = [0, 32], sizes = [8, 32], strides = [1, 1]} : vector<8x64xbf16> to vector<8x32xbf16>
    %15 = vector.extract_strided_slice %1 {offsets = [0, 0], sizes = [8, 8], strides = [1, 1]} : vector<8x32xbf16> to vector<8x8xbf16>
    %16 = vector.extract_strided_slice %13 {offsets = [0, 0], sizes = [8, 8], strides = [1, 1]} : vector<8x32xbf16> to vector<8x8xbf16>
    %17 = vector.extract_strided_slice %14 {offsets = [0, 0], sizes = [8, 8], strides = [1, 1]} : vector<8x32xbf16> to vector<8x8xbf16>
    %cst_10 = arith.constant dense<0.000000e+00> : vector<8x8xf32>
    %18 = tpu.matmul %15, %16, %cst_10 {dimension_numbers = #tpu.dot_dimension_numbers<[1], [1], [0], [0], [0, 0, 1, 0], [], []>} : vector<8x8xbf16>, vector<8x8xbf16>, vector<8x8xf32> -> vector<8x8xf32>
    %cst_11 = arith.constant 0.353553385 : f32
    %19 = vector.broadcast %cst_11 : f32 to vector<8x8xf32>
    %20 = arith.mulf %18, %19 : vector<8x8xf32>
    %21 = arith.addf %20, %12 : vector<8x8xf32>
    %cst_12 = arith.constant dense<0xFF800000> : vector<8xf32>
    %22 = vector.multi_reduction <maximumf>, %21, %cst_12 [1] : vector<8x8xf32> to vector<8xf32>
    %23 = vector.shape_cast %22 : vector<8xf32> to vector<8x1xf32>
    %24 = vector.broadcast %23 : vector<8x1xf32> to vector<8x8xf32>
    %25 = arith.subf %21, %24 : vector<8x8xf32>
    %26 = math.exp %25 : vector<8x8xf32>
    %cst_13 = arith.constant dense<0.000000e+00> : vector<8xf32>
    %27 = vector.multi_reduction <add>, %26, %cst_13 [1] : vector<8x8xf32> to vector<8xf32>
    %28 = vector.shape_cast %27 : vector<8xf32> to vector<8x1xf32>
    %29 = tpu.reciprocal %28 {approx = true} : vector<8x1xf32> -> vector<8x1xf32>
    %30 = vector.broadcast %29 : vector<8x1xf32> to vector<8x8xf32>
    %31 = arith.mulf %26, %30 : vector<8x8xf32>
    %32 = arith.truncf %31 : vector<8x8xf32> to vector<8x8xbf16>
    %cst_14 = arith.constant dense<0.000000e+00> : vector<8x8xf32>
    %33 = tpu.matmul %32, %17, %cst_14 {dimension_numbers = #tpu.dot_dimension_numbers<[1], [0], [0], [1], [0, 0, 1, 1], [], []>} : vector<8x8xbf16>, vector<8x8xbf16>, vector<8x8xf32> -> vector<8x8xf32>
    %34 = arith.truncf %33 : vector<8x8xf32> to vector<8x8xbf16>
    %c0_15 = arith.constant 0 : index
    %c0_16 = arith.constant 0 : index
    %c0_17 = arith.constant 0 : index
    %35 = vector.load %arg4[%c0_15, %c0_16, %c0_17] : memref<1x8x32xbf16, #tpu.memory_space<vmem>>, vector<1x8x8xbf16>
    %36 = vector.shape_cast %35 : vector<1x8x8xbf16> to vector<8x8xbf16>
    %37 = vector.shape_cast %34 : vector<8x8xbf16> to vector<1x8x8xbf16>
    tpu.vector_store %arg4[%c0_15, %c0_16, %c0_17], %37 {strides = array<i32>} : memref<1x8x32xbf16, #tpu.memory_space<vmem>>, vector<1x8x8xbf16>,
    %38 = vector.extract_strided_slice %1 {offsets = [0, 8], sizes = [8, 8], strides = [1, 1]} : vector<8x32xbf16> to vector<8x8xbf16>
    %39 = vector.extract_strided_slice %13 {offsets = [0, 8], sizes = [8, 8], strides = [1, 1]} : vector<8x32xbf16> to vector<8x8xbf16>
    %40 = vector.extract_strided_slice %14 {offsets = [0, 8], sizes = [8, 8], strides = [1, 1]} : vector<8x32xbf16> to vector<8x8xbf16>
    %cst_18 = arith.constant dense<0.000000e+00> : vector<8x8xf32>
    %41 = tpu.matmul %38, %39, %cst_18 {dimension_numbers = #tpu.dot_dimension_numbers<[1], [1], [0], [0], [0, 0, 1, 0], [], []>} : vector<8x8xbf16>, vector<8x8xbf16>, vector<8x8xf32> -> vector<8x8xf32>
    %cst_19 = arith.constant 0.353553385 : f32
    %42 = vector.broadcast %cst_19 : f32 to vector<8x8xf32>
    %43 = arith.mulf %41, %42 : vector<8x8xf32>
    %44 = arith.addf %43, %12 : vector<8x8xf32>
    %cst_20 = arith.constant dense<0xFF800000> : vector<8xf32>
    %45 = vector.multi_reduction <maximumf>, %44, %cst_20 [1] : vector<8x8xf32> to vector<8xf32>
    %46 = vector.shape_cast %45 : vector<8xf32> to vector<8x1xf32>
    %47 = vector.broadcast %46 : vector<8x1xf32> to vector<8x8xf32>
    %48 = arith.subf %44, %47 : vector<8x8xf32>
    %49 = math.exp %48 : vector<8x8xf32>
    %cst_21 = arith.constant dense<0.000000e+00> : vector<8xf32>
    %50 = vector.multi_reduction <add>, %49, %cst_21 [1] : vector<8x8xf32> to vector<8xf32>
    %51 = vector.shape_cast %50 : vector<8xf32> to vector<8x1xf32>
    %52 = tpu.reciprocal %51 {approx = true} : vector<8x1xf32> -> vector<8x1xf32>
    %53 = vector.broadcast %52 : vector<8x1xf32> to vector<8x8xf32>
    %54 = arith.mulf %49, %53 : vector<8x8xf32>
    %55 = arith.truncf %54 : vector<8x8xf32> to vector<8x8xbf16>
    %cst_22 = arith.constant dense<0.000000e+00> : vector<8x8xf32>
    %56 = tpu.matmul %55, %40, %cst_22 {dimension_numbers = #tpu.dot_dimension_numbers<[1], [0], [0], [1], [0, 0, 1, 1], [], []>} : vector<8x8xbf16>, vector<8x8xbf16>, vector<8x8xf32> -> vector<8x8xf32>
    %57 = arith.truncf %56 : vector<8x8xf32> to vector<8x8xbf16>
    %c0_23 = arith.constant 0 : index
    %c0_24 = arith.constant 0 : index
    %c8 = arith.constant 8 : index
    %58 = vector.load %arg4[%c0_23, %c0_24, %c8] : memref<1x8x32xbf16, #tpu.memory_space<vmem>>, vector<1x8x8xbf16>
    %59 = vector.shape_cast %58 : vector<1x8x8xbf16> to vector<8x8xbf16>
    %60 = vector.shape_cast %57 : vector<8x8xbf16> to vector<1x8x8xbf16>
    tpu.vector_store %arg4[%c0_23, %c0_24, %c8], %60 {strides = array<i32>} : memref<1x8x32xbf16, #tpu.memory_space<vmem>>, vector<1x8x8xbf16>,
    %61 = vector.extract_strided_slice %1 {offsets = [0, 16], sizes = [8, 8], strides = [1, 1]} : vector<8x32xbf16> to vector<8x8xbf16>
    %62 = vector.extract_strided_slice %13 {offsets = [0, 16], sizes = [8, 8], strides = [1, 1]} : vector<8x32xbf16> to vector<8x8xbf16>
    %63 = vector.extract_strided_slice %14 {offsets = [0, 16], sizes = [8, 8], strides = [1, 1]} : vector<8x32xbf16> to vector<8x8xbf16>
    %cst_25 = arith.constant dense<0.000000e+00> : vector<8x8xf32>
    %64 = tpu.matmul %61, %62, %cst_25 {dimension_numbers = #tpu.dot_dimension_numbers<[1], [1], [0], [0], [0, 0, 1, 0], [], []>} : vector<8x8xbf16>, vector<8x8xbf16>, vector<8x8xf32> -> vector<8x8xf32>
    %cst_26 = arith.constant 0.353553385 : f32
    %65 = vector.broadcast %cst_26 : f32 to vector<8x8xf32>
    %66 = arith.mulf %64, %65 : vector<8x8xf32>
    %67 = arith.addf %66, %12 : vector<8x8xf32>
    %cst_27 = arith.constant dense<0xFF800000> : vector<8xf32>
    %68 = vector.multi_reduction <maximumf>, %67, %cst_27 [1] : vector<8x8xf32> to vector<8xf32>
    %69 = vector.shape_cast %68 : vector<8xf32> to vector<8x1xf32>
    %70 = vector.broadcast %69 : vector<8x1xf32> to vector<8x8xf32>
    %71 = arith.subf %67, %70 : vector<8x8xf32>
    %72 = math.exp %71 : vector<8x8xf32>
    %cst_28 = arith.constant dense<0.000000e+00> : vector<8xf32>
    %73 = vector.multi_reduction <add>, %72, %cst_28 [1] : vector<8x8xf32> to vector<8xf32>
    %74 = vector.shape_cast %73 : vector<8xf32> to vector<8x1xf32>
    %75 = tpu.reciprocal %74 {approx = true} : vector<8x1xf32> -> vector<8x1xf32>
    %76 = vector.broadcast %75 : vector<8x1xf32> to vector<8x8xf32>
    %77 = arith.mulf %72, %76 : vector<8x8xf32>
    %78 = arith.truncf %77 : vector<8x8xf32> to vector<8x8xbf16>
    %cst_29 = arith.constant dense<0.000000e+00> : vector<8x8xf32>
    %79 = tpu.matmul %78, %63, %cst_29 {dimension_numbers = #tpu.dot_dimension_numbers<[1], [0], [0], [1], [0, 0, 1, 1], [], []>} : vector<8x8xbf16>, vector<8x8xbf16>, vector<8x8xf32> -> vector<8x8xf32>
    %80 = arith.truncf %79 : vector<8x8xf32> to vector<8x8xbf16>
    %c0_30 = arith.constant 0 : index
    %c0_31 = arith.constant 0 : index
    %c16 = arith.constant 16 : index
    %81 = vector.load %arg4[%c0_30, %c0_31, %c16] : memref<1x8x32xbf16, #tpu.memory_space<vmem>>, vector<1x8x8xbf16>
    %82 = vector.shape_cast %81 : vector<1x8x8xbf16> to vector<8x8xbf16>
    %83 = vector.shape_cast %80 : vector<8x8xbf16> to vector<1x8x8xbf16>
    tpu.vector_store %arg4[%c0_30, %c0_31, %c16], %83 {strides = array<i32>} : memref<1x8x32xbf16, #tpu.memory_space<vmem>>, vector<1x8x8xbf16>,
    %84 = vector.extract_strided_slice %1 {offsets = [0, 24], sizes = [8, 8], strides = [1, 1]} : vector<8x32xbf16> to vector<8x8xbf16>
    %85 = vector.extract_strided_slice %13 {offsets = [0, 24], sizes = [8, 8], strides = [1, 1]} : vector<8x32xbf16> to vector<8x8xbf16>
    %86 = vector.extract_strided_slice %14 {offsets = [0, 24], sizes = [8, 8], strides = [1, 1]} : vector<8x32xbf16> to vector<8x8xbf16>
    %cst_32 = arith.constant dense<0.000000e+00> : vector<8x8xf32>
    %87 = tpu.matmul %84, %85, %cst_32 {dimension_numbers = #tpu.dot_dimension_numbers<[1], [1], [0], [0], [0, 0, 1, 0], [], []>} : vector<8x8xbf16>, vector<8x8xbf16>, vector<8x8xf32> -> vector<8x8xf32>
    %cst_33 = arith.constant 0.353553385 : f32
    %88 = vector.broadcast %cst_33 : f32 to vector<8x8xf32>
    %89 = arith.mulf %87, %88 : vector<8x8xf32>
    %90 = arith.addf %89, %12 : vector<8x8xf32>
    %cst_34 = arith.constant dense<0xFF800000> : vector<8xf32>
    %91 = vector.multi_reduction <maximumf>, %90, %cst_34 [1] : vector<8x8xf32> to vector<8xf32>
    %92 = vector.shape_cast %91 : vector<8xf32> to vector<8x1xf32>
    %93 = vector.broadcast %92 : vector<8x1xf32> to vector<8x8xf32>
    %94 = arith.subf %90, %93 : vector<8x8xf32>
    %95 = math.exp %94 : vector<8x8xf32>
    %cst_35 = arith.constant dense<0.000000e+00> : vector<8xf32>
    %96 = vector.multi_reduction <add>, %95, %cst_35 [1] : vector<8x8xf32> to vector<8xf32>
    %97 = vector.shape_cast %96 : vector<8xf32> to vector<8x1xf32>
    %98 = tpu.reciprocal %97 {approx = true} : vector<8x1xf32> -> vector<8x1xf32>
    %99 = vector.broadcast %98 : vector<8x1xf32> to vector<8x8xf32>
    %100 = arith.mulf %95, %99 : vector<8x8xf32>
    %101 = arith.truncf %100 : vector<8x8xf32> to vector<8x8xbf16>
    %cst_36 = arith.constant dense<0.000000e+00> : vector<8x8xf32>
    %102 = tpu.matmul %101, %86, %cst_36 {dimension_numbers = #tpu.dot_dimension_numbers<[1], [0], [0], [1], [0, 0, 1, 1], [], []>} : vector<8x8xbf16>, vector<8x8xbf16>, vector<8x8xf32> -> vector<8x8xf32>
    %103 = arith.truncf %102 : vector<8x8xf32> to vector<8x8xbf16>
    %c0_37 = arith.constant 0 : index
    %c0_38 = arith.constant 0 : index
    %c24 = arith.constant 24 : index
    %104 = vector.load %arg4[%c0_37, %c0_38, %c24] : memref<1x8x32xbf16, #tpu.memory_space<vmem>>, vector<1x8x8xbf16>
    %105 = vector.shape_cast %104 : vector<1x8x8xbf16> to vector<8x8xbf16>
    %106 = vector.shape_cast %103 : vector<8x8xbf16> to vector<1x8x8xbf16>
    tpu.vector_store %arg4[%c0_37, %c0_38, %c24], %106 {strides = array<i32>} : memref<1x8x32xbf16, #tpu.memory_space<vmem>>, vector<1x8x8xbf16>,
    return
  }
  func.func @transform_0(%arg0: i32) -> (i32, i32, i32) {
    %c0_i32 = arith.constant 0 : i32
    %c0_i32_0 = arith.constant 0 : i32
    %c0_i32_1 = arith.constant 0 : i32
    return %arg0, %c0_i32, %c0_i32_0 : i32, i32, i32
  }
  func.func @transform_1(%arg0: i32) -> (i32, i32, i32) {
    %c0_i32 = arith.constant 0 : i32
    %c0_i32_0 = arith.constant 0 : i32
    %c0_i32_1 = arith.constant 0 : i32
    return %arg0, %c0_i32, %c0_i32_0 : i32, i32, i32
  }
  func.func @transform_2(%arg0: i32) -> (i32, i32, i32) {
    %c0_i32 = arith.constant 0 : i32
    %c0_i32_0 = arith.constant 0 : i32
    %c0_i32_1 = arith.constant 0 : i32
    return %arg0, %c0_i32, %c0_i32_0 : i32, i32, i32
  }
  func.func @transform_3(%arg0: i32) -> (i32, i32, i32) {
    %c0_i32 = arith.constant 0 : i32
    %c0_i32_0 = arith.constant 0 : i32
    %c0_i32_1 = arith.constant 0 : i32
    return %arg0, %c0_i32, %c0_i32_0 : i32, i32, i32
  }
}

module attributes {stable_mosaic.version = 11 : i64} {
  func.func @_classifier_ce_kernel(%arg0: i32, %arg1: i32, %arg2: i32, %arg3: memref<16x128xbf16, #tpu.memory_space<vmem>>, %arg4: memref<128x128xbf16, #tpu.memory_space<vmem>>, %arg5: memref<1x128xf32, #tpu.memory_space<vmem>>, %arg6: memref<16x1xi32, #tpu.memory_space<vmem>>, %arg7: memref<16x1xf32, #tpu.memory_space<vmem>>, %arg8: memref<16x128xf32, #tpu.memory_space<vmem>>, %arg9: memref<16x1xf32, #tpu.memory_space<vmem>>, %arg10: memref<16x1xf32, #tpu.memory_space<vmem>>, %arg11: memref<16x1xf32, #tpu.memory_space<vmem>>) attributes {dimension_semantics = [#tpu.dimension_semantics<parallel>, #tpu.dimension_semantics<arbitrary>, #tpu.dimension_semantics<arbitrary>], iteration_bounds = array<i64: 1, 1, 1>, scalar_prefetch = 0 : i64, scratch_operands = 4 : i64, tpu.core_type = #tpu.core_type<tc>, window_params = [{transform_indices = @transform_0, window_bounds = array<i64: 16, 128>}, {transform_indices = @transform_1, window_bounds = array<i64: 128, 128>}, {transform_indices = @transform_2, window_bounds = array<i64: 1, 128>}, {transform_indices = @transform_3, window_bounds = array<i64: 16, 1>}, {transform_indices = @transform_4, window_bounds = array<i64: 16, 1>}]} {
    %c0_i32 = arith.constant 0 : i32
    %0 = arith.cmpi eq, %arg1, %c0_i32 : i32
    %c0_i32_0 = arith.constant 0 : i32
    %1 = arith.cmpi eq, %arg2, %c0_i32_0 : i32
    %2 = arith.andi %0, %1 : i1
    %3 = arith.extui %2 : i1 to i32
    %c0_i32_1 = arith.constant 0 : i32
    %4 = arith.cmpi ne, %3, %c0_i32_1 : i32
    scf.if %4 {
      %cst_16 = arith.constant -1.000000e+30 : f32
      %22 = vector.broadcast %cst_16 : f32 to vector<16x1xf32>
      %c0_17 = arith.constant 0 : index
      %c0_18 = arith.constant 0 : index
      %23 = vector.load %arg9[%c0_17, %c0_18] : memref<16x1xf32, #tpu.memory_space<vmem>>, vector<16x1xf32>
      tpu.vector_store %arg9[%c0_17, %c0_18], %22 {strides = array<i32>} : memref<16x1xf32, #tpu.memory_space<vmem>>, vector<16x1xf32>,
      %cst_19 = arith.constant 0.000000e+00 : f32
      %24 = vector.broadcast %cst_19 : f32 to vector<16x1xf32>
      %c0_20 = arith.constant 0 : index
      %c0_21 = arith.constant 0 : index
      %25 = vector.load %arg10[%c0_20, %c0_21] : memref<16x1xf32, #tpu.memory_space<vmem>>, vector<16x1xf32>
      tpu.vector_store %arg10[%c0_20, %c0_21], %24 {strides = array<i32>} : memref<16x1xf32, #tpu.memory_space<vmem>>, vector<16x1xf32>,
      %cst_22 = arith.constant 0.000000e+00 : f32
      %26 = vector.broadcast %cst_22 : f32 to vector<16x1xf32>
      %c0_23 = arith.constant 0 : index
      %c0_24 = arith.constant 0 : index
      %27 = vector.load %arg11[%c0_23, %c0_24] : memref<16x1xf32, #tpu.memory_space<vmem>>, vector<16x1xf32>
      tpu.vector_store %arg11[%c0_23, %c0_24], %26 {strides = array<i32>} : memref<16x1xf32, #tpu.memory_space<vmem>>, vector<16x1xf32>,
    } else {
    }
    %c0_i32_2 = arith.constant 0 : i32
    %5 = arith.cmpi eq, %arg2, %c0_i32_2 : i32
    %6 = arith.extui %5 : i1 to i32
    %c0_i32_3 = arith.constant 0 : i32
    %7 = arith.cmpi ne, %6, %c0_i32_3 : i32
    scf.if %7 {
      %cst_16 = arith.constant 0.000000e+00 : f32
      %22 = vector.broadcast %cst_16 : f32 to vector<16x128xf32>
      %c0_17 = arith.constant 0 : index
      %c0_18 = arith.constant 0 : index
      %23 = vector.load %arg8[%c0_17, %c0_18] : memref<16x128xf32, #tpu.memory_space<vmem>>, vector<16x128xf32>
      tpu.vector_store %arg8[%c0_17, %c0_18], %22 {strides = array<i32>} : memref<16x128xf32, #tpu.memory_space<vmem>>, vector<16x128xf32>,
    } else {
    }
    %c0 = arith.constant 0 : index
    %c0_4 = arith.constant 0 : index
    %8 = vector.load %arg8[%c0, %c0_4] : memref<16x128xf32, #tpu.memory_space<vmem>>, vector<16x128xf32>
    %c0_5 = arith.constant 0 : index
    %c0_6 = arith.constant 0 : index
    %9 = vector.load %arg3[%c0_5, %c0_6] : memref<16x128xbf16, #tpu.memory_space<vmem>>, vector<16x128xbf16>
    %c0_7 = arith.constant 0 : index
    %c0_8 = arith.constant 0 : index
    %10 = vector.load %arg4[%c0_7, %c0_8] : memref<128x128xbf16, #tpu.memory_space<vmem>>, vector<128x128xbf16>
    %cst = arith.constant dense<0.000000e+00> : vector<16x128xf32>
    %11 = tpu.matmul %9, %10, %cst {dimension_numbers = #tpu.dot_dimension_numbers<[1], [0], [0], [1], [0, 0, 1, 1], [], []>} : vector<16x128xbf16>, vector<128x128xbf16>, vector<16x128xf32> -> vector<16x128xf32>
    %12 = arith.addf %8, %11 : vector<16x128xf32>
    %c0_9 = arith.constant 0 : index
    %c0_10 = arith.constant 0 : index
    %13 = vector.load %arg8[%c0_9, %c0_10] : memref<16x128xf32, #tpu.memory_space<vmem>>, vector<16x128xf32>
    tpu.vector_store %arg8[%c0_9, %c0_10], %12 {strides = array<i32>} : memref<16x128xf32, #tpu.memory_space<vmem>>, vector<16x128xf32>,
    %c0_i32_11 = arith.constant 0 : i32
    %14 = arith.cmpi eq, %arg2, %c0_i32_11 : i32
    %15 = arith.extui %14 : i1 to i32
    %c0_i32_12 = arith.constant 0 : i32
    %16 = arith.cmpi ne, %15, %c0_i32_12 : i32
    scf.if %16 {
      %c0_16 = arith.constant 0 : index
      %c0_17 = arith.constant 0 : index
      %22 = vector.load %arg8[%c0_16, %c0_17] : memref<16x128xf32, #tpu.memory_space<vmem>>, vector<16x128xf32>
      %c0_18 = arith.constant 0 : index
      %c0_19 = arith.constant 0 : index
      %23 = vector.load %arg5[%c0_18, %c0_19] : memref<1x128xf32, #tpu.memory_space<vmem>>, vector<1x128xf32>
      %24 = vector.broadcast %23 : vector<1x128xf32> to vector<16x128xf32>
      %25 = arith.addf %22, %24 : vector<16x128xf32>
      %26 = tpu.iota {dimensions = array<i32: 1>} : vector<16x128xi32>
      %c128_i32 = arith.constant 128 : i32
      %27 = arith.muli %arg1, %c128_i32 : i32
      %28 = vector.broadcast %27 : i32 to vector<16x128xi32>
      %29 = arith.addi %26, %28 : vector<16x128xi32>
      %c16_i32 = arith.constant 16 : i32
      %30 = vector.broadcast %c16_i32 : i32 to vector<16x128xi32>
      %31 = arith.cmpi slt, %29, %30 : vector<16x128xi32>
      %c0_20 = arith.constant 0 : index
      %c0_21 = arith.constant 0 : index
      %32 = vector.load %arg6[%c0_20, %c0_21] : memref<16x1xi32, #tpu.memory_space<vmem>>, vector<16x1xi32>
      %cst_22 = arith.constant -1.000000e+30 : f32
      %33 = vector.broadcast %cst_22 : f32 to vector<16x128xf32>
      %34 = arith.select %31, %25, %33 : vector<16x128xi1>, vector<16x128xf32>
      %c0_23 = arith.constant 0 : index
      %c0_24 = arith.constant 0 : index
      %35 = vector.load %arg9[%c0_23, %c0_24] : memref<16x1xf32, #tpu.memory_space<vmem>>, vector<16x1xf32>
      %cst_25 = arith.constant dense<0xFF800000> : vector<16xf32>
      %36 = vector.multi_reduction <maximumf>, %34, %cst_25 [1] : vector<16x128xf32> to vector<16xf32>
      %37 = vector.shape_cast %36 : vector<16xf32> to vector<16x1xf32>
      %38 = arith.maximumf %35, %37 : vector<16x1xf32>
      %c0_26 = arith.constant 0 : index
      %c0_27 = arith.constant 0 : index
      %39 = vector.load %arg10[%c0_26, %c0_27] : memref<16x1xf32, #tpu.memory_space<vmem>>, vector<16x1xf32>
      %40 = arith.subf %35, %38 : vector<16x1xf32>
      %41 = math.exp %40 : vector<16x1xf32>
      %42 = arith.mulf %39, %41 : vector<16x1xf32>
      %43 = vector.broadcast %38 : vector<16x1xf32> to vector<16x128xf32>
      %44 = arith.subf %34, %43 : vector<16x128xf32>
      %45 = math.exp %44 : vector<16x128xf32>
      %cst_28 = arith.constant dense<0.000000e+00> : vector<16xf32>
      %46 = vector.multi_reduction <add>, %45, %cst_28 [1] : vector<16x128xf32> to vector<16xf32>
      %47 = vector.shape_cast %46 : vector<16xf32> to vector<16x1xf32>
      %48 = arith.addf %42, %47 : vector<16x1xf32>
      %c0_29 = arith.constant 0 : index
      %c0_30 = arith.constant 0 : index
      %49 = vector.load %arg10[%c0_29, %c0_30] : memref<16x1xf32, #tpu.memory_space<vmem>>, vector<16x1xf32>
      tpu.vector_store %arg10[%c0_29, %c0_30], %48 {strides = array<i32>} : memref<16x1xf32, #tpu.memory_space<vmem>>, vector<16x1xf32>,
      %c0_31 = arith.constant 0 : index
      %c0_32 = arith.constant 0 : index
      %50 = vector.load %arg9[%c0_31, %c0_32] : memref<16x1xf32, #tpu.memory_space<vmem>>, vector<16x1xf32>
      tpu.vector_store %arg9[%c0_31, %c0_32], %38 {strides = array<i32>} : memref<16x1xf32, #tpu.memory_space<vmem>>, vector<16x1xf32>,
      %c0_33 = arith.constant 0 : index
      %c0_34 = arith.constant 0 : index
      %51 = vector.load %arg11[%c0_33, %c0_34] : memref<16x1xf32, #tpu.memory_space<vmem>>, vector<16x1xf32>
      %52 = vector.broadcast %32 : vector<16x1xi32> to vector<16x128xi32>
      %53 = arith.cmpi eq, %29, %52 : vector<16x128xi32>
      %cst_35 = arith.constant 0.000000e+00 : f32
      %54 = vector.broadcast %cst_35 : f32 to vector<16x128xf32>
      %55 = arith.select %53, %25, %54 : vector<16x128xi1>, vector<16x128xf32>
      %cst_36 = arith.constant dense<0.000000e+00> : vector<16xf32>
      %56 = vector.multi_reduction <add>, %55, %cst_36 [1] : vector<16x128xf32> to vector<16xf32>
      %57 = vector.shape_cast %56 : vector<16xf32> to vector<16x1xf32>
      %58 = arith.addf %51, %57 : vector<16x1xf32>
      %c0_37 = arith.constant 0 : index
      %c0_38 = arith.constant 0 : index
      %59 = vector.load %arg11[%c0_37, %c0_38] : memref<16x1xf32, #tpu.memory_space<vmem>>, vector<16x1xf32>
      tpu.vector_store %arg11[%c0_37, %c0_38], %58 {strides = array<i32>} : memref<16x1xf32, #tpu.memory_space<vmem>>, vector<16x1xf32>,
    } else {
    }
    %c0_i32_13 = arith.constant 0 : i32
    %17 = arith.cmpi eq, %arg1, %c0_i32_13 : i32
    %c0_i32_14 = arith.constant 0 : i32
    %18 = arith.cmpi eq, %arg2, %c0_i32_14 : i32
    %19 = arith.andi %17, %18 : i1
    %20 = arith.extui %19 : i1 to i32
    %c0_i32_15 = arith.constant 0 : i32
    %21 = arith.cmpi ne, %20, %c0_i32_15 : i32
    scf.if %21 {
      %c0_16 = arith.constant 0 : index
      %c0_17 = arith.constant 0 : index
      %22 = vector.load %arg9[%c0_16, %c0_17] : memref<16x1xf32, #tpu.memory_space<vmem>>, vector<16x1xf32>
      %c0_18 = arith.constant 0 : index
      %c0_19 = arith.constant 0 : index
      %23 = vector.load %arg10[%c0_18, %c0_19] : memref<16x1xf32, #tpu.memory_space<vmem>>, vector<16x1xf32>
      %24 = math.log %23 : vector<16x1xf32>
      %25 = arith.addf %22, %24 : vector<16x1xf32>
      %c0_20 = arith.constant 0 : index
      %c0_21 = arith.constant 0 : index
      %26 = vector.load %arg11[%c0_20, %c0_21] : memref<16x1xf32, #tpu.memory_space<vmem>>, vector<16x1xf32>
      %27 = arith.subf %25, %26 : vector<16x1xf32>
      %c0_22 = arith.constant 0 : index
      %c0_23 = arith.constant 0 : index
      %28 = vector.load %arg7[%c0_22, %c0_23] : memref<16x1xf32, #tpu.memory_space<vmem>>, vector<16x1xf32>
      tpu.vector_store %arg7[%c0_22, %c0_23], %27 {strides = array<i32>} : memref<16x1xf32, #tpu.memory_space<vmem>>, vector<16x1xf32>,
    } else {
    }
    return
  }
  func.func @transform_0(%arg0: i32, %arg1: i32, %arg2: i32) -> (i32, i32) {
    %c0_i32 = arith.constant 0 : i32
    return %arg0, %arg2 : i32, i32
  }
  func.func @transform_1(%arg0: i32, %arg1: i32, %arg2: i32) -> (i32, i32) {
    %c0_i32 = arith.constant 0 : i32
    return %arg2, %arg1 : i32, i32
  }
  func.func @transform_2(%arg0: i32, %arg1: i32, %arg2: i32) -> (i32, i32) {
    %c0_i32 = arith.constant 0 : i32
    %c0_i32_0 = arith.constant 0 : i32
    return %c0_i32, %arg1 : i32, i32
  }
  func.func @transform_3(%arg0: i32, %arg1: i32, %arg2: i32) -> (i32, i32) {
    %c0_i32 = arith.constant 0 : i32
    %c0_i32_0 = arith.constant 0 : i32
    return %arg0, %c0_i32 : i32, i32
  }
  func.func @transform_4(%arg0: i32, %arg1: i32, %arg2: i32) -> (i32, i32) {
    %c0_i32 = arith.constant 0 : i32
    %c0_i32_0 = arith.constant 0 : i32
    return %arg0, %c0_i32 : i32, i32
  }
}

</mosaic_0001>

<bundles_post_ra>
// kernel: transformer_forward.36
= control target key start
LH: loop header
LB: loop body
LE: loop exit
PB: predicated region body
PF: predicated region fallthrough
CT: control target
= control target key end

     0   :  { %s374_s15 = smov 0   ;;  %s405_s0 = inlined_call_operand.vmem [shape: bf16[2,8,128], index: 0, kind: input, shape index: {}]   ;;  %s406_s1 = inlined_call_operand.vmem [shape: bf16[2,8,128], index: 1, kind: input, shape index: {}]   ;;  %s407_s2 = inlined_call_operand.vmem [shape: f32[1,1,128], index: 2, kind: input, shape index: {}]   ;;  %s408_s3 = inlined_call_operand.vmem [shape: f32[1,1,128], index: 3, kind: input, shape index: {}]   ;;  %s409_s4 = inlined_call_operand.vmem [shape: bf16[2,8,128], index: 4, kind: output, shape index: {}]  }
   0x1 LB: > { %s316_s16 = sadd.s32 4294967295, %s346_s15   ;;  %p320_p0 = scmp.ge.s32.totalorder %s346_s15, 1  ;;  %s346_s15 = sphi %s374_s15, %s14_s15  }
   0x2   : > { %p170_p1 = scmp.lt.s32.totalorder %s346_s15, 3 }
   0x4   : > { %p171_p2 = pnand %p320_p0, %p170_p1 }
   0x5   : > { %p198_p3 = scmp.lt.s32.totalorder (!%p171_p2), %s316_s16, 1 }
   0x6   : > { %174 = sbr.rel (%p171_p2) target bundleno = 333 (0x14d), region = 36 }
   0xb   : > { %v217_v0 = vlaneseq  ;;  %s411_s16 = smov (!%p198_p3, %s316_s16), 1  ;;  %v348_v6 = vmov 0.0   ;;  %v325_v19 = vld [vmem:[%s407_s2] ss:$0 sm:$0xff] }
   0xc   : > { %s382_s17 = sshll.u32 %s411_s16, 2  ;;  %v326_v21 = vld [vmem:[%s408_s3] ss:$0 sm:$0xff] }
   0xd   : > { %v218_v1 = vand.u32 127, %v217_v0  ;;  %s201_s20 = scalar_lea.vmem %s405_s0, %s382_s17  ;;  %s205_s23 = scalar_lea.vmem %s406_s1, %s382_s17 }
   0xe   : > { %v210_v2 = vld [vmem:[%s201_s20] sm:$0xf]  ;;  %s209_s30 = scalar_lea.vmem %s409_s4, %s382_s17 }
   0xf   : > { %vm219_vm0 = vcmp.lt.s32.totalorder %v218_v1, 32  ;;  %v212_v3 = vld [vmem:[%s205_s23] sm:$0xf]  ;;  %v211_v4 = vunpack.c.l.bf16 %v210_v2 }
  0x10   : > { %v213_v5 = vunpack.c.l.bf16 %v212_v3  ;;  %v324_v7 = vsel %vm219_vm0, 1.0, %v348_v6 }
  0x12   : > { %v214_v8 = vadd.f32 %v213_v5, %v211_v4 }
  0x14   : > { %v222_v9 = vmul.f32 %v324_v7, %v214_v8 }
  0x16   : > { %223 = vadd.xlane.f32.xlu0 %v222_v9 }
  0x9f   : > { %v224_v10 = vpop.xlane.xlu0 %223 }
  0xa0   : > { %v225_v11 = vmul.f32 0.03125, %v224_v10 }
  0xa2   : > { %v226_v12 = vsub.f32 %v222_v9, %v225_v11 }
  0xa4   : > { %v227_v13 = vmul.f32 %v324_v7, %v226_v12 }
  0xa6   : > { %v228_v14 = vmul.f32 %v227_v13, %v227_v13 }
  0xa8   : > { %229 = vadd.xlane.f32.xlu0 %v228_v14 }
 0x131   : > { %v230_v15 = vpop.xlane.xlu0 %229 }
 0x132   : > { %v231_v16 = vmul.f32 0.03125, %v230_v15 }
 0x134   : > { %v232_v17 = vadd.f32 1e-06, %v231_v16 }
 0x136   : > { %338 = vrsqrt.f32 %v232_v17 }
 0x143   : > { %v339_v18 = vpop.eup %338 }
 0x144   : > { %v234_v20 = vmul.f32 %v339_v18, %v227_v13 }
 0x146   : > { %v241_v22 = vmul.f32 %v325_v19, %v234_v20 }
 0x148   : > { %v248_v23 = vadd.f32 %v326_v21, %v241_v22 }
 0x14a   : > { %v249_v24 = vpack.c.bf16 %v248_v23, %v248_v23 }
 0x14c   : > { %250 = vst [vmem:[%s209_s30] sm:$0xf] %v249_v24 }
 0x14d PF: > { %s14_s15 = sadd.s32 1, %s346_s15  }
 0x14e   : > { %p11_p4 = scmp.ge.s32.totalorder %s14_s15, 4  }
 0x150   :  { %13 = sbr.rel (!%p11_p4) target bundleno = 1 (0x1), region = 69 }

// kernel: transformer_forward.35
= control target key start
LH: loop header
LB: loop body
LE: loop exit
PB: predicated region body
PF: predicated region fallthrough
CT: control target
= control target key end

     0   :  { %v214_v0 = vmov 0.0   ;;  %vm215_vm0 = vmmov 0   ;;  %s261_s1 = inlined_call_operand.vmem [shape: bf16[128,128], index: 1, kind: input, shape index: {}]   ;;  %s262_s0 = inlined_call_operand.vmem [shape: bf16[16,128], index: 0, kind: input, shape index: {}]   ;;  %s263_s2 = inlined_call_operand.vmem [shape: bf16[16,128], index: 2, kind: output, shape index: {}]  }
   0x1   :  { %183 = vmatprep.subr.bf16.mxu0 %v214_v0  ;;  %v205_v1 = vld [vmem:[%s261_s1 + $0x38] sm:$0xff]   ;;  %199 = vmatprep.mubr.msk.bf16.mxu0 %vm215_vm0, %v214_v0  ;;  %v206_v2 = vld [vmem:[%s261_s1 + $0x30] sm:$0xff]   ;;  %v207_v3 = vld [vmem:[%s261_s1 + $0x28] sm:$0xff]  }
   0x2   :  { %184 = vmatpush3.bf16.msra.mxu0 %v205_v1  ;;  %v208_v4 = vld [vmem:[%s261_s1 + $0x20] sm:$0xff]   ;;  %v209_v5 = vld [vmem:[%s261_s1 + $0x18] sm:$0xff]   ;;  %v210_v6 = vld [vmem:[%s261_s1 + $0x10] sm:$0xff]  }
   0x3   :  { %185 = vmatprep.subr.bf16.mxu0 %v214_v0  ;;  %v211_v7 = vld [vmem:[%s261_s1 + $0x8] sm:$0xff]   ;;  %v212_v8 = vld [vmem:[%s261_s1] sm:$0xff]  }
   0x4   :  { %v213_v9 = vld [vmem:[%s262_s0] sm:$0xff]  }
   0x6   :  { %186 = vmatpush3.bf16.msra.mxu0 %v206_v2 }
   0x7   :  { %187 = vmatprep.subr.bf16.mxu0 %v214_v0 }
   0xa   :  { %188 = vmatpush3.bf16.msra.mxu0 %v207_v3 }
   0xb   :  { %189 = vmatprep.subr.bf16.mxu0 %v214_v0 }
   0xe   :  { %190 = vmatpush3.bf16.msra.mxu0 %v208_v4 }
   0xf   :  { %191 = vmatprep.subr.bf16.mxu0 %v214_v0 }
  0x12   :  { %192 = vmatpush3.bf16.msra.mxu0 %v209_v5 }
  0x13   :  { %193 = vmatprep.subr.bf16.mxu0 %v214_v0 }
  0x16   :  { %194 = vmatpush3.bf16.msra.mxu0 %v210_v6 }
  0x17   :  { %195 = vmatprep.subr.bf16.mxu0 %v214_v0 }
  0x1a   :  { %196 = vmatpush3.bf16.msra.mxu0 %v211_v7 }
  0x1b   :  { %197 = vmatprep.subr.bf16.mxu0 %v214_v0 }
  0x1e   :  { %198 = vmatpush3.bf16.msra.mxu0 %v212_v8 }
  0x21   :  { %200 = vmatmul.mubr.bf16.vlgmr.msra.gmra.mxu0 %v213_v9 }
  0xe1   :  { %v126_v10 = vpop.f32.mrf.mxu0 }
  0xe3   :  { %v201_v11 = vpop.f32.mrf.mxu0 }
  0xe5   :  { %v129_v12 = vpop.f32.mrf.mxu0 }
  0xe6   :  { %v172_v13 = vpack.c.bf16 %v129_v12, %v126_v10 }
  0xe7   :  { %v202_v14 = vpop.f32.mrf.mxu0 }
  0xe8   :  { %173 = vst [vmem:[%s263_s2] sm:$0xff] %v172_v13  }

// kernel: transformer_forward.38
= control target key start
LH: loop header
LB: loop body
LE: loop exit
PB: predicated region body
PF: predicated region fallthrough
CT: control target
= control target key end

     0   :  { %s877_s9 = smov 0   ;;  %s979_s0 = inlined_call_operand.vmem [shape: bf16[2,8,96], index: 0, kind: input, shape index: {}]   ;;  %s980_s1 = inlined_call_operand.vmem [shape: f32[2,1,8], index: 1, kind: input, shape index: {}]   ;;  %s981_s2 = inlined_call_operand.vmem [shape: bf16[2,8,32], index: 2, kind: output, shape index: {}]  }
   0x1 LB: > { %s707_s10 = sadd.s32 4294967295, %s843_s9   ;;  %p711_p0 = scmp.ge.s32.totalorder %s843_s9, 1  ;;  %s843_s9 = sphi %s877_s9, %s12_s9  }
   0x2   : > { %p119_p1 = scmp.lt.s32.totalorder %s843_s9, 3 }
   0x4   : > { %p120_p2 = pnand %p711_p0, %p119_p1 }
   0x5   : > { %p142_p3 = scmp.lt.s32.totalorder (!%p120_p2), %s707_s10, 1  ;;  %s847_s15 = smov (!%p120_p2), 96  }
   0x6   : > { %123 = sbr.rel (%p120_p2) target bundleno = 1542 (0x606), region = 28  ;;  %s848_s16 = smov (!%p120_p2), 64  }
   0x7   : > { %s849_s17 = smov (!%p120_p2), 88   ;;  %s851_s21 = smov (!%p120_p2), 72  }
   0x8   : > { %s852_s22 = smov (!%p120_p2), 120   ;;  %s853_s23 = smov (!%p120_p2), 80  }
   0x9   : > { %s854_s24 = smov (!%p120_p2), 112   ;;  %s855_s25 = smov (!%p120_p2), 104  }
   0xa   : > { %s856_s29 = smov (!%p120_p2), 56   ;;  %s857_s30 = smov (!%p120_p2), 48  }
   0xb   : > { %v845_v0 = vmov 0.0   ;;  %vm846_vm0 = vmmov 0   ;;  %s983_s10 = smov (!%p142_p3, %s707_s10), 1  ;;  %vm169_vm1 = vcmask 64512   ;;  %v158_v5 = vlaneseq  ;;  %s858_s3 = smov 40  }
   0xc   : > { %747 = vmatprep.subr.bf16.mxu0 %v845_v0  ;;  %749 = vmatprep.mubr.msk.bf16.mxu0 %vm846_vm0, %v845_v0  ;;  %s712_s11 = sshll.u32 %s983_s10, 2  ;;  %s148_s20 = scalar_lea.vmem %s980_s1, %s983_s10  ;;  %v850_v9 = vmov 0   ;;  %vm235_vm4 = vcmask 1043456   ;;  %vm280_vm5 = vcmask 60416   ;;  %vm401_vm6 = vcmask 126016  }
   0xd   : > { %753 = vmatprep.subr.bf16.mxu1 %v845_v0  ;;  %755 = vmatprep.mubr.msk.bf16.mxu1 %vm846_vm0, %v845_v0  ;;  %s145_s14 = scalar_lea.vmem %s979_s0, %s712_s11  ;;  %v155_v6 = vld [vmem:[%s148_s20] sm:$0x1]  ;;  %v159_v7 = vshrl.u32 %v158_v5, 7  ;;  %s946_s28 = scalar_lea.vmem %s981_s2, %s712_s11  ;;  %vm522_vm7 = vcmask 191616   ;;  %vm643_vm8 = vcmask 257216  }
   0xe   : > { %v154_v1 = vld [vmem:[%s145_s14] sm:$0xf]  ;;  %vm156_vm2 = vcmp.gt.f32.partialorder %v155_v6, 0.0  ;;  %s859_s4 = smov 8   ;;  %s860_s5 = smov 16  }
   0xf   : > { %v899_v2 = vcombine.low %v154_v1, %v154_v1  ;;  %v160_v8 = vsub.s32 0, %v159_v7  ;;  %v157_v10 = vsel %vm156_vm2, 1, %v850_v9  ;;  %s861_s6 = smov 24  }
  0x11   : > { %167 = vrot.lane.b32.xlu0 %v899_v2, %s847_s15  ;;  %230 = vrot.lane.b32.xlu1 %v899_v2, %s848_s16  ;;  %v161_v11 = vrot.slane %v157_v10, %v160_v8 }
  0x13   : > { %vm162_vm3 = vcmp.eq.s32.totalorder %v161_v11, 1 }
  0x14   : > { %v914_v13 = vsel %vm162_vm3, -1e+09, %v845_v0 }
  0x15   : > { %284 = vrot.lane.b32.xlu1 %v899_v2, %s849_s17 }
  0x83   : > { %v168_v3 = vpop.permute.xlu0 %167  ;;  %v231_v20 = vpop.permute.xlu1 %230 }
  0x84   : > { %v174_v4 = vsel %vm169_vm1, %v168_v3, 0  ;;  %v237_v21 = vsel %vm235_vm4, %v231_v20, 0 }
  0x85   : > { %748 = vmatpush3.bf16.xpose.msra.mxu0 %v174_v4  ;;  %754 = vmatpush3.bf16.msra.mxu1 %v237_v21 }
  0x86   : > { %765 = vmatprep.subr.bf16.mxu0 %v845_v0  ;;  %759 = vmatprep.subr.bf16.mxu1 %v845_v0 }
  0x87   : > { %v285_v27 = vpop.permute.xlu1 %284 }
  0x88   : > { %v290_v33 = vsel %vm169_vm1, %v285_v27, 0 }
  0x8c   : > { %750 = vmatmul.mubr.msk.bf16.vlgmr.msra.gmra.mxu0 %vm169_vm1, %v154_v1 }
  0x8d   : > { %767 = vmatprep.mubr.msk.bf16.mxu0 %vm846_vm0, %v845_v0 }
 0x14c   : > { %v210_v12 = vpop.f32.mrf.mxu0 }
 0x14d   : > { %v216_v14 = vmul.f32 0.35355338, %v210_v12 }
 0x14e   : > { %v751_v15 = vpop.f32.mrf.mxu0 }
 0x14f   : > { %v217_v16 = vadd.f32 %v216_v14, %v914_v13 }
 0x150   : > { %v213_v17 = vpop.f32.mrf.mxu0 }
 0x151   : > { %v218_v18 = vsel %vm169_vm1, %v217_v16, -inf }
 0x152   : > { %219 = vmax.xlane.f32.xlu0 %v218_v18  ;;  %v752_v19 = vpop.f32.mrf.mxu0 }
 0x168   : > { %526 = vrot.lane.b32.xlu0 %v899_v2, %s851_s21 }
 0x1db   : > { %v220_v22 = vpop.xlane.xlu0 %219 }
 0x1dc   : > { %v221_v23 = vsub.f32 %v217_v16, %v220_v22 }
 0x1de   : > { %v222_v24 = vmul.f32 1.442695, %v221_v23 }
 0x1df   : > { %v527_v36 = vpop.permute.xlu0 %526 }
 0x1e0   : > { %821 = vpow2.f32 %v222_v24  ;;  %v532_v38 = vsel %vm169_vm1, %v527_v36, 0 }
 0x1ed   : > { %v822_v25 = vpop.eup %821 }
 0x1ee   : > { %v224_v26 = vsel %vm169_vm1, %v822_v25, 0.0 }
 0x1ef   : > { %225 = vadd.xlane.f32.xlu1 %v224_v26 }
 0x200   : > { %282 = vrot.lane.b32.xlu1 %v899_v2, %s852_s22 }
 0x204   : > { %405 = vrot.lane.b32.xlu1 %v899_v2, %s853_s23 }
 0x208   : > { %403 = vrot.lane.b32.xlu1 %v899_v2, %s854_s24 }
 0x20c   : > { %524 = vrot.lane.b32.xlu1 %v899_v2, %s855_s25 }
 0x278   : > { %v226_v28 = vpop.xlane.xlu1 %225 }
 0x279   : > { %823 = vrcp.f32 %v226_v28 }
 0x27c   : > { %v283_v31 = vpop.permute.xlu1 %282 }
 0x280   : > { %v406_v34 = vpop.permute.xlu1 %405 }
 0x281   : > { %v411_v35 = vsel %vm169_vm1, %v406_v34, 0 }
 0x284   : > { %v404_v37 = vpop.permute.xlu1 %403 }
 0x286   : > { %v824_v29 = vpop.eup %823 }
 0x287   : > { %v228_v30 = vmul.f32 %v824_v29, %v822_v25 }
 0x288   : > { %v525_v39 = vpop.permute.xlu1 %524 }
 0x289   : > { %v229_v32 = vpack.c.bf16 %v228_v30, %v228_v30 }
 0x28b   : > { %756 = vmatmul.mubr.msk.bf16.vlgmr.msra.gmra.mxu1 %vm169_vm1, %v229_v32 }
 0x28c   : > { %760 = vmatpush3.bf16.xpose.msra.mxu1 %v290_v33  ;;  %761 = vmatprep.mubr.msk.bf16.mxu1 %vm846_vm0, %v845_v0 }
 0x28d   : > { %771 = vmatprep.subr.bf16.mxu1 %v845_v0 }
 0x293   : > { %762 = vmatmul.mubr.msk.bf16.vlgmr.msra.gmra.mxu1 %vm169_vm1, %v283_v31 }
 0x294   : > { %772 = vmatpush3.bf16.xpose.msra.mxu1 %v411_v35  ;;  %773 = vmatprep.mubr.msk.bf16.mxu1 %vm846_vm0, %v845_v0 }
 0x295   : > { %783 = vmatprep.subr.bf16.mxu1 %v845_v0 }
 0x29b   : > { %774 = vmatmul.mubr.msk.bf16.vlgmr.msra.gmra.mxu1 %vm169_vm1, %v404_v37 }
 0x29c   : > { %784 = vmatpush3.bf16.xpose.msra.mxu1 %v532_v38  ;;  %785 = vmatprep.mubr.msk.bf16.mxu1 %vm846_vm0, %v845_v0 }
 0x2a3   : > { %786 = vmatmul.mubr.msk.bf16.vlgmr.msra.gmra.mxu1 %vm169_vm1, %v525_v39 }
 0x34b   : > { %v273_v40 = vpop.f32.mrf.mxu1 }
 0x34c   : > { %v279_v41 = vpack.c.bf16 %v273_v40, %v273_v40 }
 0x34d   : > { %v757_v42 = vpop.f32.mrf.mxu1 }
 0x34e   : > { %281 = vst.msk [vmem:[%s946_s28] sm:$0xf] %vm280_vm5, %v279_v41 }
 0x34f   : > { %v276_v43 = vpop.f32.mrf.mxu1 }
 0x351   : > { %v758_v44 = vpop.f32.mrf.mxu1 }
 0x353   : > { %v326_v45 = vpop.f32.mrf.mxu1 }
 0x354   : > { %v332_v46 = vmul.f32 0.35355338, %v326_v45 }
 0x355   : > { %v763_v47 = vpop.f32.mrf.mxu1 }
 0x356   : > { %v333_v48 = vadd.f32 %v332_v46, %v914_v13 }
 0x357   : > { %v329_v49 = vpop.f32.mrf.mxu1 }
 0x358   : > { %v334_v50 = vsel %vm169_vm1, %v333_v48, -inf }
 0x359   : > { %335 = vmax.xlane.f32.xlu1 %v334_v50  ;;  %v764_v51 = vpop.f32.mrf.mxu1 }
 0x35b   : > { %v447_v52 = vpop.f32.mrf.mxu1 }
 0x35c   : > { %v453_v53 = vmul.f32 0.35355338, %v447_v52 }
 0x35d   : > { %v775_v54 = vpop.f32.mrf.mxu1 }
 0x35e   : > { %v454_v55 = vadd.f32 %v453_v53, %v914_v13 }
 0x35f   : > { %v450_v56 = vpop.f32.mrf.mxu1 }
 0x360   : > { %v455_v57 = vsel %vm169_vm1, %v454_v55, -inf }
 0x361   : > { %456 = vmax.xlane.f32.xlu0 %v455_v57  ;;  %v776_v58 = vpop.f32.mrf.mxu1 }
 0x363   : > { %v568_v59 = vpop.f32.mrf.mxu1 }
 0x364   : > { %v574_v60 = vmul.f32 0.35355338, %v568_v59 }
 0x365   : > { %v787_v61 = vpop.f32.mrf.mxu1 }
 0x366   : > { %v575_v62 = vadd.f32 %v574_v60, %v914_v13 }
 0x367   : > { %v571_v63 = vpop.f32.mrf.mxu1 }
 0x368   : > { %v576_v1 = vsel %vm169_vm1, %v575_v62, -inf }
 0x369   : > { %577 = vmax.xlane.f32.xlu1 %v576_v1  ;;  %v788_v3 = vpop.f32.mrf.mxu1 }
 0x3e2   : > { %v336_v4 = vpop.xlane.xlu1 %335 }
 0x3e3   : > { %v337_v5 = vsub.f32 %v333_v48, %v336_v4 }
 0x3e5   : > { %v338_v6 = vmul.f32 1.442695, %v337_v5 }
 0x3e7   : > { %825 = vpow2.f32 %v338_v6 }
 0x3ea   : > { %v457_v14 = vpop.xlane.xlu0 %456 }
 0x3eb   : > { %v458_v15 = vsub.f32 %v454_v55, %v457_v14 }
 0x3ed   : > { %v459_v16 = vmul.f32 1.442695, %v458_v15 }
 0x3f2   : > { %v578_v7 = vpop.xlane.xlu1 %577 }
 0x3f3   : > { %v579_v8 = vsub.f32 %v575_v62, %v578_v7 }
 0x3f4   : > { %v826_v9 = vpop.eup %825 }
 0x3f5   : > { %v580_v10 = vmul.f32 1.442695, %v579_v8  ;;  %v340_v11 = vsel %vm169_vm1, %v826_v9, 0.0 }
 0x3f6   : > { %341 = vadd.xlane.f32.xlu1 %v340_v11 }
 0x3f7   : > { %827 = vpow2.f32 %v580_v10 }
 0x3f8   : > { %829 = vpow2.f32 %v459_v16 }
 0x404   : > { %v828_v12 = vpop.eup %827 }
 0x405   : > { %v582_v13 = vsel %vm169_vm1, %v828_v12, 0.0  ;;  %v830_v17 = vpop.eup %829 }
 0x406   : > { %583 = vadd.xlane.f32.xlu0 %v582_v13  ;;  %v461_v18 = vsel %vm169_vm1, %v830_v17, 0.0 }
 0x407   : > { %346 = vrot.lane.b32.xlu1 %v899_v2, %s856_s29 }
 0x41c   : > { %467 = vrot.lane.b32.xlu0 %v899_v2, %s857_s30 }
 0x42b   : > { %462 = vadd.xlane.f32.xlu1 %v461_v18 }
 0x43c   : > { %588 = vrot.lane.b32.xlu1 %v899_v2, %s858_s3 }
 0x47f   : > { %v342_v19 = vpop.xlane.xlu1 %341 }
 0x480   : > { %831 = vrcp.f32 %v342_v19 }
 0x483   : > { %v347_v20 = vpop.permute.xlu1 %346 }
 0x484   : > { %v352_v21 = vsel %vm235_vm4, %v347_v20, 0 }
 0x485   : > { %766 = vmatpush3.bf16.msra.mxu0 %v352_v21 }
 0x486   : > { %777 = vmatprep.subr.bf16.mxu0 %v845_v0 }
 0x48d   : > { %v832_v22 = vpop.eup %831 }
 0x48e   : > { %v344_v23 = vmul.f32 %v832_v22, %v826_v9 }
 0x48f   : > { %v584_v24 = vpop.xlane.xlu0 %583 }
 0x490   : > { %v345_v25 = vpack.c.bf16 %v344_v23, %v344_v23 }
 0x492   : > { %768 = vmatmul.mubr.msk.bf16.vlgmr.msra.gmra.mxu0 %vm169_vm1, %v345_v25 }
 0x493   : > { %v468_v26 = vpop.permute.xlu0 %467  ;;  %779 = vmatprep.mubr.msk.bf16.mxu0 %vm846_vm0, %v845_v0 }
 0x494   : > { %v473_v2 = vsel %vm235_vm4, %v468_v26, 0 }
 0x495   : > { %778 = vmatpush3.bf16.msra.mxu0 %v473_v2 }
 0x496   : > { %789 = vmatprep.subr.bf16.mxu0 %v845_v0 }
 0x4b4   : > { %v463_v27 = vpop.xlane.xlu1 %462 }
 0x4b5   : > { %833 = vrcp.f32 %v463_v27 }
 0x4b6   : > { %835 = vrcp.f32 %v584_v24 }
 0x4b8   : > { %v589_v29 = vpop.permute.xlu1 %588 }
 0x4b9   : > { %v594_v31 = vsel %vm235_vm4, %v589_v29, 0 }
 0x4c2   : > { %v834_v28 = vpop.eup %833 }
 0x4c3   : > { %v465_v30 = vmul.f32 %v834_v28, %v830_v17  ;;  %v836_v33 = vpop.eup %835 }
 0x4c4   : > { %v586_v34 = vmul.f32 %v836_v33, %v828_v12 }
 0x4c5   : > { %v466_v32 = vpack.c.bf16 %v465_v30, %v465_v30 }
 0x4c6   : > { %v587_v35 = vpack.c.bf16 %v586_v34, %v586_v34 }
 0x4c7   : > { %780 = vmatmul.mubr.msk.bf16.vlgmr.msra.gmra.mxu0 %vm169_vm1, %v466_v32 }
 0x4c8   : > { %790 = vmatpush3.bf16.msra.mxu0 %v594_v31  ;;  %791 = vmatprep.mubr.msk.bf16.mxu0 %vm846_vm0, %v845_v0 }
 0x4cf   : > { %792 = vmatmul.mubr.msk.bf16.vlgmr.msra.gmra.mxu0 %vm169_vm1, %v587_v35 }
 0x552   : > { %v388_v36 = vpop.f32.mrf.mxu0 }
 0x553   : > { %v728_v37 = vpack.c.bf16 %v388_v36, %v388_v36 }
 0x554   : > { %v769_v38 = vpop.f32.mrf.mxu0 }
 0x555   : > { %398 = vrot.lane.b32.xlu1 %v728_v37, %s859_s4 }
 0x556   : > { %v391_v39 = vpop.f32.mrf.mxu0 }
 0x558   : > { %v770_v40 = vpop.f32.mrf.mxu0 }
 0x587   : > { %v509_v41 = vpop.f32.mrf.mxu0 }
 0x588   : > { %v729_v42 = vpack.c.bf16 %v509_v41, %v509_v41 }
 0x589   : > { %v781_v43 = vpop.f32.mrf.mxu0 }
 0x58a   : > { %519 = vrot.lane.b32.xlu0 %v729_v42, %s860_s5 }
 0x58b   : > { %v512_v44 = vpop.f32.mrf.mxu0 }
 0x58d   : > { %v782_v0 = vpop.f32.mrf.mxu0 }
 0x58f   : > { %v630_v45 = vpop.f32.mrf.mxu0 }
 0x590   : > { %v730_v46 = vpack.c.bf16 %v630_v45, %v630_v45 }
 0x591   : > { %v793_v47 = vpop.f32.mrf.mxu0 }
 0x592   : > { %640 = vrot.lane.b32.xlu1 %v730_v46, %s861_s6 }
 0x593   : > { %v633_v48 = vpop.f32.mrf.mxu0 }
 0x595   : > { %v794_v49 = vpop.f32.mrf.mxu0 }
 0x5c7   : > { %v399_v50 = vpop.permute.xlu1 %398 }
 0x5c8   : > { %402 = vst.msk [vmem:[%s946_s28] sm:$0xf] %vm401_vm6, %v399_v50 }
 0x5fc   : > { %v520_v51 = vpop.permute.xlu0 %519 }
 0x5fd   : > { %523 = vst.msk [vmem:[%s946_s28] sm:$0xf] %vm522_vm7, %v520_v51 }
 0x604   : > { %v641_v52 = vpop.permute.xlu1 %640 }
 0x605   : > { %644 = vst.msk [vmem:[%s946_s28] sm:$0xf] %vm643_vm8, %v641_v52 }
 0x606 PF: > { %s12_s9 = sadd.s32 1, %s843_s9  }
 0x607   : > { %p9_p4 = scmp.ge.s32.totalorder %s12_s9, 4  }
 0x609   :  { %11 = sbr.rel (!%p9_p4) target bundleno = 1 (0x1), region = 61 }

// kernel: transformer_forward.39
= control target key start
LH: loop header
LB: loop body
LE: loop exit
PB: predicated region body
PF: predicated region fallthrough
CT: control target
= control target key end

     0   :  { %v322_v0 = vmov 0.0   ;;  %vm323_vm0 = vmmov 0   ;;  %v174_v10 = vlaneseq  ;;  %v324_v27 = vmov 0   ;;  %s413_s1 = inlined_call_operand.vmem [shape: bf16[128,128], index: 1, kind: input, shape index: {}]   ;;  %s414_s0 = inlined_call_operand.vmem [shape: bf16[16,128], index: 0, kind: input, shape index: {}]   ;;  %s415_s3 = inlined_call_operand.vmem [shape: bf16[16,128], index: 3, kind: input, shape index: {}]   ;;  %s416_s2 = inlined_call_operand.vmem [shape: f32[1,128], index: 2, kind: input, shape index: {}]   ;;  %s417_s6 = inlined_call_operand.vmem [shape: f32[16,1], index: 6, kind: input, shape index: {}]   ;;  %s418_s4 = inlined_call_operand.vmem [shape: f32[1,128], index: 4, kind: input, shape index: {}]   ;;  %s419_s5 = inlined_call_operand.vmem [shape: f32[1,128], index: 5, kind: input, shape index: {}]   ;;  %s420_s7 = inlined_call_operand.vmem [shape: bf16[16,128], index: 7, kind: output, shape index: {}]  }
   0x1   :  { %284 = vmatprep.subr.bf16.mxu0 %v322_v0  ;;  %v309_v1 = vld [vmem:[%s413_s1 + $0x38] sm:$0xff]   ;;  %300 = vmatprep.mubr.msk.bf16.mxu0 %vm323_vm0, %v322_v0  ;;  %v310_v2 = vld [vmem:[%s413_s1 + $0x30] sm:$0xff]   ;;  %v311_v3 = vld [vmem:[%s413_s1 + $0x28] sm:$0xff]  }
   0x2   :  { %285 = vmatpush3.bf16.msra.mxu0 %v309_v1  ;;  %v312_v4 = vld [vmem:[%s413_s1 + $0x20] sm:$0xff]   ;;  %v313_v5 = vld [vmem:[%s413_s1 + $0x18] sm:$0xff]   ;;  %v314_v6 = vld [vmem:[%s413_s1 + $0x10] sm:$0xff]   ;;  %v175_v11 = vand.u32 127, %v174_v10  ;;  %307 = vset.pattern.permute.xlu0 %v324_v27 }
   0x3   :  { %286 = vmatprep.subr.bf16.mxu0 %v322_v0  ;;  %v315_v7 = vld [vmem:[%s413_s1 + $0x8] sm:$0xff]   ;;  %v316_v8 = vld [vmem:[%s413_s1] sm:$0xff]   ;;  %308 = vset.pattern.permute.xlu1 %v324_v27 }
   0x4   :  { %v317_v9 = vld [vmem:[%s414_s0] sm:$0xff]   ;;  %vm176_vm1 = vcmp.lt.s32.totalorder %v175_v11, 32  ;;  %v222_v39 = vld [vmem:[%s417_s6 + $0x8] sm:$0xff] }
   0x5   :  { %v267_v12 = vld [vmem:[%s415_s3] sm:$0xff]   ;;  %v259_v18 = vsel %vm176_vm1, 1.0, %v322_v0 }
   0x6   :  { %287 = vmatpush3.bf16.msra.mxu0 %v310_v2  ;;  %v258_v13 = vld [vmem:[%s416_s2] ss:$0 sm:$0xff]  ;;  %v268_v14 = vunpack.c.l.bf16 %v267_v12  ;;  %v269_v20 = vunpack.c.h.bf16 %v267_v12 }
   0x7   :  { %288 = vmatprep.subr.bf16.mxu0 %v322_v0  ;;  %v221_v28 = vld [vmem:[%s417_s6] sm:$0xff] }
   0x8   :  { %v260_v47 = vld [vmem:[%s418_s4] ss:$0 sm:$0xff] }
   0x9   :  { %v261_v51 = vld [vmem:[%s419_s5] ss:$0 sm:$0xff] }
   0xa   :  { %289 = vmatpush3.bf16.msra.mxu0 %v311_v3 }
   0xb   :  { %290 = vmatprep.subr.bf16.mxu0 %v322_v0 }
   0xe   :  { %291 = vmatpush3.bf16.msra.mxu0 %v312_v4 }
   0xf   :  { %292 = vmatprep.subr.bf16.mxu0 %v322_v0 }
  0x12   :  { %293 = vmatpush3.bf16.msra.mxu0 %v313_v5 }
  0x13   :  { %294 = vmatprep.subr.bf16.mxu0 %v322_v0 }
  0x16   :  { %295 = vmatpush3.bf16.msra.mxu0 %v314_v6 }
  0x17   :  { %296 = vmatprep.subr.bf16.mxu0 %v322_v0 }
  0x1a   :  { %297 = vmatpush3.bf16.msra.mxu0 %v315_v7 }
  0x1b   :  { %298 = vmatprep.subr.bf16.mxu0 %v322_v0 }
  0x1e   :  { %299 = vmatpush3.bf16.msra.mxu0 %v316_v8 }
  0x21   :  { %301 = vmatmul.mubr.bf16.vlgmr.msra.gmra.mxu0 %v317_v9 }
  0xe1   :  { %v141_v15 = vpop.f32.mrf.mxu0 }
  0xe2   :  { %v164_v16 = vadd.f32 %v258_v13, %v141_v15 }
  0xe3   :  { %v302_v17 = vpop.f32.mrf.mxu0 }
  0xe4   :  { %v170_v19 = vadd.f32 %v268_v14, %v164_v16 }
  0xe5   :  { %v144_v21 = vpop.f32.mrf.mxu0 }
  0xe6   :  { %v165_v22 = vadd.f32 %v258_v13, %v144_v21  ;;  %v179_v23 = vmul.f32 %v259_v18, %v170_v19 }
  0xe7   :  { %v303_v24 = vpop.f32.mrf.mxu0 }
  0xe8   :  { %v171_v25 = vadd.f32 %v269_v20, %v165_v22  ;;  %181 = vadd.xlane.f32.xlu0 %v179_v23 }
  0xea   :  { %v180_v26 = vmul.f32 %v259_v18, %v171_v25 }
  0xec   :  { %183 = vadd.xlane.f32.xlu0 %v180_v26 }
 0x102   :  { %225 = vperm.xlu0 %307, %v221_v28  }
 0x171   :  { %v182_v29 = vpop.xlane.xlu0 %181 }
 0x172   :  { %v185_v30 = vmul.f32 0.03125, %v182_v29 }
 0x174   :  { %v187_v31 = vsub.f32 %v179_v23, %v185_v30 }
 0x175   :  { %v184_v32 = vpop.xlane.xlu0 %183 }
 0x176   :  { %v186_v33 = vmul.f32 0.03125, %v184_v32  ;;  %v189_v34 = vmul.f32 %v259_v18, %v187_v31 }
 0x178   :  { %v188_v35 = vsub.f32 %v180_v26, %v186_v33  ;;  %v191_v36 = vmul.f32 %v189_v34, %v189_v34 }
 0x17a   :  { %193 = vadd.xlane.f32.xlu1 %v191_v36  ;;  %v190_v37 = vmul.f32 %v259_v18, %v188_v35 }
 0x17c   :  { %v192_v38 = vmul.f32 %v190_v37, %v190_v37 }
 0x17d   :  { %v226_v55 = vpop.permute.xlu0 %225 }
 0x17e   :  { %195 = vadd.xlane.f32.xlu1 %v192_v38 }
 0x18f   :  { %230 = vperm.xlu1 %308, %v222_v39  }
 0x203   :  { %v194_v40 = vpop.xlane.xlu1 %193 }
 0x204   :  { %v197_v41 = vmul.f32 0.03125, %v194_v40 }
 0x206   :  { %v199_v42 = vadd.f32 1e-06, %v197_v41 }
 0x207   :  { %v196_v43 = vpop.xlane.xlu1 %195 }
 0x208   :  { %318 = vrsqrt.f32 %v199_v42  ;;  %v198_v44 = vmul.f32 0.03125, %v196_v43 }
 0x20a   :  { %v200_v45 = vadd.f32 1e-06, %v198_v44 }
 0x20b   :  { %v231_v56 = vpop.permute.xlu1 %230 }
 0x20c   :  { %320 = vrsqrt.f32 %v200_v45 }
 0x215   :  { %v319_v46 = vpop.eup %318 }
 0x216   :  { %v203_v48 = vmul.f32 %v319_v46, %v189_v34 }
 0x218   :  { %v211_v49 = vmul.f32 %v260_v47, %v203_v48 }
 0x219   :  { %v321_v50 = vpop.eup %320 }
 0x21a   :  { %v204_v52 = vmul.f32 %v321_v50, %v190_v37  ;;  %v219_v53 = vadd.f32 %v261_v51, %v211_v49 }
 0x21c   :  { %v212_v54 = vmul.f32 %v260_v47, %v204_v52  ;;  %v233_v58 = vmul.f32 %v226_v55, %v219_v53 }
 0x21e   :  { %v220_v57 = vadd.f32 %v261_v51, %v212_v54 }
 0x220   :  { %v234_v59 = vmul.f32 %v231_v56, %v220_v57 }
 0x222   :  { %v273_v60 = vpack.c.bf16 %v234_v59, %v233_v58 }
 0x224   :  { %274 = vst [vmem:[%s420_s7] sm:$0xff] %v273_v60  }

// kernel: transformer_forward.40
= control target key start
LH: loop header
LB: loop body
LE: loop exit
PB: predicated region body
PF: predicated region fallthrough
CT: control target
= control target key end

     0   :  { %v229_v0 = vmov 0.0   ;;  %vm230_vm0 = vmmov 0   ;;  %s284_s1 = inlined_call_operand.vmem [shape: bf16[128,128], index: 1, kind: input, shape index: {}]   ;;  %s285_s0 = inlined_call_operand.vmem [shape: bf16[16,128], index: 0, kind: input, shape index: {}]   ;;  %s286_s2 = inlined_call_operand.vmem [shape: f32[1,128], index: 2, kind: input, shape index: {}]   ;;  %s287_s3 = inlined_call_operand.vmem [shape: bf16[16,128], index: 3, kind: output, shape index: {}]  }
   0x1   :  { %198 = vmatprep.subr.bf16.mxu0 %v229_v0  ;;  %v220_v1 = vld [vmem:[%s284_s1 + $0x38] sm:$0xff]   ;;  %214 = vmatprep.mubr.msk.bf16.mxu0 %vm230_vm0, %v229_v0  ;;  %v221_v2 = vld [vmem:[%s284_s1 + $0x30] sm:$0xff]   ;;  %v222_v3 = vld [vmem:[%s284_s1 + $0x28] sm:$0xff]  }
   0x2   :  { %199 = vmatpush3.bf16.msra.mxu0 %v220_v1  ;;  %v223_v4 = vld [vmem:[%s284_s1 + $0x20] sm:$0xff]   ;;  %v224_v5 = vld [vmem:[%s284_s1 + $0x18] sm:$0xff]   ;;  %v225_v6 = vld [vmem:[%s284_s1 + $0x10] sm:$0xff]  }
   0x3   :  { %200 = vmatprep.subr.bf16.mxu0 %v229_v0  ;;  %v226_v7 = vld [vmem:[%s284_s1 + $0x8] sm:$0xff]   ;;  %v227_v8 = vld [vmem:[%s284_s1] sm:$0xff]  }
   0x4   :  { %v228_v9 = vld [vmem:[%s285_s0] sm:$0xff]  }
   0x5   :  { %v179_v11 = vld [vmem:[%s286_s2] ss:$0 sm:$0xff] }
   0x6   :  { %201 = vmatpush3.bf16.msra.mxu0 %v221_v2 }
   0x7   :  { %202 = vmatprep.subr.bf16.mxu0 %v229_v0 }
   0xa   :  { %203 = vmatpush3.bf16.msra.mxu0 %v222_v3 }
   0xb   :  { %204 = vmatprep.subr.bf16.mxu0 %v229_v0 }
   0xe   :  { %205 = vmatpush3.bf16.msra.mxu0 %v223_v4 }
   0xf   :  { %206 = vmatprep.subr.bf16.mxu0 %v229_v0 }
  0x12   :  { %207 = vmatpush3.bf16.msra.mxu0 %v224_v5 }
  0x13   :  { %208 = vmatprep.subr.bf16.mxu0 %v229_v0 }
  0x16   :  { %209 = vmatpush3.bf16.msra.mxu0 %v225_v6 }
  0x17   :  { %210 = vmatprep.subr.bf16.mxu0 %v229_v0 }
  0x1a   :  { %211 = vmatpush3.bf16.msra.mxu0 %v226_v7 }
  0x1b   :  { %212 = vmatprep.subr.bf16.mxu0 %v229_v0 }
  0x1e   :  { %213 = vmatpush3.bf16.msra.mxu0 %v227_v8 }
  0x21   :  { %215 = vmatmul.mubr.bf16.vlgmr.msra.gmra.mxu0 %v228_v9 }
  0xe1   :  { %v129_v10 = vpop.f32.mrf.mxu0 }
  0xe2   :  { %v152_v13 = vadd.f32 %v179_v11, %v129_v10 }
  0xe3   :  { %v216_v12 = vpop.f32.mrf.mxu0 }
  0xe4   :  { %v154_v17 = vmax.f32 %v152_v13, 0.0 }
  0xe5   :  { %v132_v14 = vpop.f32.mrf.mxu0 }
  0xe6   :  { %v153_v15 = vadd.f32 %v179_v11, %v132_v14 }
  0xe7   :  { %v217_v16 = vpop.f32.mrf.mxu0 }
  0xe8   :  { %v155_v18 = vmax.f32 %v153_v15, 0.0 }
  0xea   :  { %v187_v19 = vpack.c.bf16 %v155_v18, %v154_v17 }
  0xec   :  { %188 = vst [vmem:[%s287_s3] sm:$0xff] %v187_v19  }

// kernel: transformer_forward.50
= control target key start
LH: loop header
LB: loop body
LE: loop exit
PB: predicated region body
PF: predicated region fallthrough
CT: control target
= control target key end

     0   :  { %s883_s9 = smov 0   ;;  %s985_s0 = inlined_call_operand.vmem [shape: bf16[2,8,96], index: 0, kind: input, shape index: {}]   ;;  %s986_s1 = inlined_call_operand.vmem [shape: f32[2,1,8], index: 1, kind: input, shape index: {}]   ;;  %s987_s2 = inlined_call_operand.vmem [shape: bf16[2,8,32], index: 2, kind: output, shape index: {}]  }
   0x1 LB: > { %s713_s10 = sadd.s32 4294967295, %s849_s9   ;;  %p717_p0 = scmp.ge.s32.totalorder %s849_s9, 1  ;;  %s849_s9 = sphi %s883_s9, %s12_s9  }
   0x2   : > { %p119_p1 = scmp.lt.s32.totalorder %s849_s9, 3 }
   0x4   : > { %p120_p2 = pnand %p717_p0, %p119_p1 }
   0x5   : > { %p142_p3 = scmp.lt.s32.totalorder (!%p120_p2), %s713_s10, 1  ;;  %s853_s15 = smov (!%p120_p2), 96  }
   0x6   : > { %123 = sbr.rel (%p120_p2) target bundleno = 1542 (0x606), region = 28  ;;  %s854_s16 = smov (!%p120_p2), 64  }
   0x7   : > { %s855_s17 = smov (!%p120_p2), 88   ;;  %s857_s21 = smov (!%p120_p2), 72  }
   0x8   : > { %s858_s22 = smov (!%p120_p2), 120   ;;  %s859_s23 = smov (!%p120_p2), 80  }
   0x9   : > { %s860_s24 = smov (!%p120_p2), 112   ;;  %s861_s25 = smov (!%p120_p2), 104  }
   0xa   : > { %s862_s29 = smov (!%p120_p2), 56   ;;  %s863_s30 = smov (!%p120_p2), 48  }
   0xb   : > { %v851_v0 = vmov 0.0   ;;  %vm852_vm0 = vmmov 0   ;;  %s989_s10 = smov (!%p142_p3, %s713_s10), 1  ;;  %vm175_vm1 = vcmask 64512   ;;  %v158_v5 = vlaneseq  ;;  %s864_s3 = smov 40  }
   0xc   : > { %753 = vmatprep.subr.bf16.mxu0 %v851_v0  ;;  %755 = vmatprep.mubr.msk.bf16.mxu0 %vm852_vm0, %v851_v0  ;;  %s718_s11 = sshll.u32 %s989_s10, 2  ;;  %s148_s20 = scalar_lea.vmem %s986_s1, %s989_s10  ;;  %v856_v9 = vmov 0   ;;  %vm241_vm6 = vcmask 1043456   ;;  %vm286_vm7 = vcmask 60416   ;;  %vm407_vm8 = vcmask 126016  }
   0xd   : > { %759 = vmatprep.subr.bf16.mxu1 %v851_v0  ;;  %761 = vmatprep.mubr.msk.bf16.mxu1 %vm852_vm0, %v851_v0  ;;  %s145_s14 = scalar_lea.vmem %s985_s0, %s718_s11  ;;  %v155_v6 = vld [vmem:[%s148_s20] sm:$0x1]  ;;  %v159_v7 = vshrl.u32 %v158_v5, 7  ;;  %v166_v12 = vand.u32 127, %v158_v5  ;;  %s952_s28 = scalar_lea.vmem %s987_s2, %s718_s11  ;;  %vm528_vm9 = vcmask 191616   ;;  %vm649_vm10 = vcmask 257216  }
   0xe   : > { %v154_v1 = vld [vmem:[%s145_s14] sm:$0xf]  ;;  %vm156_vm2 = vcmp.gt.f32.partialorder %v155_v6, 0.0  ;;  %s865_s4 = smov 8   ;;  %s866_s5 = smov 16  }
   0xf   : > { %v905_v2 = vcombine.low %v154_v1, %v154_v1  ;;  %v160_v8 = vsub.s32 0, %v159_v7  ;;  %v157_v10 = vsel %vm156_vm2, 1, %v856_v9  ;;  %vm167_vm4 = vcmp.gt.s32.totalorder %v166_v12, %v159_v7  ;;  %s867_s6 = smov 24  }
  0x11   : > { %173 = vrot.lane.b32.xlu0 %v905_v2, %s853_s15  ;;  %236 = vrot.lane.b32.xlu1 %v905_v2, %s854_s16  ;;  %v161_v11 = vrot.slane %v157_v10, %v160_v8 }
  0x13   : > { %vm162_vm3 = vcmp.eq.s32.totalorder %v161_v11, 1 }
  0x14   : > { %vm168_vm5 = vmor %vm162_vm3, %vm167_vm4 }
  0x15   : > { %290 = vrot.lane.b32.xlu1 %v905_v2, %s855_s17  ;;  %v920_v14 = vsel %vm168_vm5, -1e+09, %v851_v0 }
  0x83   : > { %v174_v3 = vpop.permute.xlu0 %173  ;;  %v237_v21 = vpop.permute.xlu1 %236 }
  0x84   : > { %v180_v4 = vsel %vm175_vm1, %v174_v3, 0  ;;  %v243_v22 = vsel %vm241_vm6, %v237_v21, 0 }
  0x85   : > { %754 = vmatpush3.bf16.xpose.msra.mxu0 %v180_v4  ;;  %760 = vmatpush3.bf16.msra.mxu1 %v243_v22 }
  0x86   : > { %771 = vmatprep.subr.bf16.mxu0 %v851_v0  ;;  %765 = vmatprep.subr.bf16.mxu1 %v851_v0 }
  0x87   : > { %v291_v28 = vpop.permute.xlu1 %290 }
  0x88   : > { %v296_v34 = vsel %vm175_vm1, %v291_v28, 0 }
  0x8c   : > { %756 = vmatmul.mubr.msk.bf16.vlgmr.msra.gmra.mxu0 %vm175_vm1, %v154_v1 }
  0x8d   : > { %773 = vmatprep.mubr.msk.bf16.mxu0 %vm852_vm0, %v851_v0 }
 0x14c   : > { %v216_v13 = vpop.f32.mrf.mxu0 }
 0x14d   : > { %v222_v15 = vmul.f32 0.35355338, %v216_v13 }
 0x14e   : > { %v757_v16 = vpop.f32.mrf.mxu0 }
 0x14f   : > { %v223_v17 = vadd.f32 %v222_v15, %v920_v14 }
 0x150   : > { %v219_v18 = vpop.f32.mrf.mxu0 }
 0x151   : > { %v224_v19 = vsel %vm175_vm1, %v223_v17, -inf }
 0x152   : > { %225 = vmax.xlane.f32.xlu0 %v224_v19  ;;  %v758_v20 = vpop.f32.mrf.mxu0 }
 0x168   : > { %532 = vrot.lane.b32.xlu0 %v905_v2, %s857_s21 }
 0x1db   : > { %v226_v23 = vpop.xlane.xlu0 %225 }
 0x1dc   : > { %v227_v24 = vsub.f32 %v223_v17, %v226_v23 }
 0x1de   : > { %v228_v25 = vmul.f32 1.442695, %v227_v24 }
 0x1df   : > { %v533_v37 = vpop.permute.xlu0 %532 }
 0x1e0   : > { %827 = vpow2.f32 %v228_v25  ;;  %v538_v39 = vsel %vm175_vm1, %v533_v37, 0 }
 0x1ed   : > { %v828_v26 = vpop.eup %827 }
 0x1ee   : > { %v230_v27 = vsel %vm175_vm1, %v828_v26, 0.0 }
 0x1ef   : > { %231 = vadd.xlane.f32.xlu1 %v230_v27 }
 0x200   : > { %288 = vrot.lane.b32.xlu1 %v905_v2, %s858_s22 }
 0x204   : > { %411 = vrot.lane.b32.xlu1 %v905_v2, %s859_s23 }
 0x208   : > { %409 = vrot.lane.b32.xlu1 %v905_v2, %s860_s24 }
 0x20c   : > { %530 = vrot.lane.b32.xlu1 %v905_v2, %s861_s25 }
 0x278   : > { %v232_v29 = vpop.xlane.xlu1 %231 }
 0x279   : > { %829 = vrcp.f32 %v232_v29 }
 0x27c   : > { %v289_v32 = vpop.permute.xlu1 %288 }
 0x280   : > { %v412_v35 = vpop.permute.xlu1 %411 }
 0x281   : > { %v417_v36 = vsel %vm175_vm1, %v412_v35, 0 }
 0x284   : > { %v410_v38 = vpop.permute.xlu1 %409 }
 0x286   : > { %v830_v30 = vpop.eup %829 }
 0x287   : > { %v234_v31 = vmul.f32 %v830_v30, %v828_v26 }
 0x288   : > { %v531_v40 = vpop.permute.xlu1 %530 }
 0x289   : > { %v235_v33 = vpack.c.bf16 %v234_v31, %v234_v31 }
 0x28b   : > { %762 = vmatmul.mubr.msk.bf16.vlgmr.msra.gmra.mxu1 %vm175_vm1, %v235_v33 }
 0x28c   : > { %766 = vmatpush3.bf16.xpose.msra.mxu1 %v296_v34  ;;  %767 = vmatprep.mubr.msk.bf16.mxu1 %vm852_vm0, %v851_v0 }
 0x28d   : > { %777 = vmatprep.subr.bf16.mxu1 %v851_v0 }
 0x293   : > { %768 = vmatmul.mubr.msk.bf16.vlgmr.msra.gmra.mxu1 %vm175_vm1, %v289_v32 }
 0x294   : > { %778 = vmatpush3.bf16.xpose.msra.mxu1 %v417_v36  ;;  %779 = vmatprep.mubr.msk.bf16.mxu1 %vm852_vm0, %v851_v0 }
 0x295   : > { %789 = vmatprep.subr.bf16.mxu1 %v851_v0 }
 0x29b   : > { %780 = vmatmul.mubr.msk.bf16.vlgmr.msra.gmra.mxu1 %vm175_vm1, %v410_v38 }
 0x29c   : > { %790 = vmatpush3.bf16.xpose.msra.mxu1 %v538_v39  ;;  %791 = vmatprep.mubr.msk.bf16.mxu1 %vm852_vm0, %v851_v0 }
 0x2a3   : > { %792 = vmatmul.mubr.msk.bf16.vlgmr.msra.gmra.mxu1 %vm175_vm1, %v531_v40 }
 0x34b   : > { %v279_v41 = vpop.f32.mrf.mxu1 }
 0x34c   : > { %v285_v42 = vpack.c.bf16 %v279_v41, %v279_v41 }
 0x34d   : > { %v763_v43 = vpop.f32.mrf.mxu1 }
 0x34e   : > { %287 = vst.msk [vmem:[%s952_s28] sm:$0xf] %vm286_vm7, %v285_v42 }
 0x34f   : > { %v282_v44 = vpop.f32.mrf.mxu1 }
 0x351   : > { %v764_v45 = vpop.f32.mrf.mxu1 }
 0x353   : > { %v332_v46 = vpop.f32.mrf.mxu1 }
 0x354   : > { %v338_v47 = vmul.f32 0.35355338, %v332_v46 }
 0x355   : > { %v769_v48 = vpop.f32.mrf.mxu1 }
 0x356   : > { %v339_v49 = vadd.f32 %v338_v47, %v920_v14 }
 0x357   : > { %v335_v50 = vpop.f32.mrf.mxu1 }
 0x358   : > { %v340_v51 = vsel %vm175_vm1, %v339_v49, -inf }
 0x359   : > { %341 = vmax.xlane.f32.xlu1 %v340_v51  ;;  %v770_v52 = vpop.f32.mrf.mxu1 }
 0x35b   : > { %v453_v53 = vpop.f32.mrf.mxu1 }
 0x35c   : > { %v459_v54 = vmul.f32 0.35355338, %v453_v53 }
 0x35d   : > { %v781_v55 = vpop.f32.mrf.mxu1 }
 0x35e   : > { %v460_v56 = vadd.f32 %v459_v54, %v920_v14 }
 0x35f   : > { %v456_v57 = vpop.f32.mrf.mxu1 }
 0x360   : > { %v461_v58 = vsel %vm175_vm1, %v460_v56, -inf }
 0x361   : > { %462 = vmax.xlane.f32.xlu0 %v461_v58  ;;  %v782_v59 = vpop.f32.mrf.mxu1 }
 0x363   : > { %v574_v60 = vpop.f32.mrf.mxu1 }
 0x364   : > { %v580_v61 = vmul.f32 0.35355338, %v574_v60 }
 0x365   : > { %v793_v62 = vpop.f32.mrf.mxu1 }
 0x366   : > { %v581_v63 = vadd.f32 %v580_v61, %v920_v14 }
 0x367   : > { %v577_v1 = vpop.f32.mrf.mxu1 }
 0x368   : > { %v582_v3 = vsel %vm175_vm1, %v581_v63, -inf }
 0x369   : > { %583 = vmax.xlane.f32.xlu1 %v582_v3  ;;  %v794_v4 = vpop.f32.mrf.mxu1 }
 0x3e2   : > { %v342_v5 = vpop.xlane.xlu1 %341 }
 0x3e3   : > { %v343_v6 = vsub.f32 %v339_v49, %v342_v5 }
 0x3e5   : > { %v344_v7 = vmul.f32 1.442695, %v343_v6 }
 0x3e7   : > { %831 = vpow2.f32 %v344_v7 }
 0x3ea   : > { %v463_v15 = vpop.xlane.xlu0 %462 }
 0x3eb   : > { %v464_v16 = vsub.f32 %v460_v56, %v463_v15 }
 0x3ed   : > { %v465_v17 = vmul.f32 1.442695, %v464_v16 }
 0x3f2   : > { %v584_v8 = vpop.xlane.xlu1 %583 }
 0x3f3   : > { %v585_v9 = vsub.f32 %v581_v63, %v584_v8 }
 0x3f4   : > { %v832_v10 = vpop.eup %831 }
 0x3f5   : > { %v586_v11 = vmul.f32 1.442695, %v585_v9  ;;  %v346_v12 = vsel %vm175_vm1, %v832_v10, 0.0 }
 0x3f6   : > { %347 = vadd.xlane.f32.xlu1 %v346_v12 }
 0x3f7   : > { %833 = vpow2.f32 %v586_v11 }
 0x3f8   : > { %835 = vpow2.f32 %v465_v17 }
 0x404   : > { %v834_v13 = vpop.eup %833 }
 0x405   : > { %v588_v14 = vsel %vm175_vm1, %v834_v13, 0.0  ;;  %v836_v18 = vpop.eup %835 }
 0x406   : > { %589 = vadd.xlane.f32.xlu0 %v588_v14  ;;  %v467_v19 = vsel %vm175_vm1, %v836_v18, 0.0 }
 0x407   : > { %352 = vrot.lane.b32.xlu1 %v905_v2, %s862_s29 }
 0x41c   : > { %473 = vrot.lane.b32.xlu0 %v905_v2, %s863_s30 }
 0x42b   : > { %468 = vadd.xlane.f32.xlu1 %v467_v19 }
 0x43c   : > { %594 = vrot.lane.b32.xlu1 %v905_v2, %s864_s3 }
 0x47f   : > { %v348_v20 = vpop.xlane.xlu1 %347 }
 0x480   : > { %837 = vrcp.f32 %v348_v20 }
 0x483   : > { %v353_v21 = vpop.permute.xlu1 %352 }
 0x484   : > { %v358_v22 = vsel %vm241_vm6, %v353_v21, 0 }
 0x485   : > { %772 = vmatpush3.bf16.msra.mxu0 %v358_v22 }
 0x486   : > { %783 = vmatprep.subr.bf16.mxu0 %v851_v0 }
 0x48d   : > { %v838_v23 = vpop.eup %837 }
 0x48e   : > { %v350_v24 = vmul.f32 %v838_v23, %v832_v10 }
 0x48f   : > { %v590_v25 = vpop.xlane.xlu0 %589 }
 0x490   : > { %v351_v26 = vpack.c.bf16 %v350_v24, %v350_v24 }
 0x492   : > { %774 = vmatmul.mubr.msk.bf16.vlgmr.msra.gmra.mxu0 %vm175_vm1, %v351_v26 }
 0x493   : > { %v474_v27 = vpop.permute.xlu0 %473  ;;  %785 = vmatprep.mubr.msk.bf16.mxu0 %vm852_vm0, %v851_v0 }
 0x494   : > { %v479_v2 = vsel %vm241_vm6, %v474_v27, 0 }
 0x495   : > { %784 = vmatpush3.bf16.msra.mxu0 %v479_v2 }
 0x496   : > { %795 = vmatprep.subr.bf16.mxu0 %v851_v0 }
 0x4b4   : > { %v469_v28 = vpop.xlane.xlu1 %468 }
 0x4b5   : > { %839 = vrcp.f32 %v469_v28 }
 0x4b6   : > { %841 = vrcp.f32 %v590_v25 }
 0x4b8   : > { %v595_v30 = vpop.permute.xlu1 %594 }
 0x4b9   : > { %v600_v32 = vsel %vm241_vm6, %v595_v30, 0 }
 0x4c2   : > { %v840_v29 = vpop.eup %839 }
 0x4c3   : > { %v471_v31 = vmul.f32 %v840_v29, %v836_v18  ;;  %v842_v34 = vpop.eup %841 }
 0x4c4   : > { %v592_v35 = vmul.f32 %v842_v34, %v834_v13 }
 0x4c5   : > { %v472_v33 = vpack.c.bf16 %v471_v31, %v471_v31 }
 0x4c6   : > { %v593_v36 = vpack.c.bf16 %v592_v35, %v592_v35 }
 0x4c7   : > { %786 = vmatmul.mubr.msk.bf16.vlgmr.msra.gmra.mxu0 %vm175_vm1, %v472_v33 }
 0x4c8   : > { %796 = vmatpush3.bf16.msra.mxu0 %v600_v32  ;;  %797 = vmatprep.mubr.msk.bf16.mxu0 %vm852_vm0, %v851_v0 }
 0x4cf   : > { %798 = vmatmul.mubr.msk.bf16.vlgmr.msra.gmra.mxu0 %vm175_vm1, %v593_v36 }
 0x552   : > { %v394_v37 = vpop.f32.mrf.mxu0 }
 0x553   : > { %v734_v38 = vpack.c.bf16 %v394_v37, %v394_v37 }
 0x554   : > { %v775_v39 = vpop.f32.mrf.mxu0 }
 0x555   : > { %404 = vrot.lane.b32.xlu1 %v734_v38, %s865_s4 }
 0x556   : > { %v397_v40 = vpop.f32.mrf.mxu0 }
 0x558   : > { %v776_v41 = vpop.f32.mrf.mxu0 }
 0x587   : > { %v515_v42 = vpop.f32.mrf.mxu0 }
 0x588   : > { %v735_v43 = vpack.c.bf16 %v515_v42, %v515_v42 }
 0x589   : > { %v787_v44 = vpop.f32.mrf.mxu0 }
 0x58a   : > { %525 = vrot.lane.b32.xlu0 %v735_v43, %s866_s5 }
 0x58b   : > { %v518_v45 = vpop.f32.mrf.mxu0 }
 0x58d   : > { %v788_v0 = vpop.f32.mrf.mxu0 }
 0x58f   : > { %v636_v46 = vpop.f32.mrf.mxu0 }
 0x590   : > { %v736_v47 = vpack.c.bf16 %v636_v46, %v636_v46 }
 0x591   : > { %v799_v48 = vpop.f32.mrf.mxu0 }
 0x592   : > { %646 = vrot.lane.b32.xlu1 %v736_v47, %s867_s6 }
 0x593   : > { %v639_v49 = vpop.f32.mrf.mxu0 }
 0x595   : > { %v800_v50 = vpop.f32.mrf.mxu0 }
 0x5c7   : > { %v405_v51 = vpop.permute.xlu1 %404 }
 0x5c8   : > { %408 = vst.msk [vmem:[%s952_s28] sm:$0xf] %vm407_vm8, %v405_v51 }
 0x5fc   : > { %v526_v52 = vpop.permute.xlu0 %525 }
 0x5fd   : > { %529 = vst.msk [vmem:[%s952_s28] sm:$0xf] %vm528_vm9, %v526_v52 }
 0x604   : > { %v647_v53 = vpop.permute.xlu1 %646 }
 0x605   : > { %650 = vst.msk [vmem:[%s952_s28] sm:$0xf] %vm649_vm10, %v647_v53 }
 0x606 PF: > { %s12_s9 = sadd.s32 1, %s849_s9  }
 0x607   : > { %p9_p4 = scmp.ge.s32.totalorder %s12_s9, 4  }
 0x609   :  { %11 = sbr.rel (!%p9_p4) target bundleno = 1 (0x1), region = 61 }

// kernel: transformer_forward.48
= control target key start
LH: loop header
LB: loop body
LE: loop exit
PB: predicated region body
PF: predicated region fallthrough
CT: control target
= control target key end

     0   :  { %s343_s15 = smov 0   ;;  %s372_s0 = inlined_call_operand.vmem [shape: bf16[2,8,128], index: 0, kind: input, shape index: {}]   ;;  %s373_s1 = inlined_call_operand.vmem [shape: f32[1,8,128], index: 1, kind: input, shape index: {}]   ;;  %s374_s2 = inlined_call_operand.vmem [shape: f32[1,1,128], index: 2, kind: input, shape index: {}]   ;;  %s375_s3 = inlined_call_operand.vmem [shape: f32[1,1,128], index: 3, kind: input, shape index: {}]   ;;  %s376_s4 = inlined_call_operand.vmem [shape: bf16[2,8,128], index: 4, kind: output, shape index: {}]  }
   0x1 LB: > { %s286_s16 = sadd.s32 4294967295, %s315_s15   ;;  %p290_p0 = scmp.ge.s32.totalorder %s315_s15, 1  ;;  %s315_s15 = sphi %s343_s15, %s14_s15  }
   0x2   : > { %p161_p1 = scmp.lt.s32.totalorder %s315_s15, 3 }
   0x4   : > { %p162_p2 = pnand %p290_p0, %p161_p1 }
   0x5   : > { %p185_p3 = scmp.lt.s32.totalorder (!%p162_p2), %s286_s16, 1 }
   0x6   : > { %165 = sbr.rel (%p162_p2) target bundleno = 332 (0x14c), region = 36 }
   0xb   : > { %v199_v0 = vlaneseq  ;;  %s378_s16 = smov (!%p185_p3, %s286_s16), 1  ;;  %v195_v3 = vld [vmem:[%s373_s1] sm:$0xff]  ;;  %v317_v5 = vmov 0.0  }
   0xc   : > { %s291_s17 = sshll.u32 %s378_s16, 2  ;;  %v294_v18 = vld [vmem:[%s374_s2] ss:$0 sm:$0xff] }
   0xd   : > { %v200_v1 = vand.u32 127, %v199_v0  ;;  %s188_s20 = scalar_lea.vmem %s372_s0, %s291_s17  ;;  %v295_v20 = vld [vmem:[%s375_s3] ss:$0 sm:$0xff]  ;;  %s192_s29 = scalar_lea.vmem %s376_s4, %s291_s17 }
   0xe   : > { %v193_v2 = vld [vmem:[%s188_s20] sm:$0xf] }
   0xf   : > { %vm201_vm0 = vcmp.lt.s32.totalorder %v200_v1, 32  ;;  %v194_v4 = vunpack.c.l.bf16 %v193_v2 }
  0x10   : > { %v293_v6 = vsel %vm201_vm0, 1.0, %v317_v5 }
  0x11   : > { %v196_v7 = vadd.f32 %v195_v3, %v194_v4 }
  0x13   : > { %v204_v8 = vmul.f32 %v293_v6, %v196_v7 }
  0x15   : > { %205 = vadd.xlane.f32.xlu0 %v204_v8 }
  0x9e   : > { %v206_v9 = vpop.xlane.xlu0 %205 }
  0x9f   : > { %v207_v10 = vmul.f32 0.03125, %v206_v9 }
  0xa1   : > { %v208_v11 = vsub.f32 %v204_v8, %v207_v10 }
  0xa3   : > { %v209_v12 = vmul.f32 %v293_v6, %v208_v11 }
  0xa5   : > { %v210_v13 = vmul.f32 %v209_v12, %v209_v12 }
  0xa7   : > { %211 = vadd.xlane.f32.xlu0 %v210_v13 }
 0x130   : > { %v212_v14 = vpop.xlane.xlu0 %211 }
 0x131   : > { %v213_v15 = vmul.f32 0.03125, %v212_v14 }
 0x133   : > { %v214_v16 = vadd.f32 1e-06, %v213_v15 }
 0x135   : > { %307 = vrsqrt.f32 %v214_v16 }
 0x142   : > { %v308_v17 = vpop.eup %307 }
 0x143   : > { %v216_v19 = vmul.f32 %v308_v17, %v209_v12 }
 0x145   : > { %v223_v21 = vmul.f32 %v294_v18, %v216_v19 }
 0x147   : > { %v230_v22 = vadd.f32 %v295_v20, %v223_v21 }
 0x149   : > { %v231_v23 = vpack.c.bf16 %v230_v22, %v230_v22 }
 0x14b   : > { %232 = vst [vmem:[%s192_s29] sm:$0xf] %v231_v23 }
 0x14c PF: > { %s14_s15 = sadd.s32 1, %s315_s15  }
 0x14d   : > { %p11_p4 = scmp.ge.s32.totalorder %s14_s15, 4  }
 0x14f   :  { %13 = sbr.rel (!%p11_p4) target bundleno = 1 (0x1), region = 66 }

// kernel: transformer_forward.54
= control target key start
LH: loop header
LB: loop body
LE: loop exit
PB: predicated region body
PF: predicated region fallthrough
CT: control target
= control target key end

     0   :  { %s935_s12 = smov 0   ;;  %s1033_s0 = inlined_call_operand.vmem [shape: bf16[2,8,32], index: 0, kind: input, shape index: {}]   ;;  %s1034_s1 = inlined_call_operand.vmem [shape: bf16[2,8,64], index: 1, kind: input, shape index: {}]   ;;  %s1035_s2 = inlined_call_operand.vmem [shape: f32[2,1,8], index: 2, kind: input, shape index: {}]   ;;  %s1036_s3 = inlined_call_operand.vmem [shape: bf16[2,8,32], index: 3, kind: output, shape index: {}]  }
   0x1 LB: > { %s765_s13 = sadd.s32 4294967295, %s900_s12   ;;  %p769_p0 = scmp.ge.s32.totalorder %s900_s12, 1  ;;  %s900_s12 = sphi %s935_s12, %s13_s12  }
   0x2   : > { %p153_p1 = scmp.lt.s32.totalorder %s900_s12, 3 }
   0x4   : > { %p154_p2 = pnand %p769_p0, %p153_p1 }
   0x5   : > { %p182_p3 = scmp.lt.s32.totalorder (!%p154_p2), %s765_s13, 1  ;;  %s905_s24 = smov (!%p154_p2), 96  }
   0x6   : > { %157 = sbr.rel (%p154_p2) target bundleno = 1380 (0x564), region = 32  ;;  %s906_s25 = smov (!%p154_p2), 120  }
   0x7   : > { %s907_s26 = smov (!%p154_p2), 112   ;;  %s908_s27 = smov (!%p154_p2), 104  }
   0x8   : > { %s909_s4 = smov (!%p154_p2), 88   ;;  %s910_s5 = smov (!%p154_p2), 72  }
   0x9   : > { %s911_s6 = smov (!%p154_p2), 80   ;;  %s912_s7 = smov (!%p154_p2), 8  }
   0xa   : > { %s913_s8 = smov (!%p154_p2), 16   ;;  %s914_s9 = smov (!%p154_p2), 24  }
   0xb   : > { %v902_v0 = vmov 0.0   ;;  %vm903_vm0 = vmmov 0   ;;  %s1038_s13 = smov (!%p182_p3, %s765_s13), 1  ;;  %vm209_vm1 = vcmask 64512   ;;  %v203_v4 = vlaneseq }
   0xc   : > { %807 = vmatprep.subr.bf16.mxu0 %v902_v0  ;;  %809 = vmatprep.mubr.msk.bf16.mxu0 %vm903_vm0, %v902_v0  ;;  %s949_s14 = sshll.u32 %s1038_s13, 2  ;;  %s192_s23 = scalar_lea.vmem %s1035_s2, %s1038_s13  ;;  %v904_v8 = vmov 0   ;;  %vm278_vm4 = vcmask 1043456   ;;  %vm323_vm5 = vcmask 60416   ;;  %vm447_vm6 = vcmask 126016  }
   0xd   : > { %813 = vmatprep.subr.bf16.mxu1 %v902_v0  ;;  %815 = vmatprep.mubr.msk.bf16.mxu1 %vm903_vm0, %v902_v0  ;;  %s189_s17 = scalar_lea.vmem %s1034_s1, %s949_s14  ;;  %s185_s20 = scalar_lea.vmem %s1033_s0, %s949_s14  ;;  %v200_v5 = vld [vmem:[%s192_s23] sm:$0x1]  ;;  %v204_v6 = vshrl.u32 %v203_v4, 7  ;;  %vm568_vm7 = vcmask 191616   ;;  %vm689_vm8 = vcmask 257216  }
   0xe   : > { %v199_v1 = vld [vmem:[%s189_s17] sm:$0xf]  ;;  %vm201_vm2 = vcmp.gt.f32.partialorder %v200_v5, 0.0  ;;  %s1000_s30 = scalar_lea.vmem %s1036_s3, %s949_s14 }
   0xf   : > { %v214_v2 = vsel %vm209_vm1, %v199_v1, 0  ;;  %v198_v3 = vld [vmem:[%s185_s20] sm:$0xf]  ;;  %v205_v7 = vsub.s32 0, %v204_v6  ;;  %v202_v9 = vsel %vm201_vm2, 1, %v904_v8  ;;  %v972_v19 = vcombine.low %v199_v1, %v199_v1 }
  0x10   : > { %808 = vmatpush3.bf16.xpose.msra.mxu0 %v214_v2  ;;  %v776_v20 = vcombine.low %v198_v3, %v198_v3 }
  0x11   : > { %825 = vmatprep.subr.bf16.mxu0 %v902_v0  ;;  %v206_v10 = vrot.slane %v202_v9, %v205_v7  ;;  %273 = vrot.lane.b32.xlu1 %v972_v19, %s905_s24 }
  0x13   : > { %vm207_vm3 = vcmp.eq.s32.totalorder %v206_v10, 1 }
  0x14   : > { %v968_v12 = vsel %vm207_vm3, -1e+09, %v902_v0 }
  0x15   : > { %330 = vrot.lane.b32.xlu1 %v972_v19, %s906_s25 }
  0x17   : > { %810 = vmatmul.mubr.msk.bf16.vlgmr.msra.gmra.mxu0 %vm209_vm1, %v198_v3 }
  0x18   : > { %827 = vmatprep.mubr.msk.bf16.mxu0 %vm903_vm0, %v902_v0 }
  0x19   : > { %451 = vrot.lane.b32.xlu1 %v972_v19, %s907_s26 }
  0x1d   : > { %449 = vrot.lane.b32.xlu1 %v776_v20, %s907_s26 }
  0x21   : > { %572 = vrot.lane.b32.xlu1 %v972_v19, %s908_s27 }
  0x25   : > { %570 = vrot.lane.b32.xlu1 %v776_v20, %s908_s27 }
  0x83   : > { %v274_v26 = vpop.permute.xlu1 %273 }
  0x84   : > { %v280_v27 = vsel %vm278_vm4, %v274_v26, 0 }
  0x85   : > { %814 = vmatpush3.bf16.msra.mxu1 %v280_v27 }
  0x86   : > { %819 = vmatprep.subr.bf16.mxu1 %v902_v0 }
  0x87   : > { %v331_v30 = vpop.permute.xlu1 %330 }
  0x88   : > { %v336_v32 = vsel %vm209_vm1, %v331_v30, 0 }
  0x8b   : > { %v452_v34 = vpop.permute.xlu1 %451 }
  0x8c   : > { %v457_v37 = vsel %vm209_vm1, %v452_v34, 0 }
  0x8f   : > { %v450_v36 = vpop.permute.xlu1 %449 }
  0x93   : > { %v573_v38 = vpop.permute.xlu1 %572 }
  0x94   : > { %v578_v39 = vsel %vm209_vm1, %v573_v38, 0 }
  0x97   : > { %v571_v40 = vpop.permute.xlu1 %570 }
  0xd7   : > { %v250_v11 = vpop.f32.mrf.mxu0 }
  0xd8   : > { %v256_v13 = vmul.f32 0.35355338, %v250_v11 }
  0xd9   : > { %v811_v14 = vpop.f32.mrf.mxu0 }
  0xda   : > { %v257_v15 = vadd.f32 %v256_v13, %v968_v12 }
  0xdb   : > { %v253_v16 = vpop.f32.mrf.mxu0 }
  0xdc   : > { %v258_v17 = vsel %vm209_vm1, %v257_v15, -inf }
  0xdd   : > { %259 = vmax.xlane.f32.xlu0 %v258_v17  ;;  %v812_v18 = vpop.f32.mrf.mxu0 }
 0x166   : > { %v260_v21 = vpop.xlane.xlu0 %259 }
 0x167   : > { %v261_v22 = vsub.f32 %v257_v15, %v260_v21 }
 0x169   : > { %v262_v23 = vmul.f32 1.442695, %v261_v22 }
 0x16b   : > { %878 = vpow2.f32 %v262_v23 }
 0x178   : > { %v879_v24 = vpop.eup %878 }
 0x179   : > { %v264_v25 = vsel %vm209_vm1, %v879_v24, 0.0 }
 0x17a   : > { %265 = vadd.xlane.f32.xlu0 %v264_v25 }
 0x190   : > { %328 = vrot.lane.b32.xlu0 %v776_v20, %s906_s25 }
 0x203   : > { %v266_v28 = vpop.xlane.xlu0 %265 }
 0x204   : > { %880 = vrcp.f32 %v266_v28 }
 0x207   : > { %v329_v35 = vpop.permute.xlu0 %328 }
 0x211   : > { %v881_v29 = vpop.eup %880 }
 0x212   : > { %v268_v31 = vmul.f32 %v881_v29, %v879_v24 }
 0x214   : > { %v269_v33 = vpack.c.bf16 %v268_v31, %v268_v31 }
 0x216   : > { %816 = vmatmul.mubr.msk.bf16.vlgmr.msra.gmra.mxu1 %vm209_vm1, %v269_v33 }
 0x217   : > { %820 = vmatpush3.bf16.xpose.msra.mxu1 %v336_v32  ;;  %821 = vmatprep.mubr.msk.bf16.mxu1 %vm903_vm0, %v902_v0 }
 0x218   : > { %831 = vmatprep.subr.bf16.mxu1 %v902_v0 }
 0x21e   : > { %822 = vmatmul.mubr.msk.bf16.vlgmr.msra.gmra.mxu1 %vm209_vm1, %v329_v35 }
 0x21f   : > { %832 = vmatpush3.bf16.xpose.msra.mxu1 %v457_v37  ;;  %833 = vmatprep.mubr.msk.bf16.mxu1 %vm903_vm0, %v902_v0 }
 0x220   : > { %843 = vmatprep.subr.bf16.mxu1 %v902_v0 }
 0x226   : > { %834 = vmatmul.mubr.msk.bf16.vlgmr.msra.gmra.mxu1 %vm209_vm1, %v450_v36 }
 0x227   : > { %844 = vmatpush3.bf16.xpose.msra.mxu1 %v578_v39  ;;  %845 = vmatprep.mubr.msk.bf16.mxu1 %vm903_vm0, %v902_v0 }
 0x22e   : > { %846 = vmatmul.mubr.msk.bf16.vlgmr.msra.gmra.mxu1 %vm209_vm1, %v571_v40 }
 0x2d6   : > { %v316_v41 = vpop.f32.mrf.mxu1 }
 0x2d7   : > { %v322_v42 = vpack.c.bf16 %v316_v41, %v316_v41 }
 0x2d8   : > { %v817_v43 = vpop.f32.mrf.mxu1 }
 0x2d9   : > { %324 = vst.msk [vmem:[%s1000_s30] sm:$0xf] %vm323_vm5, %v322_v42 }
 0x2da   : > { %v319_v44 = vpop.f32.mrf.mxu1 }
 0x2dc   : > { %v818_v45 = vpop.f32.mrf.mxu1 }
 0x2de   : > { %v372_v46 = vpop.f32.mrf.mxu1 }
 0x2df   : > { %v378_v47 = vmul.f32 0.35355338, %v372_v46 }
 0x2e0   : > { %v823_v48 = vpop.f32.mrf.mxu1 }
 0x2e1   : > { %v379_v49 = vadd.f32 %v378_v47, %v968_v12 }
 0x2e2   : > { %v375_v50 = vpop.f32.mrf.mxu1 }
 0x2e3   : > { %v380_v51 = vsel %vm209_vm1, %v379_v49, -inf }
 0x2e4   : > { %381 = vmax.xlane.f32.xlu1 %v380_v51  ;;  %v824_v52 = vpop.f32.mrf.mxu1 }
 0x2e6   : > { %v493_v53 = vpop.f32.mrf.mxu1 }
 0x2e7   : > { %v499_v54 = vmul.f32 0.35355338, %v493_v53 }
 0x2e8   : > { %v835_v55 = vpop.f32.mrf.mxu1 }
 0x2e9   : > { %v500_v56 = vadd.f32 %v499_v54, %v968_v12 }
 0x2ea   : > { %v496_v57 = vpop.f32.mrf.mxu1 }
 0x2eb   : > { %v501_v58 = vsel %vm209_vm1, %v500_v56, -inf }
 0x2ec   : > { %502 = vmax.xlane.f32.xlu0 %v501_v58  ;;  %v836_v59 = vpop.f32.mrf.mxu1 }
 0x2ee   : > { %v614_v60 = vpop.f32.mrf.mxu1 }
 0x2ef   : > { %v620_v61 = vmul.f32 0.35355338, %v614_v60 }
 0x2f0   : > { %v847_v62 = vpop.f32.mrf.mxu1 }
 0x2f1   : > { %v621_v63 = vadd.f32 %v620_v61, %v968_v12 }
 0x2f2   : > { %v617_v1 = vpop.f32.mrf.mxu1 }
 0x2f3   : > { %v622_v2 = vsel %vm209_vm1, %v621_v63, -inf }
 0x2f4   : > { %623 = vmax.xlane.f32.xlu1 %v622_v2  ;;  %v848_v3 = vpop.f32.mrf.mxu1 }
 0x305   : > { %392 = vrot.lane.b32.xlu1 %v972_v19, %s909_s4 }
 0x36d   : > { %v382_v4 = vpop.xlane.xlu1 %381 }
 0x36e   : > { %v383_v5 = vsub.f32 %v379_v49, %v382_v4 }
 0x370   : > { %v384_v6 = vmul.f32 1.442695, %v383_v5 }
 0x372   : > { %882 = vpow2.f32 %v384_v6 }
 0x375   : > { %v503_v7 = vpop.xlane.xlu0 %502 }
 0x376   : > { %v504_v8 = vsub.f32 %v500_v56, %v503_v7 }
 0x378   : > { %v505_v9 = vmul.f32 1.442695, %v504_v8 }
 0x37a   : > { %884 = vpow2.f32 %v505_v9 }
 0x37d   : > { %v624_v10 = vpop.xlane.xlu1 %623 }
 0x37e   : > { %v625_v11 = vsub.f32 %v621_v63, %v624_v10 }
 0x37f   : > { %v883_v13 = vpop.eup %882 }
 0x380   : > { %v626_v12 = vmul.f32 1.442695, %v625_v11  ;;  %v386_v14 = vsel %vm209_vm1, %v883_v13, 0.0 }
 0x381   : > { %387 = vadd.xlane.f32.xlu0 %v386_v14  ;;  %v393_v15 = vpop.permute.xlu1 %392 }
 0x382   : > { %886 = vpow2.f32 %v626_v12  ;;  %v398_v16 = vsel %vm278_vm4, %v393_v15, 0 }
 0x383   : > { %826 = vmatpush3.bf16.msra.mxu0 %v398_v16 }
 0x384   : > { %837 = vmatprep.subr.bf16.mxu0 %v902_v0 }
 0x387   : > { %v885_v17 = vpop.eup %884 }
 0x388   : > { %v507_v18 = vsel %vm209_vm1, %v885_v17, 0.0 }
 0x389   : > { %508 = vadd.xlane.f32.xlu1 %v507_v18 }
 0x38f   : > { %v887_v20 = vpop.eup %886 }
 0x390   : > { %v628_v21 = vsel %vm209_vm1, %v887_v20, 0.0 }
 0x391   : > { %629 = vadd.xlane.f32.xlu0 %v628_v21 }
 0x39a   : > { %634 = vrot.lane.b32.xlu1 %v972_v19, %s910_s5 }
 0x3a7   : > { %513 = vrot.lane.b32.xlu0 %v972_v19, %s911_s6 }
 0x40a   : > { %v388_v22 = vpop.xlane.xlu0 %387 }
 0x40b   : > { %888 = vrcp.f32 %v388_v22 }
 0x412   : > { %v509_v23 = vpop.xlane.xlu1 %508 }
 0x413   : > { %890 = vrcp.f32 %v509_v23 }
 0x416   : > { %v635_v19 = vpop.permute.xlu1 %634 }
 0x417   : > { %v640_v33 = vsel %vm278_vm4, %v635_v19, 0 }
 0x418   : > { %v889_v24 = vpop.eup %888 }
 0x419   : > { %v390_v25 = vmul.f32 %v889_v24, %v883_v13 }
 0x41a   : > { %v630_v26 = vpop.xlane.xlu0 %629 }
 0x41b   : > { %892 = vrcp.f32 %v630_v26  ;;  %v391_v27 = vpack.c.bf16 %v390_v25, %v390_v25 }
 0x41d   : > { %828 = vmatmul.mubr.msk.bf16.vlgmr.msra.gmra.mxu0 %vm209_vm1, %v391_v27 }
 0x41e   : > { %v514_v28 = vpop.permute.xlu0 %513  ;;  %839 = vmatprep.mubr.msk.bf16.mxu0 %vm903_vm0, %v902_v0 }
 0x41f   : > { %v519_v29 = vsel %vm278_vm4, %v514_v28, 0 }
 0x420   : > { %v891_v30 = vpop.eup %890  ;;  %838 = vmatpush3.bf16.msra.mxu0 %v519_v29 }
 0x421   : > { %v511_v31 = vmul.f32 %v891_v30, %v885_v17  ;;  %849 = vmatprep.subr.bf16.mxu0 %v902_v0 }
 0x423   : > { %v512_v32 = vpack.c.bf16 %v511_v31, %v511_v31 }
 0x425   : > { %840 = vmatmul.mubr.msk.bf16.vlgmr.msra.gmra.mxu0 %vm209_vm1, %v512_v32 }
 0x426   : > { %850 = vmatpush3.bf16.msra.mxu0 %v640_v33  ;;  %851 = vmatprep.mubr.msk.bf16.mxu0 %vm903_vm0, %v902_v0 }
 0x428   : > { %v893_v34 = vpop.eup %892 }
 0x429   : > { %v632_v35 = vmul.f32 %v893_v34, %v887_v20 }
 0x42b   : > { %v633_v36 = vpack.c.bf16 %v632_v35, %v632_v35 }
 0x42d   : > { %852 = vmatmul.mubr.msk.bf16.vlgmr.msra.gmra.mxu0 %vm209_vm1, %v633_v36 }
 0x4dd   : > { %v434_v37 = vpop.f32.mrf.mxu0 }
 0x4de   : > { %v788_v38 = vpack.c.bf16 %v434_v37, %v434_v37 }
 0x4df   : > { %v829_v39 = vpop.f32.mrf.mxu0 }
 0x4e0   : > { %444 = vrot.lane.b32.xlu1 %v788_v38, %s912_s7 }
 0x4e1   : > { %v437_v40 = vpop.f32.mrf.mxu0 }
 0x4e3   : > { %v830_v41 = vpop.f32.mrf.mxu0 }
 0x4e5   : > { %v555_v42 = vpop.f32.mrf.mxu0 }
 0x4e6   : > { %v789_v43 = vpack.c.bf16 %v555_v42, %v555_v42 }
 0x4e7   : > { %v841_v44 = vpop.f32.mrf.mxu0 }
 0x4e8   : > { %565 = vrot.lane.b32.xlu0 %v789_v43, %s913_s8 }
 0x4e9   : > { %v558_v0 = vpop.f32.mrf.mxu0 }
 0x4eb   : > { %v842_v45 = vpop.f32.mrf.mxu0 }
 0x4ed   : > { %v676_v46 = vpop.f32.mrf.mxu0 }
 0x4ee   : > { %v790_v47 = vpack.c.bf16 %v676_v46, %v676_v46 }
 0x4ef   : > { %v853_v48 = vpop.f32.mrf.mxu0 }
 0x4f0   : > { %686 = vrot.lane.b32.xlu1 %v790_v47, %s914_s9 }
 0x4f1   : > { %v679_v49 = vpop.f32.mrf.mxu0 }
 0x4f3   : > { %v854_v50 = vpop.f32.mrf.mxu0 }
 0x552   : > { %v445_v51 = vpop.permute.xlu1 %444 }
 0x553   : > { %448 = vst.msk [vmem:[%s1000_s30] sm:$0xf] %vm447_vm6, %v445_v51 }
 0x55a   : > { %v566_v52 = vpop.permute.xlu0 %565 }
 0x55b   : > { %569 = vst.msk [vmem:[%s1000_s30] sm:$0xf] %vm568_vm7, %v566_v52 }
 0x562   : > { %v687_v53 = vpop.permute.xlu1 %686 }
 0x563   : > { %690 = vst.msk [vmem:[%s1000_s30] sm:$0xf] %vm689_vm8, %v687_v53 }
 0x564 PF: > { %s13_s12 = sadd.s32 1, %s900_s12  }
 0x565   : > { %p10_p4 = scmp.ge.s32.totalorder %s13_s12, 4  }
 0x567   :  { %12 = sbr.rel (!%p10_p4) target bundleno = 1 (0x1), region = 68 }

// kernel: transformer_forward.67
= control target key start
LH: loop header
LB: loop body
LE: loop exit
PB: predicated region body
PF: predicated region fallthrough
CT: control target
= control target key end

     0   :  { %v333_v0 = vmov 0.0   ;;  %vm334_vm0 = vmmov 0   ;;  %v335_v10 = vmov 0   ;;  %vm24_vm1 = vcmask 7168   ;;  %s418_s1 = inlined_call_operand.vmem [shape: bf16[128,128], index: 1, kind: input, shape index: {}]   ;;  %s419_s0 = inlined_call_operand.vmem [shape: bf16[16,128], index: 0, kind: input, shape index: {}]   ;;  %s420_s2 = inlined_call_operand.vmem [shape: f32[1,128], index: 2, kind: input, shape index: {}]   ;;  %s421_s3 = inlined_call_operand.vmem [shape: s32[16,1], index: 3, kind: input, shape index: {}]   ;;  %s422_s4 = inlined_call_operand.vmem [shape: f32[16,1], index: 4, kind: output, shape index: {}]  }
   0x1   :  { %286 = vmatprep.subr.bf16.mxu0 %v333_v0  ;;  %v312_v1 = vld [vmem:[%s418_s1 + $0x38] sm:$0xff]   ;;  %302 = vmatprep.mubr.msk.bf16.mxu0 %vm334_vm0, %v333_v0  ;;  %v313_v2 = vld [vmem:[%s418_s1 + $0x30] sm:$0xff]   ;;  %v314_v3 = vld [vmem:[%s418_s1 + $0x28] sm:$0xff]   ;;  %v336_v11 = vmov -1e+30   ;;  %27 = vst.msk [vmem:[#allocation4] sm:$0xff] %vm24_vm1, %v333_v0  ;;  %v169_v12 = vlaneseq }
   0x2   :  { %287 = vmatpush3.bf16.msra.mxu0 %v312_v1  ;;  %v315_v4 = vld [vmem:[%s418_s1 + $0x20] sm:$0xff]   ;;  %v316_v5 = vld [vmem:[%s418_s1 + $0x18] sm:$0xff]   ;;  %v317_v6 = vld [vmem:[%s418_s1 + $0x10] sm:$0xff]   ;;  %311 = vset.pattern.permute.xlu0 %v335_v10  ;;  %25 = vst.msk [vmem:[#allocation3] sm:$0xff] %vm24_vm1, %v336_v11 }
   0x3   :  { %288 = vmatprep.subr.bf16.mxu0 %v333_v0  ;;  %v318_v7 = vld [vmem:[%s418_s1 + $0x8] sm:$0xff]   ;;  %v319_v8 = vld [vmem:[%s418_s1] sm:$0xff]   ;;  %310 = vset.pattern.permute.xlu1 %v335_v10  ;;  %26 = vst.msk [vmem:[#allocation3 + $0x8] sm:$0xff] %vm24_vm1, %v336_v11  ;;  %28 = vst.msk [vmem:[#allocation4 + $0x8] sm:$0xff] %vm24_vm1, %v333_v0  ;;  %v170_v13 = vand.u32 127, %v169_v12 }
   0x4   :  { %v320_v9 = vld [vmem:[%s419_s0] sm:$0xff]   ;;  %29 = vst.msk [vmem:[#allocation5] sm:$0xff] %vm24_vm1, %v333_v0  ;;  %30 = vst.msk [vmem:[#allocation5 + $0x8] sm:$0xff] %vm24_vm1, %v333_v0  ;;  %v176_v32 = vld [vmem:[%s421_s3 + $0x8] sm:$0xff] }
   0x5   :  { %v276_v14 = vld [vmem:[%s420_s2] ss:$0 sm:$0xff]  ;;  %vm174_vm2 = vcmp.lt.s32.totalorder %v170_v13, 16 }
   0x6   :  { %289 = vmatpush3.bf16.msra.mxu0 %v313_v2  ;;  %v175_v23 = vld [vmem:[%s421_s3] sm:$0xff] }
   0x7   :  { %290 = vmatprep.subr.bf16.mxu0 %v333_v0 }
   0x8   :  { %v187_v51 = vld [vmem:[#allocation4] sm:$0xff] }
   0x9   :  { %v179_v24 = vld [vmem:[#allocation3] sm:$0xff] }
   0xa   :  { %291 = vmatpush3.bf16.msra.mxu0 %v314_v3  ;;  %v180_v27 = vld [vmem:[#allocation3 + $0x8] sm:$0xff]  ;;  %v188_v55 = vld [vmem:[#allocation4 + $0x8] sm:$0xff] }
   0xb   :  { %292 = vmatprep.subr.bf16.mxu0 %v333_v0  ;;  %v224_v44 = vld [vmem:[#allocation5] sm:$0xff]  ;;  %v225_v60 = vld [vmem:[#allocation5 + $0x8] sm:$0xff] }
   0xe   :  { %293 = vmatpush3.bf16.msra.mxu0 %v315_v4 }
   0xf   :  { %294 = vmatprep.subr.bf16.mxu0 %v333_v0 }
  0x12   :  { %295 = vmatpush3.bf16.msra.mxu0 %v316_v5 }
  0x13   :  { %296 = vmatprep.subr.bf16.mxu0 %v333_v0 }
  0x16   :  { %297 = vmatpush3.bf16.msra.mxu0 %v317_v6 }
  0x17   :  { %298 = vmatprep.subr.bf16.mxu0 %v333_v0 }
  0x1a   :  { %299 = vmatpush3.bf16.msra.mxu0 %v318_v7 }
  0x1b   :  { %300 = vmatprep.subr.bf16.mxu0 %v333_v0 }
  0x1e   :  { %301 = vmatpush3.bf16.msra.mxu0 %v319_v8 }
  0x21   :  { %303 = vmatmul.mubr.bf16.vlgmr.msra.gmra.mxu0 %v320_v9 }
  0xe1   :  { %v144_v15 = vpop.f32.mrf.mxu0 }
  0xe2   :  { %v167_v16 = vadd.f32 %v276_v14, %v144_v15 }
  0xe3   :  { %v304_v17 = vpop.f32.mrf.mxu0 }
  0xe4   :  { %v177_v18 = vsel %vm174_vm2, %v167_v16, -1e+30 }
  0xe5   :  { %181 = vmax.xlane.f32.xlu0 %v177_v18  ;;  %v147_v19 = vpop.f32.mrf.mxu0 }
  0xe6   :  { %v168_v20 = vadd.f32 %v276_v14, %v147_v19 }
  0xe7   :  { %v305_v21 = vpop.f32.mrf.mxu0 }
  0xe8   :  { %v178_v22 = vsel %vm174_vm2, %v168_v20, -1e+30 }
  0xe9   :  { %183 = vmax.xlane.f32.xlu0 %v178_v22 }
  0xff   :  { %227 = vperm.xlu0 %311, %v175_v23  }
 0x16e   :  { %v182_v25 = vpop.xlane.xlu0 %181 }
 0x16f   :  { %v185_v26 = vmax.f32 %v179_v24, %v182_v25 }
 0x171   :  { %v189_v28 = vsub.f32 %v179_v24, %v185_v26  ;;  %222 = vst.msk [vmem:[#allocation3] sm:$0xff] %vm24_vm1, %v185_v26  ;;  %199 = vperm.xlu1 %310, %v185_v26  }
 0x172   :  { %v184_v29 = vpop.xlane.xlu0 %183 }
 0x173   :  { %v186_v30 = vmax.f32 %v180_v27, %v184_v29  ;;  %v191_v48 = vmul.f32 1.442695, %v189_v28 }
 0x175   :  { %v190_v31 = vsub.f32 %v180_v27, %v186_v30  ;;  %223 = vst.msk [vmem:[#allocation3 + $0x8] sm:$0xff] %vm24_vm1, %v186_v30  ;;  %204 = vperm.xlu1 %310, %v186_v30  }
 0x177   :  { %v193_v49 = vmul.f32 1.442695, %v190_v31 }
 0x178   :  { %v246_v3 = vld [vmem:[#allocation3] sm:$0xff] }
 0x179   :  { %230 = vperm.xlu1 %310, %v176_v32  }
 0x17a   :  { %v228_v33 = vpop.permute.xlu0 %227 }
 0x17b   :  { %vm232_vm3 = vcmp.eq.s32.totalorder %v170_v13, %v228_v33 }
 0x17c   :  { %v234_v34 = vsel %vm232_vm3, %v167_v16, 0.0  ;;  %v247_v9 = vld [vmem:[#allocation3 + $0x8] sm:$0xff] }
 0x17d   :  { %236 = vadd.xlane.f32.xlu0 %v234_v34 }
 0x1ec   :  { %v200_v35 = vpop.permute.xlu1 %199 }
 0x1ed   :  { %v207_v36 = vsub.f32 %v177_v18, %v200_v35 }
 0x1ef   :  { %v209_v37 = vmul.f32 1.442695, %v207_v36 }
 0x1f0   :  { %v205_v38 = vpop.permute.xlu1 %204 }
 0x1f1   :  { %321 = vpow2.f32 %v209_v37  ;;  %v208_v39 = vsub.f32 %v178_v22, %v205_v38 }
 0x1f3   :  { %v211_v40 = vmul.f32 1.442695, %v208_v39 }
 0x1f4   :  { %v231_v42 = vpop.permute.xlu1 %230 }
 0x1f5   :  { %323 = vpow2.f32 %v211_v40  ;;  %vm233_vm4 = vcmp.eq.s32.totalorder %v170_v13, %v231_v42 }
 0x1f6   :  { %v235_v46 = vsel %vm233_vm4, %v168_v20, 0.0  ;;  %325 = vpow2.f32 %v191_v48 }
 0x1f7   :  { %327 = vpow2.f32 %v193_v49 }
 0x1fe   :  { %v322_v41 = vpop.eup %321 }
 0x1ff   :  { %213 = vadd.xlane.f32.xlu1 %v322_v41 }
 0x202   :  { %v324_v43 = vpop.eup %323 }
 0x203   :  { %215 = vadd.xlane.f32.xlu1 %v324_v43  ;;  %v326_v50 = vpop.eup %325 }
 0x204   :  { %v195_v52 = vmul.f32 %v326_v50, %v187_v51  ;;  %v328_v53 = vpop.eup %327 }
 0x205   :  { %v196_v57 = vmul.f32 %v328_v53, %v188_v55 }
 0x206   :  { %v237_v45 = vpop.xlane.xlu0 %236 }
 0x207   :  { %v240_v47 = vadd.f32 %v237_v45, %v224_v44  ;;  %238 = vadd.xlane.f32.xlu1 %v235_v46 }
 0x209   :  { %242 = vst.msk [vmem:[#allocation5] sm:$0xff] %vm24_vm1, %v240_v47 }
 0x210   :  { %v256_v6 = vld [vmem:[#allocation5] sm:$0xff] }
 0x288   :  { %v214_v54 = vpop.xlane.xlu1 %213 }
 0x289   :  { %v217_v56 = vadd.f32 %v214_v54, %v195_v52 }
 0x28b   :  { %220 = vst.msk [vmem:[#allocation4] sm:$0xff] %vm24_vm1, %v217_v56 }
 0x28c   :  { %v216_v58 = vpop.xlane.xlu1 %215 }
 0x28d   :  { %v218_v59 = vadd.f32 %v216_v58, %v196_v57 }
 0x28f   :  { %221 = vst.msk [vmem:[#allocation4 + $0x8] sm:$0xff] %vm24_vm1, %v218_v59 }
 0x290   :  { %v239_v61 = vpop.xlane.xlu1 %238 }
 0x291   :  { %v241_v62 = vadd.f32 %v239_v61, %v225_v60 }
 0x292   :  { %v248_v63 = vld [vmem:[#allocation4] sm:$0xff] }
 0x293   :  { %329 = vlog2.f32 %v248_v63  ;;  %243 = vst.msk [vmem:[#allocation5 + $0x8] sm:$0xff] %vm24_vm1, %v241_v62 }
 0x296   :  { %v249_v0 = vld [vmem:[#allocation4 + $0x8] sm:$0xff] }
 0x297   :  { %331 = vlog2.f32 %v249_v0 }
 0x29a   :  { %v257_v11 = vld [vmem:[#allocation5 + $0x8] sm:$0xff] }
 0x2a0   :  { %v330_v1 = vpop.eup %329 }
 0x2a1   :  { %v251_v2 = vmul.f32 0.6931472, %v330_v1 }
 0x2a3   :  { %v254_v4 = vadd.f32 %v251_v2, %v246_v3 }
 0x2a4   :  { %v332_v5 = vpop.eup %331 }
 0x2a5   :  { %v258_v7 = vsub.f32 %v254_v4, %v256_v6  ;;  %v253_v8 = vmul.f32 0.6931472, %v332_v5 }
 0x2a7   :  { %v255_v10 = vadd.f32 %v253_v8, %v247_v9  ;;  %261 = vst.msk [vmem:[%s422_s4] sm:$0xff] %vm24_vm1, %v258_v7 }
 0x2a9   :  { %v259_v12 = vsub.f32 %v255_v10, %v257_v11 }
 0x2ab   :  { %262 = vst.msk [vmem:[%s422_s4 + $0x8] sm:$0xff] %vm24_vm1, %v259_v12 }

</bundles_post_ra>
